<compile_context>
chip_gen: v5e
topology: v5e:2x2
jax: 0.10.0
libtpu: 0.0.40
codegen_flags: <defaults>
</compile_context>

<pallas_src>
import functools

import numpy as np
import jax
import jax.numpy as jnp
from jax import lax
from jax.experimental import pallas as pl
from jax.experimental.pallas import tpu as pltpu

FP = 128  # lane-padded width for the 2-wide input/output feature dims


# ----------------------------------------------------------------------------
# Pallas kernel: whole forward pass (encoder scan + autoregressive decode)
# ----------------------------------------------------------------------------
def _traj_lstm_kernel(x_ref,
                      e_wih0_ref, e_whh0_ref, e_b0_ref,
                      e_wih1_ref, e_whh1_ref, e_b1_ref,
                      d_wih0_ref, d_whh0_ref, d_b0_ref,
                      d_wih1_ref, d_whh1_ref, d_b1_ref,
                      w_head_ref, b_head_ref,
                      out_ref,
                      *, hidden, seq_len, batch, target_len):
    H, T, B, L = hidden, seq_len, batch, target_len
    G = 4 * H

    def dot(a, b):
        return jnp.dot(a, b, preferred_element_type=jnp.float32)

    # Lane-constant vectors for the fused sigmoid/tanh EUP pass:
    #   sigmoid(x) = 0.5 * tanh(0.5 * x) + 0.5   (i, f, o lanes)
    #   tanh(x)    = 1.0 * tanh(1.0 * x) + 0.0   (g lanes)
    lane = lax.broadcasted_iota(jnp.int32, (B, G), 1)
    is_g = (lane >= 2 * H) & (lane < 3 * H)
    scale = jnp.where(is_g, 1.0, 0.5).astype(jnp.float32)   # pre-scale == post-mul
    shift = jnp.where(is_g, 0.0, 0.5).astype(jnp.float32)

    def activate(gates, c):
        # PyTorch gate order i, f, g, o.  One full-vreg EUP pass for all gates.
        act = jnp.tanh(gates * scale) * scale + shift
        i = act[:, 0 * H:1 * H]
        f = act[:, 1 * H:2 * H]
        g = act[:, 2 * H:3 * H]
        o = act[:, 3 * H:4 * H]
        c_new = f * c + i * g
        h_new = o * jnp.tanh(c_new)
        return h_new, c_new

    # ---- hoisted encoder layer-0 input GEMM (one MXU pass, result in vregs) ----
    # (T*B, FP) @ (FP, 4H) + b0 -> (T*B, 4H): 8 vregs at these shapes.
    xg = dot(x_ref[...], e_wih0_ref[...]) + e_b0_ref[...]

    # ---- encoder weights, hoisted out of the recurrence ----
    e_whh0 = e_whh0_ref[...]
    e_wih1 = e_wih1_ref[...]
    e_whh1 = e_whh1_ref[...]
    e_b1b = jnp.broadcast_to(e_b1_ref[...], (B, G))

    z = jnp.zeros((B, H), jnp.float32)
    h0, c0, h1, c1 = z, z, z, z

    # ---------------- encoder: fully unrolled scan over the input sequence ----
    for t in range(T):
        g0 = xg[t * B:(t + 1) * B, :] + dot(h0, e_whh0)
        h0, c0 = activate(g0, c0)
        g1 = dot(h0, e_wih1) + dot(h1, e_whh1) + e_b1b
        h1, c1 = activate(g1, c1)

    # ---- decoder weights, hoisted out of the rollout ----
    d_whh0 = d_whh0_ref[...]
    d_wih1 = d_wih1_ref[...]
    d_whh1 = d_whh1_ref[...]
    d_b1b = jnp.broadcast_to(d_b1_ref[...], (B, G))
    w_head = w_head_ref[...]                                  # (H, FP + 4H)
    b_headb = jnp.broadcast_to(b_head_ref[...], (B, FP + G))

    # Peeled step-0 gate input: decoder_input = x[:, -1, :] (padded row block).
    x_last = x_ref[(T - 1) * B:T * B, :]
    gin = dot(x_last, d_wih0_ref[...]) + jnp.broadcast_to(d_b0_ref[...], (B, G))

    # ---------------- decoder: fully unrolled autoregressive rollout ----------
    for s in range(L):
        g0 = gin + dot(h0, d_whh0)
        h0, c0 = activate(g0, c0)
        g1 = dot(h0, d_wih1) + dot(h1, d_whh1) + d_b1b
        h1, c1 = activate(g1, c1)
        # Single N-stacked head matmul: lanes [0:FP) = padded pred (written out),
        # lanes [FP:FP+4H) = fused FC + decoder layer-0 input gates for next step.
        hd = dot(h1, w_head) + b_headb
        out_ref[s] = hd[:, :FP]
        gin = hd[:, FP:]


# ----------------------------------------------------------------------------
# Wrapper: parameter padding / fusion / layout plumbing + pallas_call
# ----------------------------------------------------------------------------
def trajectory_lstm_forward(x, params, target_len=45):
    """x: (B, T, input_size) batch-first, like the PyTorch module."""
    B, T, Din = x.shape
    H = params["hidden"]
    Dout = params["output_size"]
    B_pad = max(8, -(-B // 8) * 8)   # pad batch to a multiple of 8 sublanes
    hp = jax.lax.Precision.HIGHEST

    # batch-first (B,T,F) -> time-major (T*B_pad, FP) with zero-padded features
    x_tm = jnp.transpose(x.astype(jnp.float32), (1, 0, 2))           # (T,B,Din)
    x_pad = jnp.zeros((T, B_pad, FP), jnp.float32).at[:, :B, :Din].set(x_tm)
    x2d = x_pad.reshape(T * B_pad, FP)

    def t_pad_rows(w):  # (4H, din) -> (FP, 4H), zero rows beyond din
        wt = w.T
        return jnp.zeros((FP, wt.shape[1]), jnp.float32).at[:wt.shape[0]].set(wt)

    enc, dec = params["encoder"], params["decoder"]
    e_wih0 = t_pad_rows(enc[0][0]); e_whh0 = enc[0][1].T; e_b0 = enc[0][2][None, :]
    e_wih1 = enc[1][0].T;           e_whh1 = enc[1][1].T; e_b1 = enc[1][2][None, :]
    d_wih0 = t_pad_rows(dec[0][0]); d_whh0 = dec[0][1].T; d_b0 = dec[0][2][None, :]
    d_wih1 = dec[1][0].T;           d_whh1 = dec[1][1].T; d_b1 = dec[1][2][None, :]

    w_fc, b_fc = params["fc"]
    w_fc_pad = jnp.zeros((H, FP), jnp.float32).at[:, :Dout].set(w_fc.T)
    b_fc_pad = jnp.zeros((1, FP), jnp.float32).at[0, :Dout].set(b_fc)

    # Fused feedback weights: pred @ W_ih0^T + b_ih0  ==  h1 @ wfuse + bfuse
    wfuse = jnp.dot(w_fc.T, dec[0][0].T, precision=hp)                 # (H, 4H)
    bfuse = jnp.dot(b_fc[None, :], dec[0][0].T, precision=hp) + d_b0   # (1, 4H)

    # N-stacked decoder head: one (H, FP+4H) matmul per step -> [pred | next gates].
    w_head = jnp.concatenate([w_fc_pad, wfuse], axis=1)
    b_head = jnp.concatenate([b_fc_pad, bfuse], axis=1)

    args = [x2d,
            e_wih0, e_whh0, e_b0, e_wih1, e_whh1, e_b1,
            d_wih0, d_whh0, d_b0, d_wih1, d_whh1, d_b1,
            w_head, b_head]

    kernel = functools.partial(_traj_lstm_kernel, hidden=H, seq_len=T,
                               batch=B_pad, target_len=target_len)

    out_pad = pl.pallas_call(
        kernel,
        out_shape=jax.ShapeDtypeStruct((target_len, B_pad, FP), jnp.float32),
        in_specs=[pl.BlockSpec(memory_space=pltpu.MemorySpace.VMEM)] * len(args),
        out_specs=pl.BlockSpec(memory_space=pltpu.MemorySpace.VMEM),
    )(*args)

    # (L, B_pad, FP) -> (B, L, Dout), matching torch.cat(outputs, dim=1)
    return jnp.transpose(out_pad[:, :B, :Dout], (1, 0, 2))


# ----------------------------------------------------------------------------
# Deterministic parameter init (PyTorch-style uniform(-1/sqrt(H), 1/sqrt(H)))
# Note: a single combined bias (b_ih + b_hh) is sampled per layer — fine for
# synthetic verification; real PyTorch state dicts would supply b_ih and b_hh
# separately (just sum them before passing in).
# ----------------------------------------------------------------------------
def init_params(key, input_size=2, hidden_size=32, output_size=2, num_layers=2):
    assert num_layers == 2
    k = 1.0 / np.sqrt(hidden_size)
    keys = jax.random.split(key, 14)

    def u(kk, shape):
        return jax.random.uniform(kk, shape, jnp.float32, minval=-k, maxval=k)

    def lstm_layers(ks, in0):
        layers = []
        sizes = [in0, hidden_size]
        for l in range(num_layers):
            w_ih = u(ks[3 * l + 0], (4 * hidden_size, sizes[l]))
            w_hh = u(ks[3 * l + 1], (4 * hidden_size, hidden_size))
            b = u(ks[3 * l + 2], (4 * hidden_size,)) * 2.0
            layers.append((w_ih, w_hh, b))
        return layers

    enc = lstm_layers(keys[0:6], input_size)
    dec = lstm_layers(keys[6:12], output_size)
    w_fc = u(keys[12], (output_size, hidden_size))
    b_fc = u(keys[13], (output_size,))
    return {"hidden": hidden_size, "output_size": output_size,
            "encoder": enc, "decoder": dec, "fc": (w_fc, b_fc)}


# ----------------------------------------------------------------------------
# Pure-JAX reference (mirrors the PyTorch forward) for verification
# ----------------------------------------------------------------------------
def reference_forward(x, params, target_len=45):
    H = params["hidden"]
    hp = jax.lax.Precision.HIGHEST

    def mm(a, b):
        return jnp.dot(a, b, precision=hp)

    def cell(x_t, h, c, w_ih, w_hh, b):
        gates = mm(x_t, w_ih.T) + mm(h, w_hh.T) + b
        i, f, g, o = jnp.split(gates, 4, axis=-1)
        c = jax.nn.sigmoid(f) * c + jax.nn.sigmoid(i) * jnp.tanh(g)
        h = jax.nn.sigmoid(o) * jnp.tanh(c)
        return h, c

    B, T, _ = x.shape
    z = jnp.zeros((B, H), jnp.float32)
    h0 = c0 = h1 = c1 = z
    enc, dec = params["encoder"], params["decoder"]
    for t in range(T):
        h0, c0 = cell(x[:, t], h0, c0, *enc[0])
        h1, c1 = cell(h0, h1, c1, *enc[1])
    w_fc, b_fc = params["fc"]
    dec_in = x[:, -1]
    outs = []
    for _ in range(target_len):
        h0, c0 = cell(dec_in, h0, c0, *dec[0])
        h1, c1 = cell(h0, h1, c1, *dec[1])
        pred = mm(h1, w_fc.T) + b_fc
        outs.append(pred[:, None, :])
        dec_in = pred
    return jnp.concatenate(outs, axis=1)


if __name__ == "__main__":
    key = jax.random.PRNGKey(0)
    pkey, xkey = jax.random.split(key)

    B, T, Din, H, Dout = 2, 8, 2, 32, 2
    target_len = 10

    params = init_params(pkey, input_size=Din, hidden_size=H, output_size=Dout)
    input_seq = jax.random.normal(xkey, (B, T, Din), jnp.float32)

    out = trajectory_lstm_forward(input_seq, params, target_len=target_len)
    out = jax.block_until_ready(out)
    assert out.shape == (B, target_len, Dout)

    ref = reference_forward(input_seq, params, target_len=target_len)
    max_err = float(jnp.max(jnp.abs(out - ref)))
    # Tolerance covers MXU precision differences vs. the HIGHEST-precision
    # reference over the autoregressive rollout (kernel keeps f32 operands).
    if not np.allclose(np.asarray(out), np.asarray(ref), atol=2e-3, rtol=2e-3):
        raise AssertionError(f"Pallas output mismatch, max abs err = {max_err}")

    print("KERNEL_OK")
</pallas_src>

<mosaic_0001>
module attributes {stable_mosaic.version = 11 : i64} {
  func.func @_traj_lstm_kernel(%arg0: memref<64x128xf32, #tpu.memory_space<vmem>>, %arg1: memref<128x128xf32, #tpu.memory_space<vmem>>, %arg2: memref<32x128xf32, #tpu.memory_space<vmem>>, %arg3: memref<1x128xf32, #tpu.memory_space<vmem>>, %arg4: memref<32x128xf32, #tpu.memory_space<vmem>>, %arg5: memref<32x128xf32, #tpu.memory_space<vmem>>, %arg6: memref<1x128xf32, #tpu.memory_space<vmem>>, %arg7: memref<128x128xf32, #tpu.memory_space<vmem>>, %arg8: memref<32x128xf32, #tpu.memory_space<vmem>>, %arg9: memref<1x128xf32, #tpu.memory_space<vmem>>, %arg10: memref<32x128xf32, #tpu.memory_space<vmem>>, %arg11: memref<32x128xf32, #tpu.memory_space<vmem>>, %arg12: memref<1x128xf32, #tpu.memory_space<vmem>>, %arg13: memref<32x256xf32, #tpu.memory_space<vmem>>, %arg14: memref<1x256xf32, #tpu.memory_space<vmem>>, %arg15: memref<10x8x128xf32, #tpu.memory_space<vmem>>) attributes {dimension_semantics = [], scalar_prefetch = 0 : i64, scratch_operands = 0 : i64, tpu.core_type = #tpu.core_type<tc>} {
    %0 = tpu.iota {dimensions = array<i32: 1>} : vector<8x128xi32>
    %c64_i32 = arith.constant 64 : i32
    %1 = vector.broadcast %c64_i32 : i32 to vector<8x128xi32>
    %2 = arith.cmpi sge, %0, %1 : vector<8x128xi32>
    %c96_i32 = arith.constant 96 : i32
    %3 = vector.broadcast %c96_i32 : i32 to vector<8x128xi32>
    %4 = arith.cmpi slt, %0, %3 : vector<8x128xi32>
    %5 = arith.andi %2, %4 : vector<8x128xi1>
    %cst = arith.constant 1.000000e+00 : f32
    %cst_0 = arith.constant 5.000000e-01 : f32
    %6 = vector.broadcast %cst : f32 to vector<8x128xf32>
    %7 = vector.broadcast %cst_0 : f32 to vector<8x128xf32>
    %8 = arith.select %5, %6, %7 : vector<8x128xi1>, vector<8x128xf32>
    %cst_1 = arith.constant 0.000000e+00 : f32
    %cst_2 = arith.constant 5.000000e-01 : f32
    %9 = vector.broadcast %cst_1 : f32 to vector<8x128xf32>
    %10 = vector.broadcast %cst_2 : f32 to vector<8x128xf32>
    %11 = arith.select %5, %9, %10 : vector<8x128xi1>, vector<8x128xf32>
    %c0 = arith.constant 0 : index
    %c0_3 = arith.constant 0 : index
    %12 = vector.load %arg0[%c0, %c0_3] : memref<64x128xf32, #tpu.memory_space<vmem>>, vector<64x128xf32>
    %c0_4 = arith.constant 0 : index
    %c0_5 = arith.constant 0 : index
    %13 = vector.load %arg1[%c0_4, %c0_5] : memref<128x128xf32, #tpu.memory_space<vmem>>, vector<128x128xf32>
    %cst_6 = arith.constant dense<0.000000e+00> : vector<64x128xf32>
    %14 = tpu.matmul %12, %13, %cst_6 {dimension_numbers = #tpu.dot_dimension_numbers<[1], [0], [0], [1], [0, 0, 1, 1], [], []>} : vector<64x128xf32>, vector<128x128xf32>, vector<64x128xf32> -> vector<64x128xf32>
    %c0_7 = arith.constant 0 : index
    %c0_8 = arith.constant 0 : index
    %15 = vector.load %arg3[%c0_7, %c0_8] : memref<1x128xf32, #tpu.memory_space<vmem>>, vector<1x128xf32>
    %16 = vector.broadcast %15 : vector<1x128xf32> to vector<64x128xf32>
    %17 = arith.addf %14, %16 : vector<64x128xf32>
    %c0_9 = arith.constant 0 : index
    %c0_10 = arith.constant 0 : index
    %18 = vector.load %arg2[%c0_9, %c0_10] : memref<32x128xf32, #tpu.memory_space<vmem>>, vector<32x128xf32>
    %c0_11 = arith.constant 0 : index
    %c0_12 = arith.constant 0 : index
    %19 = vector.load %arg4[%c0_11, %c0_12] : memref<32x128xf32, #tpu.memory_space<vmem>>, vector<32x128xf32>
    %c0_13 = arith.constant 0 : index
    %c0_14 = arith.constant 0 : index
    %20 = vector.load %arg5[%c0_13, %c0_14] : memref<32x128xf32, #tpu.memory_space<vmem>>, vector<32x128xf32>
    %c0_15 = arith.constant 0 : index
    %c0_16 = arith.constant 0 : index
    %21 = vector.load %arg6[%c0_15, %c0_16] : memref<1x128xf32, #tpu.memory_space<vmem>>, vector<1x128xf32>
    %22 = vector.shape_cast %21 : vector<1x128xf32> to vector<1x128xf32>
    %23 = vector.broadcast %22 : vector<1x128xf32> to vector<8x128xf32>
    %cst_17 = arith.constant 0.000000e+00 : f32
    %24 = vector.broadcast %cst_17 : f32 to vector<8x32xf32>
    %25 = vector.extract_strided_slice %17 {offsets = [0, 0], sizes = [8, 128], strides = [1, 1]} : vector<64x128xf32> to vector<8x128xf32>
    %cst_18 = arith.constant dense<0.000000e+00> : vector<8x128xf32>
    %26 = tpu.matmul %24, %18, %cst_18 {dimension_numbers = #tpu.dot_dimension_numbers<[1], [0], [0], [1], [0, 0, 1, 1], [], []>} : vector<8x32xf32>, vector<32x128xf32>, vector<8x128xf32> -> vector<8x128xf32>
    %27 = arith.addf %25, %26 : vector<8x128xf32>
    %28 = arith.mulf %27, %8 : vector<8x128xf32>
    %29 = math.tanh %28 : vector<8x128xf32>
    %30 = arith.mulf %29, %8 : vector<8x128xf32>
    %31 = arith.addf %30, %11 : vector<8x128xf32>
    %32 = vector.extract_strided_slice %31 {offsets = [0, 0], sizes = [8, 32], strides = [1, 1]} : vector<8x128xf32> to vector<8x32xf32>
    %33 = vector.extract_strided_slice %31 {offsets = [0, 32], sizes = [8, 32], strides = [1, 1]} : vector<8x128xf32> to vector<8x32xf32>
    %34 = vector.extract_strided_slice %31 {offsets = [0, 64], sizes = [8, 32], strides = [1, 1]} : vector<8x128xf32> to vector<8x32xf32>
    %35 = vector.extract_strided_slice %31 {offsets = [0, 96], sizes = [8, 32], strides = [1, 1]} : vector<8x128xf32> to vector<8x32xf32>
    %36 = arith.mulf %33, %24 : vector<8x32xf32>
    %37 = arith.mulf %32, %34 : vector<8x32xf32>
    %38 = arith.addf %36, %37 : vector<8x32xf32>
    %39 = math.tanh %38 : vector<8x32xf32>
    %40 = arith.mulf %35, %39 : vector<8x32xf32>
    %cst_19 = arith.constant dense<0.000000e+00> : vector<8x128xf32>
    %41 = tpu.matmul %40, %19, %cst_19 {dimension_numbers = #tpu.dot_dimension_numbers<[1], [0], [0], [1], [0, 0, 1, 1], [], []>} : vector<8x32xf32>, vector<32x128xf32>, vector<8x128xf32> -> vector<8x128xf32>
    %cst_20 = arith.constant dense<0.000000e+00> : vector<8x128xf32>
    %42 = tpu.matmul %24, %20, %cst_20 {dimension_numbers = #tpu.dot_dimension_numbers<[1], [0], [0], [1], [0, 0, 1, 1], [], []>} : vector<8x32xf32>, vector<32x128xf32>, vector<8x128xf32> -> vector<8x128xf32>
    %43 = arith.addf %41, %42 : vector<8x128xf32>
    %44 = arith.addf %43, %23 : vector<8x128xf32>
    %45 = arith.mulf %44, %8 : vector<8x128xf32>
    %46 = math.tanh %45 : vector<8x128xf32>
    %47 = arith.mulf %46, %8 : vector<8x128xf32>
    %48 = arith.addf %47, %11 : vector<8x128xf32>
    %49 = vector.extract_strided_slice %48 {offsets = [0, 0], sizes = [8, 32], strides = [1, 1]} : vector<8x128xf32> to vector<8x32xf32>
    %50 = vector.extract_strided_slice %48 {offsets = [0, 32], sizes = [8, 32], strides = [1, 1]} : vector<8x128xf32> to vector<8x32xf32>
    %51 = vector.extract_strided_slice %48 {offsets = [0, 64], sizes = [8, 32], strides = [1, 1]} : vector<8x128xf32> to vector<8x32xf32>
    %52 = vector.extract_strided_slice %48 {offsets = [0, 96], sizes = [8, 32], strides = [1, 1]} : vector<8x128xf32> to vector<8x32xf32>
    %53 = arith.mulf %50, %24 : vector<8x32xf32>
    %54 = arith.mulf %49, %51 : vector<8x32xf32>
    %55 = arith.addf %53, %54 : vector<8x32xf32>
    %56 = math.tanh %55 : vector<8x32xf32>
    %57 = arith.mulf %52, %56 : vector<8x32xf32>
    %58 = vector.extract_strided_slice %17 {offsets = [8, 0], sizes = [8, 128], strides = [1, 1]} : vector<64x128xf32> to vector<8x128xf32>
    %cst_21 = arith.constant dense<0.000000e+00> : vector<8x128xf32>
    %59 = tpu.matmul %40, %18, %cst_21 {dimension_numbers = #tpu.dot_dimension_numbers<[1], [0], [0], [1], [0, 0, 1, 1], [], []>} : vector<8x32xf32>, vector<32x128xf32>, vector<8x128xf32> -> vector<8x128xf32>
    %60 = arith.addf %58, %59 : vector<8x128xf32>
    %61 = arith.mulf %60, %8 : vector<8x128xf32>
    %62 = math.tanh %61 : vector<8x128xf32>
    %63 = arith.mulf %62, %8 : vector<8x128xf32>
    %64 = arith.addf %63, %11 : vector<8x128xf32>
    %65 = vector.extract_strided_slice %64 {offsets = [0, 0], sizes = [8, 32], strides = [1, 1]} : vector<8x128xf32> to vector<8x32xf32>
    %66 = vector.extract_strided_slice %64 {offsets = [0, 32], sizes = [8, 32], strides = [1, 1]} : vector<8x128xf32> to vector<8x32xf32>
    %67 = vector.extract_strided_slice %64 {offsets = [0, 64], sizes = [8, 32], strides = [1, 1]} : vector<8x128xf32> to vector<8x32xf32>
    %68 = vector.extract_strided_slice %64 {offsets = [0, 96], sizes = [8, 32], strides = [1, 1]} : vector<8x128xf32> to vector<8x32xf32>
    %69 = arith.mulf %66, %38 : vector<8x32xf32>
    %70 = arith.mulf %65, %67 : vector<8x32xf32>
    %71 = arith.addf %69, %70 : vector<8x32xf32>
    %72 = math.tanh %71 : vector<8x32xf32>
    %73 = arith.mulf %68, %72 : vector<8x32xf32>
    %cst_22 = arith.constant dense<0.000000e+00> : vector<8x128xf32>
    %74 = tpu.matmul %73, %19, %cst_22 {dimension_numbers = #tpu.dot_dimension_numbers<[1], [0], [0], [1], [0, 0, 1, 1], [], []>} : vector<8x32xf32>, vector<32x128xf32>, vector<8x128xf32> -> vector<8x128xf32>
    %cst_23 = arith.constant dense<0.000000e+00> : vector<8x128xf32>
    %75 = tpu.matmul %57, %20, %cst_23 {dimension_numbers = #tpu.dot_dimension_numbers<[1], [0], [0], [1], [0, 0, 1, 1], [], []>} : vector<8x32xf32>, vector<32x128xf32>, vector<8x128xf32> -> vector<8x128xf32>
    %76 = arith.addf %74, %75 : vector<8x128xf32>
    %77 = arith.addf %76, %23 : vector<8x128xf32>
    %78 = arith.mulf %77, %8 : vector<8x128xf32>
    %79 = math.tanh %78 : vector<8x128xf32>
    %80 = arith.mulf %79, %8 : vector<8x128xf32>
    %81 = arith.addf %80, %11 : vector<8x128xf32>
    %82 = vector.extract_strided_slice %81 {offsets = [0, 0], sizes = [8, 32], strides = [1, 1]} : vector<8x128xf32> to vector<8x32xf32>
    %83 = vector.extract_strided_slice %81 {offsets = [0, 32], sizes = [8, 32], strides = [1, 1]} : vector<8x128xf32> to vector<8x32xf32>
    %84 = vector.extract_strided_slice %81 {offsets = [0, 64], sizes = [8, 32], strides = [1, 1]} : vector<8x128xf32> to vector<8x32xf32>
    %85 = vector.extract_strided_slice %81 {offsets = [0, 96], sizes = [8, 32], strides = [1, 1]} : vector<8x128xf32> to vector<8x32xf32>
    %86 = arith.mulf %83, %55 : vector<8x32xf32>
    %87 = arith.mulf %82, %84 : vector<8x32xf32>
    %88 = arith.addf %86, %87 : vector<8x32xf32>
    %89 = math.tanh %88 : vector<8x32xf32>
    %90 = arith.mulf %85, %89 : vector<8x32xf32>
    %91 = vector.extract_strided_slice %17 {offsets = [16, 0], sizes = [8, 128], strides = [1, 1]} : vector<64x128xf32> to vector<8x128xf32>
    %cst_24 = arith.constant dense<0.000000e+00> : vector<8x128xf32>
    %92 = tpu.matmul %73, %18, %cst_24 {dimension_numbers = #tpu.dot_dimension_numbers<[1], [0], [0], [1], [0, 0, 1, 1], [], []>} : vector<8x32xf32>, vector<32x128xf32>, vector<8x128xf32> -> vector<8x128xf32>
    %93 = arith.addf %91, %92 : vector<8x128xf32>
    %94 = arith.mulf %93, %8 : vector<8x128xf32>
    %95 = math.tanh %94 : vector<8x128xf32>
    %96 = arith.mulf %95, %8 : vector<8x128xf32>
    %97 = arith.addf %96, %11 : vector<8x128xf32>
    %98 = vector.extract_strided_slice %97 {offsets = [0, 0], sizes = [8, 32], strides = [1, 1]} : vector<8x128xf32> to vector<8x32xf32>
    %99 = vector.extract_strided_slice %97 {offsets = [0, 32], sizes = [8, 32], strides = [1, 1]} : vector<8x128xf32> to vector<8x32xf32>
    %100 = vector.extract_strided_slice %97 {offsets = [0, 64], sizes = [8, 32], strides = [1, 1]} : vector<8x128xf32> to vector<8x32xf32>
    %101 = vector.extract_strided_slice %97 {offsets = [0, 96], sizes = [8, 32], strides = [1, 1]} : vector<8x128xf32> to vector<8x32xf32>
    %102 = arith.mulf %99, %71 : vector<8x32xf32>
    %103 = arith.mulf %98, %100 : vector<8x32xf32>
    %104 = arith.addf %102, %103 : vector<8x32xf32>
    %105 = math.tanh %104 : vector<8x32xf32>
    %106 = arith.mulf %101, %105 : vector<8x32xf32>
    %cst_25 = arith.constant dense<0.000000e+00> : vector<8x128xf32>
    %107 = tpu.matmul %106, %19, %cst_25 {dimension_numbers = #tpu.dot_dimension_numbers<[1], [0], [0], [1], [0, 0, 1, 1], [], []>} : vector<8x32xf32>, vector<32x128xf32>, vector<8x128xf32> -> vector<8x128xf32>
    %cst_26 = arith.constant dense<0.000000e+00> : vector<8x128xf32>
    %108 = tpu.matmul %90, %20, %cst_26 {dimension_numbers = #tpu.dot_dimension_numbers<[1], [0], [0], [1], [0, 0, 1, 1], [], []>} : vector<8x32xf32>, vector<32x128xf32>, vector<8x128xf32> -> vector<8x128xf32>
    %109 = arith.addf %107, %108 : vector<8x128xf32>
    %110 = arith.addf %109, %23 : vector<8x128xf32>
    %111 = arith.mulf %110, %8 : vector<8x128xf32>
    %112 = math.tanh %111 : vector<8x128xf32>
    %113 = arith.mulf %112, %8 : vector<8x128xf32>
    %114 = arith.addf %113, %11 : vector<8x128xf32>
    %115 = vector.extract_strided_slice %114 {offsets = [0, 0], sizes = [8, 32], strides = [1, 1]} : vector<8x128xf32> to vector<8x32xf32>
    %116 = vector.extract_strided_slice %114 {offsets = [0, 32], sizes = [8, 32], strides = [1, 1]} : vector<8x128xf32> to vector<8x32xf32>
    %117 = vector.extract_strided_slice %114 {offsets = [0, 64], sizes = [8, 32], strides = [1, 1]} : vector<8x128xf32> to vector<8x32xf32>
    %118 = vector.extract_strided_slice %114 {offsets = [0, 96], sizes = [8, 32], strides = [1, 1]} : vector<8x128xf32> to vector<8x32xf32>
    %119 = arith.mulf %116, %88 : vector<8x32xf32>
    %120 = arith.mulf %115, %117 : vector<8x32xf32>
    %121 = arith.addf %119, %120 : vector<8x32xf32>
    %122 = math.tanh %121 : vector<8x32xf32>
    %123 = arith.mulf %118, %122 : vector<8x32xf32>
    %124 = vector.extract_strided_slice %17 {offsets = [24, 0], sizes = [8, 128], strides = [1, 1]} : vector<64x128xf32> to vector<8x128xf32>
    %cst_27 = arith.constant dense<0.000000e+00> : vector<8x128xf32>
    %125 = tpu.matmul %106, %18, %cst_27 {dimension_numbers = #tpu.dot_dimension_numbers<[1], [0], [0], [1], [0, 0, 1, 1], [], []>} : vector<8x32xf32>, vector<32x128xf32>, vector<8x128xf32> -> vector<8x128xf32>
    %126 = arith.addf %124, %125 : vector<8x128xf32>
    %127 = arith.mulf %126, %8 : vector<8x128xf32>
    %128 = math.tanh %127 : vector<8x128xf32>
    %129 = arith.mulf %128, %8 : vector<8x128xf32>
    %130 = arith.addf %129, %11 : vector<8x128xf32>
    %131 = vector.extract_strided_slice %130 {offsets = [0, 0], sizes = [8, 32], strides = [1, 1]} : vector<8x128xf32> to vector<8x32xf32>
    %132 = vector.extract_strided_slice %130 {offsets = [0, 32], sizes = [8, 32], strides = [1, 1]} : vector<8x128xf32> to vector<8x32xf32>
    %133 = vector.extract_strided_slice %130 {offsets = [0, 64], sizes = [8, 32], strides = [1, 1]} : vector<8x128xf32> to vector<8x32xf32>
    %134 = vector.extract_strided_slice %130 {offsets = [0, 96], sizes = [8, 32], strides = [1, 1]} : vector<8x128xf32> to vector<8x32xf32>
    %135 = arith.mulf %132, %104 : vector<8x32xf32>
    %136 = arith.mulf %131, %133 : vector<8x32xf32>
    %137 = arith.addf %135, %136 : vector<8x32xf32>
    %138 = math.tanh %137 : vector<8x32xf32>
    %139 = arith.mulf %134, %138 : vector<8x32xf32>
    %cst_28 = arith.constant dense<0.000000e+00> : vector<8x128xf32>
    %140 = tpu.matmul %139, %19, %cst_28 {dimension_numbers = #tpu.dot_dimension_numbers<[1], [0], [0], [1], [0, 0, 1, 1], [], []>} : vector<8x32xf32>, vector<32x128xf32>, vector<8x128xf32> -> vector<8x128xf32>
    %cst_29 = arith.constant dense<0.000000e+00> : vector<8x128xf32>
    %141 = tpu.matmul %123, %20, %cst_29 {dimension_numbers = #tpu.dot_dimension_numbers<[1], [0], [0], [1], [0, 0, 1, 1], [], []>} : vector<8x32xf32>, vector<32x128xf32>, vector<8x128xf32> -> vector<8x128xf32>
    %142 = arith.addf %140, %141 : vector<8x128xf32>
    %143 = arith.addf %142, %23 : vector<8x128xf32>
    %144 = arith.mulf %143, %8 : vector<8x128xf32>
    %145 = math.tanh %144 : vector<8x128xf32>
    %146 = arith.mulf %145, %8 : vector<8x128xf32>
    %147 = arith.addf %146, %11 : vector<8x128xf32>
    %148 = vector.extract_strided_slice %147 {offsets = [0, 0], sizes = [8, 32], strides = [1, 1]} : vector<8x128xf32> to vector<8x32xf32>
    %149 = vector.extract_strided_slice %147 {offsets = [0, 32], sizes = [8, 32], strides = [1, 1]} : vector<8x128xf32> to vector<8x32xf32>
    %150 = vector.extract_strided_slice %147 {offsets = [0, 64], sizes = [8, 32], strides = [1, 1]} : vector<8x128xf32> to vector<8x32xf32>
    %151 = vector.extract_strided_slice %147 {offsets = [0, 96], sizes = [8, 32], strides = [1, 1]} : vector<8x128xf32> to vector<8x32xf32>
    %152 = arith.mulf %149, %121 : vector<8x32xf32>
    %153 = arith.mulf %148, %150 : vector<8x32xf32>
    %154 = arith.addf %152, %153 : vector<8x32xf32>
    %155 = math.tanh %154 : vector<8x32xf32>
    %156 = arith.mulf %151, %155 : vector<8x32xf32>
    %157 = vector.extract_strided_slice %17 {offsets = [32, 0], sizes = [8, 128], strides = [1, 1]} : vector<64x128xf32> to vector<8x128xf32>
    %cst_30 = arith.constant dense<0.000000e+00> : vector<8x128xf32>
    %158 = tpu.matmul %139, %18, %cst_30 {dimension_numbers = #tpu.dot_dimension_numbers<[1], [0], [0], [1], [0, 0, 1, 1], [], []>} : vector<8x32xf32>, vector<32x128xf32>, vector<8x128xf32> -> vector<8x128xf32>
    %159 = arith.addf %157, %158 : vector<8x128xf32>
    %160 = arith.mulf %159, %8 : vector<8x128xf32>
    %161 = math.tanh %160 : vector<8x128xf32>
    %162 = arith.mulf %161, %8 : vector<8x128xf32>
    %163 = arith.addf %162, %11 : vector<8x128xf32>
    %164 = vector.extract_strided_slice %163 {offsets = [0, 0], sizes = [8, 32], strides = [1, 1]} : vector<8x128xf32> to vector<8x32xf32>
    %165 = vector.extract_strided_slice %163 {offsets = [0, 32], sizes = [8, 32], strides = [1, 1]} : vector<8x128xf32> to vector<8x32xf32>
    %166 = vector.extract_strided_slice %163 {offsets = [0, 64], sizes = [8, 32], strides = [1, 1]} : vector<8x128xf32> to vector<8x32xf32>
    %167 = vector.extract_strided_slice %163 {offsets = [0, 96], sizes = [8, 32], strides = [1, 1]} : vector<8x128xf32> to vector<8x32xf32>
    %168 = arith.mulf %165, %137 : vector<8x32xf32>
    %169 = arith.mulf %164, %166 : vector<8x32xf32>
    %170 = arith.addf %168, %169 : vector<8x32xf32>
    %171 = math.tanh %170 : vector<8x32xf32>
    %172 = arith.mulf %167, %171 : vector<8x32xf32>
    %cst_31 = arith.constant dense<0.000000e+00> : vector<8x128xf32>
    %173 = tpu.matmul %172, %19, %cst_31 {dimension_numbers = #tpu.dot_dimension_numbers<[1], [0], [0], [1], [0, 0, 1, 1], [], []>} : vector<8x32xf32>, vector<32x128xf32>, vector<8x128xf32> -> vector<8x128xf32>
    %cst_32 = arith.constant dense<0.000000e+00> : vector<8x128xf32>
    %174 = tpu.matmul %156, %20, %cst_32 {dimension_numbers = #tpu.dot_dimension_numbers<[1], [0], [0], [1], [0, 0, 1, 1], [], []>} : vector<8x32xf32>, vector<32x128xf32>, vector<8x128xf32> -> vector<8x128xf32>
    %175 = arith.addf %173, %174 : vector<8x128xf32>
    %176 = arith.addf %175, %23 : vector<8x128xf32>
    %177 = arith.mulf %176, %8 : vector<8x128xf32>
    %178 = math.tanh %177 : vector<8x128xf32>
    %179 = arith.mulf %178, %8 : vector<8x128xf32>
    %180 = arith.addf %179, %11 : vector<8x128xf32>
    %181 = vector.extract_strided_slice %180 {offsets = [0, 0], sizes = [8, 32], strides = [1, 1]} : vector<8x128xf32> to vector<8x32xf32>
    %182 = vector.extract_strided_slice %180 {offsets = [0, 32], sizes = [8, 32], strides = [1, 1]} : vector<8x128xf32> to vector<8x32xf32>
    %183 = vector.extract_strided_slice %180 {offsets = [0, 64], sizes = [8, 32], strides = [1, 1]} : vector<8x128xf32> to vector<8x32xf32>
    %184 = vector.extract_strided_slice %180 {offsets = [0, 96], sizes = [8, 32], strides = [1, 1]} : vector<8x128xf32> to vector<8x32xf32>
    %185 = arith.mulf %182, %154 : vector<8x32xf32>
    %186 = arith.mulf %181, %183 : vector<8x32xf32>
    %187 = arith.addf %185, %186 : vector<8x32xf32>
    %188 = math.tanh %187 : vector<8x32xf32>
    %189 = arith.mulf %184, %188 : vector<8x32xf32>
    %190 = vector.extract_strided_slice %17 {offsets = [40, 0], sizes = [8, 128], strides = [1, 1]} : vector<64x128xf32> to vector<8x128xf32>
    %cst_33 = arith.constant dense<0.000000e+00> : vector<8x128xf32>
    %191 = tpu.matmul %172, %18, %cst_33 {dimension_numbers = #tpu.dot_dimension_numbers<[1], [0], [0], [1], [0, 0, 1, 1], [], []>} : vector<8x32xf32>, vector<32x128xf32>, vector<8x128xf32> -> vector<8x128xf32>
    %192 = arith.addf %190, %191 : vector<8x128xf32>
    %193 = arith.mulf %192, %8 : vector<8x128xf32>
    %194 = math.tanh %193 : vector<8x128xf32>
    %195 = arith.mulf %194, %8 : vector<8x128xf32>
    %196 = arith.addf %195, %11 : vector<8x128xf32>
    %197 = vector.extract_strided_slice %196 {offsets = [0, 0], sizes = [8, 32], strides = [1, 1]} : vector<8x128xf32> to vector<8x32xf32>
    %198 = vector.extract_strided_slice %196 {offsets = [0, 32], sizes = [8, 32], strides = [1, 1]} : vector<8x128xf32> to vector<8x32xf32>
    %199 = vector.extract_strided_slice %196 {offsets = [0, 64], sizes = [8, 32], strides = [1, 1]} : vector<8x128xf32> to vector<8x32xf32>
    %200 = vector.extract_strided_slice %196 {offsets = [0, 96], sizes = [8, 32], strides = [1, 1]} : vector<8x128xf32> to vector<8x32xf32>
    %201 = arith.mulf %198, %170 : vector<8x32xf32>
    %202 = arith.mulf %197, %199 : vector<8x32xf32>
    %203 = arith.addf %201, %202 : vector<8x32xf32>
    %204 = math.tanh %203 : vector<8x32xf32>
    %205 = arith.mulf %200, %204 : vector<8x32xf32>
    %cst_34 = arith.constant dense<0.000000e+00> : vector<8x128xf32>
    %206 = tpu.matmul %205, %19, %cst_34 {dimension_numbers = #tpu.dot_dimension_numbers<[1], [0], [0], [1], [0, 0, 1, 1], [], []>} : vector<8x32xf32>, vector<32x128xf32>, vector<8x128xf32> -> vector<8x128xf32>
    %cst_35 = arith.constant dense<0.000000e+00> : vector<8x128xf32>
    %207 = tpu.matmul %189, %20, %cst_35 {dimension_numbers = #tpu.dot_dimension_numbers<[1], [0], [0], [1], [0, 0, 1, 1], [], []>} : vector<8x32xf32>, vector<32x128xf32>, vector<8x128xf32> -> vector<8x128xf32>
    %208 = arith.addf %206, %207 : vector<8x128xf32>
    %209 = arith.addf %208, %23 : vector<8x128xf32>
    %210 = arith.mulf %209, %8 : vector<8x128xf32>
    %211 = math.tanh %210 : vector<8x128xf32>
    %212 = arith.mulf %211, %8 : vector<8x128xf32>
    %213 = arith.addf %212, %11 : vector<8x128xf32>
    %214 = vector.extract_strided_slice %213 {offsets = [0, 0], sizes = [8, 32], strides = [1, 1]} : vector<8x128xf32> to vector<8x32xf32>
    %215 = vector.extract_strided_slice %213 {offsets = [0, 32], sizes = [8, 32], strides = [1, 1]} : vector<8x128xf32> to vector<8x32xf32>
    %216 = vector.extract_strided_slice %213 {offsets = [0, 64], sizes = [8, 32], strides = [1, 1]} : vector<8x128xf32> to vector<8x32xf32>
    %217 = vector.extract_strided_slice %213 {offsets = [0, 96], sizes = [8, 32], strides = [1, 1]} : vector<8x128xf32> to vector<8x32xf32>
    %218 = arith.mulf %215, %187 : vector<8x32xf32>
    %219 = arith.mulf %214, %216 : vector<8x32xf32>
    %220 = arith.addf %218, %219 : vector<8x32xf32>
    %221 = math.tanh %220 : vector<8x32xf32>
    %222 = arith.mulf %217, %221 : vector<8x32xf32>
    %223 = vector.extract_strided_slice %17 {offsets = [48, 0], sizes = [8, 128], strides = [1, 1]} : vector<64x128xf32> to vector<8x128xf32>
    %cst_36 = arith.constant dense<0.000000e+00> : vector<8x128xf32>
    %224 = tpu.matmul %205, %18, %cst_36 {dimension_numbers = #tpu.dot_dimension_numbers<[1], [0], [0], [1], [0, 0, 1, 1], [], []>} : vector<8x32xf32>, vector<32x128xf32>, vector<8x128xf32> -> vector<8x128xf32>
    %225 = arith.addf %223, %224 : vector<8x128xf32>
    %226 = arith.mulf %225, %8 : vector<8x128xf32>
    %227 = math.tanh %226 : vector<8x128xf32>
    %228 = arith.mulf %227, %8 : vector<8x128xf32>
    %229 = arith.addf %228, %11 : vector<8x128xf32>
    %230 = vector.extract_strided_slice %229 {offsets = [0, 0], sizes = [8, 32], strides = [1, 1]} : vector<8x128xf32> to vector<8x32xf32>
    %231 = vector.extract_strided_slice %229 {offsets = [0, 32], sizes = [8, 32], strides = [1, 1]} : vector<8x128xf32> to vector<8x32xf32>
    %232 = vector.extract_strided_slice %229 {offsets = [0, 64], sizes = [8, 32], strides = [1, 1]} : vector<8x128xf32> to vector<8x32xf32>
    %233 = vector.extract_strided_slice %229 {offsets = [0, 96], sizes = [8, 32], strides = [1, 1]} : vector<8x128xf32> to vector<8x32xf32>
    %234 = arith.mulf %231, %203 : vector<8x32xf32>
    %235 = arith.mulf %230, %232 : vector<8x32xf32>
    %236 = arith.addf %234, %235 : vector<8x32xf32>
    %237 = math.tanh %236 : vector<8x32xf32>
    %238 = arith.mulf %233, %237 : vector<8x32xf32>
    %cst_37 = arith.constant dense<0.000000e+00> : vector<8x128xf32>
    %239 = tpu.matmul %238, %19, %cst_37 {dimension_numbers = #tpu.dot_dimension_numbers<[1], [0], [0], [1], [0, 0, 1, 1], [], []>} : vector<8x32xf32>, vector<32x128xf32>, vector<8x128xf32> -> vector<8x128xf32>
    %cst_38 = arith.constant dense<0.000000e+00> : vector<8x128xf32>
    %240 = tpu.matmul %222, %20, %cst_38 {dimension_numbers = #tpu.dot_dimension_numbers<[1], [0], [0], [1], [0, 0, 1, 1], [], []>} : vector<8x32xf32>, vector<32x128xf32>, vector<8x128xf32> -> vector<8x128xf32>
    %241 = arith.addf %239, %240 : vector<8x128xf32>
    %242 = arith.addf %241, %23 : vector<8x128xf32>
    %243 = arith.mulf %242, %8 : vector<8x128xf32>
    %244 = math.tanh %243 : vector<8x128xf32>
    %245 = arith.mulf %244, %8 : vector<8x128xf32>
    %246 = arith.addf %245, %11 : vector<8x128xf32>
    %247 = vector.extract_strided_slice %246 {offsets = [0, 0], sizes = [8, 32], strides = [1, 1]} : vector<8x128xf32> to vector<8x32xf32>
    %248 = vector.extract_strided_slice %246 {offsets = [0, 32], sizes = [8, 32], strides = [1, 1]} : vector<8x128xf32> to vector<8x32xf32>
    %249 = vector.extract_strided_slice %246 {offsets = [0, 64], sizes = [8, 32], strides = [1, 1]} : vector<8x128xf32> to vector<8x32xf32>
    %250 = vector.extract_strided_slice %246 {offsets = [0, 96], sizes = [8, 32], strides = [1, 1]} : vector<8x128xf32> to vector<8x32xf32>
    %251 = arith.mulf %248, %220 : vector<8x32xf32>
    %252 = arith.mulf %247, %249 : vector<8x32xf32>
    %253 = arith.addf %251, %252 : vector<8x32xf32>
    %254 = math.tanh %253 : vector<8x32xf32>
    %255 = arith.mulf %250, %254 : vector<8x32xf32>
    %256 = vector.extract_strided_slice %17 {offsets = [56, 0], sizes = [8, 128], strides = [1, 1]} : vector<64x128xf32> to vector<8x128xf32>
    %cst_39 = arith.constant dense<0.000000e+00> : vector<8x128xf32>
    %257 = tpu.matmul %238, %18, %cst_39 {dimension_numbers = #tpu.dot_dimension_numbers<[1], [0], [0], [1], [0, 0, 1, 1], [], []>} : vector<8x32xf32>, vector<32x128xf32>, vector<8x128xf32> -> vector<8x128xf32>
    %258 = arith.addf %256, %257 : vector<8x128xf32>
    %259 = arith.mulf %258, %8 : vector<8x128xf32>
    %260 = math.tanh %259 : vector<8x128xf32>
    %261 = arith.mulf %260, %8 : vector<8x128xf32>
    %262 = arith.addf %261, %11 : vector<8x128xf32>
    %263 = vector.extract_strided_slice %262 {offsets = [0, 0], sizes = [8, 32], strides = [1, 1]} : vector<8x128xf32> to vector<8x32xf32>
    %264 = vector.extract_strided_slice %262 {offsets = [0, 32], sizes = [8, 32], strides = [1, 1]} : vector<8x128xf32> to vector<8x32xf32>
    %265 = vector.extract_strided_slice %262 {offsets = [0, 64], sizes = [8, 32], strides = [1, 1]} : vector<8x128xf32> to vector<8x32xf32>
    %266 = vector.extract_strided_slice %262 {offsets = [0, 96], sizes = [8, 32], strides = [1, 1]} : vector<8x128xf32> to vector<8x32xf32>
    %267 = arith.mulf %264, %236 : vector<8x32xf32>
    %268 = arith.mulf %263, %265 : vector<8x32xf32>
    %269 = arith.addf %267, %268 : vector<8x32xf32>
    %270 = math.tanh %269 : vector<8x32xf32>
    %271 = arith.mulf %266, %270 : vector<8x32xf32>
    %cst_40 = arith.constant dense<0.000000e+00> : vector<8x128xf32>
    %272 = tpu.matmul %271, %19, %cst_40 {dimension_numbers = #tpu.dot_dimension_numbers<[1], [0], [0], [1], [0, 0, 1, 1], [], []>} : vector<8x32xf32>, vector<32x128xf32>, vector<8x128xf32> -> vector<8x128xf32>
    %cst_41 = arith.constant dense<0.000000e+00> : vector<8x128xf32>
    %273 = tpu.matmul %255, %20, %cst_41 {dimension_numbers = #tpu.dot_dimension_numbers<[1], [0], [0], [1], [0, 0, 1, 1], [], []>} : vector<8x32xf32>, vector<32x128xf32>, vector<8x128xf32> -> vector<8x128xf32>
    %274 = arith.addf %272, %273 : vector<8x128xf32>
    %275 = arith.addf %274, %23 : vector<8x128xf32>
    %276 = arith.mulf %275, %8 : vector<8x128xf32>
    %277 = math.tanh %276 : vector<8x128xf32>
    %278 = arith.mulf %277, %8 : vector<8x128xf32>
    %279 = arith.addf %278, %11 : vector<8x128xf32>
    %280 = vector.extract_strided_slice %279 {offsets = [0, 0], sizes = [8, 32], strides = [1, 1]} : vector<8x128xf32> to vector<8x32xf32>
    %281 = vector.extract_strided_slice %279 {offsets = [0, 32], sizes = [8, 32], strides = [1, 1]} : vector<8x128xf32> to vector<8x32xf32>
    %282 = vector.extract_strided_slice %279 {offsets = [0, 64], sizes = [8, 32], strides = [1, 1]} : vector<8x128xf32> to vector<8x32xf32>
    %283 = vector.extract_strided_slice %279 {offsets = [0, 96], sizes = [8, 32], strides = [1, 1]} : vector<8x128xf32> to vector<8x32xf32>
    %284 = arith.mulf %281, %253 : vector<8x32xf32>
    %285 = arith.mulf %280, %282 : vector<8x32xf32>
    %286 = arith.addf %284, %285 : vector<8x32xf32>
    %287 = math.tanh %286 : vector<8x32xf32>
    %288 = arith.mulf %283, %287 : vector<8x32xf32>
    %c0_42 = arith.constant 0 : index
    %c0_43 = arith.constant 0 : index
    %289 = vector.load %arg8[%c0_42, %c0_43] : memref<32x128xf32, #tpu.memory_space<vmem>>, vector<32x128xf32>
    %c0_44 = arith.constant 0 : index
    %c0_45 = arith.constant 0 : index
    %290 = vector.load %arg10[%c0_44, %c0_45] : memref<32x128xf32, #tpu.memory_space<vmem>>, vector<32x128xf32>
    %c0_46 = arith.constant 0 : index
    %c0_47 = arith.constant 0 : index
    %291 = vector.load %arg11[%c0_46, %c0_47] : memref<32x128xf32, #tpu.memory_space<vmem>>, vector<32x128xf32>
    %c0_48 = arith.constant 0 : index
    %c0_49 = arith.constant 0 : index
    %292 = vector.load %arg12[%c0_48, %c0_49] : memref<1x128xf32, #tpu.memory_space<vmem>>, vector<1x128xf32>
    %293 = vector.shape_cast %292 : vector<1x128xf32> to vector<1x128xf32>
    %294 = vector.broadcast %293 : vector<1x128xf32> to vector<8x128xf32>
    %c0_50 = arith.constant 0 : index
    %c0_51 = arith.constant 0 : index
    %295 = vector.load %arg13[%c0_50, %c0_51] : memref<32x256xf32, #tpu.memory_space<vmem>>, vector<32x256xf32>
    %c0_52 = arith.constant 0 : index
    %c0_53 = arith.constant 0 : index
    %296 = vector.load %arg14[%c0_52, %c0_53] : memref<1x256xf32, #tpu.memory_space<vmem>>, vector<1x256xf32>
    %297 = vector.shape_cast %296 : vector<1x256xf32> to vector<1x256xf32>
    %298 = vector.broadcast %297 : vector<1x256xf32> to vector<8x256xf32>
    %c56 = arith.constant 56 : index
    %c0_54 = arith.constant 0 : index
    %299 = vector.load %arg0[%c56, %c0_54] : memref<64x128xf32, #tpu.memory_space<vmem>>, vector<8x128xf32>
    %c0_55 = arith.constant 0 : index
    %c0_56 = arith.constant 0 : index
    %300 = vector.load %arg7[%c0_55, %c0_56] : memref<128x128xf32, #tpu.memory_space<vmem>>, vector<128x128xf32>
    %cst_57 = arith.constant dense<0.000000e+00> : vector<8x128xf32>
    %301 = tpu.matmul %299, %300, %cst_57 {dimension_numbers = #tpu.dot_dimension_numbers<[1], [0], [0], [1], [0, 0, 1, 1], [], []>} : vector<8x128xf32>, vector<128x128xf32>, vector<8x128xf32> -> vector<8x128xf32>
    %c0_58 = arith.constant 0 : index
    %c0_59 = arith.constant 0 : index
    %302 = vector.load %arg9[%c0_58, %c0_59] : memref<1x128xf32, #tpu.memory_space<vmem>>, vector<1x128xf32>
    %303 = vector.shape_cast %302 : vector<1x128xf32> to vector<1x128xf32>
    %304 = vector.broadcast %303 : vector<1x128xf32> to vector<8x128xf32>
    %305 = arith.addf %301, %304 : vector<8x128xf32>
    %cst_60 = arith.constant dense<0.000000e+00> : vector<8x128xf32>
    %306 = tpu.matmul %271, %289, %cst_60 {dimension_numbers = #tpu.dot_dimension_numbers<[1], [0], [0], [1], [0, 0, 1, 1], [], []>} : vector<8x32xf32>, vector<32x128xf32>, vector<8x128xf32> -> vector<8x128xf32>
    %307 = arith.addf %305, %306 : vector<8x128xf32>
    %308 = arith.mulf %307, %8 : vector<8x128xf32>
    %309 = math.tanh %308 : vector<8x128xf32>
    %310 = arith.mulf %309, %8 : vector<8x128xf32>
    %311 = arith.addf %310, %11 : vector<8x128xf32>
    %312 = vector.extract_strided_slice %311 {offsets = [0, 0], sizes = [8, 32], strides = [1, 1]} : vector<8x128xf32> to vector<8x32xf32>
    %313 = vector.extract_strided_slice %311 {offsets = [0, 32], sizes = [8, 32], strides = [1, 1]} : vector<8x128xf32> to vector<8x32xf32>
    %314 = vector.extract_strided_slice %311 {offsets = [0, 64], sizes = [8, 32], strides = [1, 1]} : vector<8x128xf32> to vector<8x32xf32>
    %315 = vector.extract_strided_slice %311 {offsets = [0, 96], sizes = [8, 32], strides = [1, 1]} : vector<8x128xf32> to vector<8x32xf32>
    %316 = arith.mulf %313, %269 : vector<8x32xf32>
    %317 = arith.mulf %312, %314 : vector<8x32xf32>
    %318 = arith.addf %316, %317 : vector<8x32xf32>
    %319 = math.tanh %318 : vector<8x32xf32>
    %320 = arith.mulf %315, %319 : vector<8x32xf32>
    %cst_61 = arith.constant dense<0.000000e+00> : vector<8x128xf32>
    %321 = tpu.matmul %320, %290, %cst_61 {dimension_numbers = #tpu.dot_dimension_numbers<[1], [0], [0], [1], [0, 0, 1, 1], [], []>} : vector<8x32xf32>, vector<32x128xf32>, vector<8x128xf32> -> vector<8x128xf32>
    %cst_62 = arith.constant dense<0.000000e+00> : vector<8x128xf32>
    %322 = tpu.matmul %288, %291, %cst_62 {dimension_numbers = #tpu.dot_dimension_numbers<[1], [0], [0], [1], [0, 0, 1, 1], [], []>} : vector<8x32xf32>, vector<32x128xf32>, vector<8x128xf32> -> vector<8x128xf32>
    %323 = arith.addf %321, %322 : vector<8x128xf32>
    %324 = arith.addf %323, %294 : vector<8x128xf32>
    %325 = arith.mulf %324, %8 : vector<8x128xf32>
    %326 = math.tanh %325 : vector<8x128xf32>
    %327 = arith.mulf %326, %8 : vector<8x128xf32>
    %328 = arith.addf %327, %11 : vector<8x128xf32>
    %329 = vector.extract_strided_slice %328 {offsets = [0, 0], sizes = [8, 32], strides = [1, 1]} : vector<8x128xf32> to vector<8x32xf32>
    %330 = vector.extract_strided_slice %328 {offsets = [0, 32], sizes = [8, 32], strides = [1, 1]} : vector<8x128xf32> to vector<8x32xf32>
    %331 = vector.extract_strided_slice %328 {offsets = [0, 64], sizes = [8, 32], strides = [1, 1]} : vector<8x128xf32> to vector<8x32xf32>
    %332 = vector.extract_strided_slice %328 {offsets = [0, 96], sizes = [8, 32], strides = [1, 1]} : vector<8x128xf32> to vector<8x32xf32>
    %333 = arith.mulf %330, %286 : vector<8x32xf32>
    %334 = arith.mulf %329, %331 : vector<8x32xf32>
    %335 = arith.addf %333, %334 : vector<8x32xf32>
    %336 = math.tanh %335 : vector<8x32xf32>
    %337 = arith.mulf %332, %336 : vector<8x32xf32>
    %cst_63 = arith.constant dense<0.000000e+00> : vector<8x256xf32>
    %338 = tpu.matmul %337, %295, %cst_63 {dimension_numbers = #tpu.dot_dimension_numbers<[1], [0], [0], [1], [0, 0, 1, 1], [], []>} : vector<8x32xf32>, vector<32x256xf32>, vector<8x256xf32> -> vector<8x256xf32>
    %339 = arith.addf %338, %298 : vector<8x256xf32>
    %340 = vector.extract_strided_slice %339 {offsets = [0, 0], sizes = [8, 128], strides = [1, 1]} : vector<8x256xf32> to vector<8x128xf32>
    %c0_64 = arith.constant 0 : index
    %c0_65 = arith.constant 0 : index
    %c0_66 = arith.constant 0 : index
    %341 = vector.load %arg15[%c0_64, %c0_65, %c0_66] : memref<10x8x128xf32, #tpu.memory_space<vmem>>, vector<1x8x128xf32>
    %342 = vector.shape_cast %341 : vector<1x8x128xf32> to vector<8x128xf32>
    %343 = vector.shape_cast %340 : vector<8x128xf32> to vector<1x8x128xf32>
    tpu.vector_store %arg15[%c0_64, %c0_65, %c0_66], %343 {strides = array<i32>} : memref<10x8x128xf32, #tpu.memory_space<vmem>>, vector<1x8x128xf32>,
    %344 = vector.extract_strided_slice %339 {offsets = [0, 128], sizes = [8, 128], strides = [1, 1]} : vector<8x256xf32> to vector<8x128xf32>
    %cst_67 = arith.constant dense<0.000000e+00> : vector<8x128xf32>
    %345 = tpu.matmul %320, %289, %cst_67 {dimension_numbers = #tpu.dot_dimension_numbers<[1], [0], [0], [1], [0, 0, 1, 1], [], []>} : vector<8x32xf32>, vector<32x128xf32>, vector<8x128xf32> -> vector<8x128xf32>
    %346 = arith.addf %344, %345 : vector<8x128xf32>
    %347 = arith.mulf %346, %8 : vector<8x128xf32>
    %348 = math.tanh %347 : vector<8x128xf32>
    %349 = arith.mulf %348, %8 : vector<8x128xf32>
    %350 = arith.addf %349, %11 : vector<8x128xf32>
    %351 = vector.extract_strided_slice %350 {offsets = [0, 0], sizes = [8, 32], strides = [1, 1]} : vector<8x128xf32> to vector<8x32xf32>
    %352 = vector.extract_strided_slice %350 {offsets = [0, 32], sizes = [8, 32], strides = [1, 1]} : vector<8x128xf32> to vector<8x32xf32>
    %353 = vector.extract_strided_slice %350 {offsets = [0, 64], sizes = [8, 32], strides = [1, 1]} : vector<8x128xf32> to vector<8x32xf32>
    %354 = vector.extract_strided_slice %350 {offsets = [0, 96], sizes = [8, 32], strides = [1, 1]} : vector<8x128xf32> to vector<8x32xf32>
    %355 = arith.mulf %352, %318 : vector<8x32xf32>
    %356 = arith.mulf %351, %353 : vector<8x32xf32>
    %357 = arith.addf %355, %356 : vector<8x32xf32>
    %358 = math.tanh %357 : vector<8x32xf32>
    %359 = arith.mulf %354, %358 : vector<8x32xf32>
    %cst_68 = arith.constant dense<0.000000e+00> : vector<8x128xf32>
    %360 = tpu.matmul %359, %290, %cst_68 {dimension_numbers = #tpu.dot_dimension_numbers<[1], [0], [0], [1], [0, 0, 1, 1], [], []>} : vector<8x32xf32>, vector<32x128xf32>, vector<8x128xf32> -> vector<8x128xf32>
    %cst_69 = arith.constant dense<0.000000e+00> : vector<8x128xf32>
    %361 = tpu.matmul %337, %291, %cst_69 {dimension_numbers = #tpu.dot_dimension_numbers<[1], [0], [0], [1], [0, 0, 1, 1], [], []>} : vector<8x32xf32>, vector<32x128xf32>, vector<8x128xf32> -> vector<8x128xf32>
    %362 = arith.addf %360, %361 : vector<8x128xf32>
    %363 = arith.addf %362, %294 : vector<8x128xf32>
    %364 = arith.mulf %363, %8 : vector<8x128xf32>
    %365 = math.tanh %364 : vector<8x128xf32>
    %366 = arith.mulf %365, %8 : vector<8x128xf32>
    %367 = arith.addf %366, %11 : vector<8x128xf32>
    %368 = vector.extract_strided_slice %367 {offsets = [0, 0], sizes = [8, 32], strides = [1, 1]} : vector<8x128xf32> to vector<8x32xf32>
    %369 = vector.extract_strided_slice %367 {offsets = [0, 32], sizes = [8, 32], strides = [1, 1]} : vector<8x128xf32> to vector<8x32xf32>
    %370 = vector.extract_strided_slice %367 {offsets = [0, 64], sizes = [8, 32], strides = [1, 1]} : vector<8x128xf32> to vector<8x32xf32>
    %371 = vector.extract_strided_slice %367 {offsets = [0, 96], sizes = [8, 32], strides = [1, 1]} : vector<8x128xf32> to vector<8x32xf32>
    %372 = arith.mulf %369, %335 : vector<8x32xf32>
    %373 = arith.mulf %368, %370 : vector<8x32xf32>
    %374 = arith.addf %372, %373 : vector<8x32xf32>
    %375 = math.tanh %374 : vector<8x32xf32>
    %376 = arith.mulf %371, %375 : vector<8x32xf32>
    %cst_70 = arith.constant dense<0.000000e+00> : vector<8x256xf32>
    %377 = tpu.matmul %376, %295, %cst_70 {dimension_numbers = #tpu.dot_dimension_numbers<[1], [0], [0], [1], [0, 0, 1, 1], [], []>} : vector<8x32xf32>, vector<32x256xf32>, vector<8x256xf32> -> vector<8x256xf32>
    %378 = arith.addf %377, %298 : vector<8x256xf32>
    %379 = vector.extract_strided_slice %378 {offsets = [0, 0], sizes = [8, 128], strides = [1, 1]} : vector<8x256xf32> to vector<8x128xf32>
    %c1 = arith.constant 1 : index
    %c0_71 = arith.constant 0 : index
    %c0_72 = arith.constant 0 : index
    %380 = vector.load %arg15[%c1, %c0_71, %c0_72] : memref<10x8x128xf32, #tpu.memory_space<vmem>>, vector<1x8x128xf32>
    %381 = vector.shape_cast %380 : vector<1x8x128xf32> to vector<8x128xf32>
    %382 = vector.shape_cast %379 : vector<8x128xf32> to vector<1x8x128xf32>
    tpu.vector_store %arg15[%c1, %c0_71, %c0_72], %382 {strides = array<i32>} : memref<10x8x128xf32, #tpu.memory_space<vmem>>, vector<1x8x128xf32>,
    %383 = vector.extract_strided_slice %378 {offsets = [0, 128], sizes = [8, 128], strides = [1, 1]} : vector<8x256xf32> to vector<8x128xf32>
    %cst_73 = arith.constant dense<0.000000e+00> : vector<8x128xf32>
    %384 = tpu.matmul %359, %289, %cst_73 {dimension_numbers = #tpu.dot_dimension_numbers<[1], [0], [0], [1], [0, 0, 1, 1], [], []>} : vector<8x32xf32>, vector<32x128xf32>, vector<8x128xf32> -> vector<8x128xf32>
    %385 = arith.addf %383, %384 : vector<8x128xf32>
    %386 = arith.mulf %385, %8 : vector<8x128xf32>
    %387 = math.tanh %386 : vector<8x128xf32>
    %388 = arith.mulf %387, %8 : vector<8x128xf32>
    %389 = arith.addf %388, %11 : vector<8x128xf32>
    %390 = vector.extract_strided_slice %389 {offsets = [0, 0], sizes = [8, 32], strides = [1, 1]} : vector<8x128xf32> to vector<8x32xf32>
    %391 = vector.extract_strided_slice %389 {offsets = [0, 32], sizes = [8, 32], strides = [1, 1]} : vector<8x128xf32> to vector<8x32xf32>
    %392 = vector.extract_strided_slice %389 {offsets = [0, 64], sizes = [8, 32], strides = [1, 1]} : vector<8x128xf32> to vector<8x32xf32>
    %393 = vector.extract_strided_slice %389 {offsets = [0, 96], sizes = [8, 32], strides = [1, 1]} : vector<8x128xf32> to vector<8x32xf32>
    %394 = arith.mulf %391, %357 : vector<8x32xf32>
    %395 = arith.mulf %390, %392 : vector<8x32xf32>
    %396 = arith.addf %394, %395 : vector<8x32xf32>
    %397 = math.tanh %396 : vector<8x32xf32>
    %398 = arith.mulf %393, %397 : vector<8x32xf32>
    %cst_74 = arith.constant dense<0.000000e+00> : vector<8x128xf32>
    %399 = tpu.matmul %398, %290, %cst_74 {dimension_numbers = #tpu.dot_dimension_numbers<[1], [0], [0], [1], [0, 0, 1, 1], [], []>} : vector<8x32xf32>, vector<32x128xf32>, vector<8x128xf32> -> vector<8x128xf32>
    %cst_75 = arith.constant dense<0.000000e+00> : vector<8x128xf32>
    %400 = tpu.matmul %376, %291, %cst_75 {dimension_numbers = #tpu.dot_dimension_numbers<[1], [0], [0], [1], [0, 0, 1, 1], [], []>} : vector<8x32xf32>, vector<32x128xf32>, vector<8x128xf32> -> vector<8x128xf32>
    %401 = arith.addf %399, %400 : vector<8x128xf32>
    %402 = arith.addf %401, %294 : vector<8x128xf32>
    %403 = arith.mulf %402, %8 : vector<8x128xf32>
    %404 = math.tanh %403 : vector<8x128xf32>
    %405 = arith.mulf %404, %8 : vector<8x128xf32>
    %406 = arith.addf %405, %11 : vector<8x128xf32>
    %407 = vector.extract_strided_slice %406 {offsets = [0, 0], sizes = [8, 32], strides = [1, 1]} : vector<8x128xf32> to vector<8x32xf32>
    %408 = vector.extract_strided_slice %406 {offsets = [0, 32], sizes = [8, 32], strides = [1, 1]} : vector<8x128xf32> to vector<8x32xf32>
    %409 = vector.extract_strided_slice %406 {offsets = [0, 64], sizes = [8, 32], strides = [1, 1]} : vector<8x128xf32> to vector<8x32xf32>
    %410 = vector.extract_strided_slice %406 {offsets = [0, 96], sizes = [8, 32], strides = [1, 1]} : vector<8x128xf32> to vector<8x32xf32>
    %411 = arith.mulf %408, %374 : vector<8x32xf32>
    %412 = arith.mulf %407, %409 : vector<8x32xf32>
    %413 = arith.addf %411, %412 : vector<8x32xf32>
    %414 = math.tanh %413 : vector<8x32xf32>
    %415 = arith.mulf %410, %414 : vector<8x32xf32>
    %cst_76 = arith.constant dense<0.000000e+00> : vector<8x256xf32>
    %416 = tpu.matmul %415, %295, %cst_76 {dimension_numbers = #tpu.dot_dimension_numbers<[1], [0], [0], [1], [0, 0, 1, 1], [], []>} : vector<8x32xf32>, vector<32x256xf32>, vector<8x256xf32> -> vector<8x256xf32>
    %417 = arith.addf %416, %298 : vector<8x256xf32>
    %418 = vector.extract_strided_slice %417 {offsets = [0, 0], sizes = [8, 128], strides = [1, 1]} : vector<8x256xf32> to vector<8x128xf32>
    %c2 = arith.constant 2 : index
    %c0_77 = arith.constant 0 : index
    %c0_78 = arith.constant 0 : index
    %419 = vector.load %arg15[%c2, %c0_77, %c0_78] : memref<10x8x128xf32, #tpu.memory_space<vmem>>, vector<1x8x128xf32>
    %420 = vector.shape_cast %419 : vector<1x8x128xf32> to vector<8x128xf32>
    %421 = vector.shape_cast %418 : vector<8x128xf32> to vector<1x8x128xf32>
    tpu.vector_store %arg15[%c2, %c0_77, %c0_78], %421 {strides = array<i32>} : memref<10x8x128xf32, #tpu.memory_space<vmem>>, vector<1x8x128xf32>,
    %422 = vector.extract_strided_slice %417 {offsets = [0, 128], sizes = [8, 128], strides = [1, 1]} : vector<8x256xf32> to vector<8x128xf32>
    %cst_79 = arith.constant dense<0.000000e+00> : vector<8x128xf32>
    %423 = tpu.matmul %398, %289, %cst_79 {dimension_numbers = #tpu.dot_dimension_numbers<[1], [0], [0], [1], [0, 0, 1, 1], [], []>} : vector<8x32xf32>, vector<32x128xf32>, vector<8x128xf32> -> vector<8x128xf32>
    %424 = arith.addf %422, %423 : vector<8x128xf32>
    %425 = arith.mulf %424, %8 : vector<8x128xf32>
    %426 = math.tanh %425 : vector<8x128xf32>
    %427 = arith.mulf %426, %8 : vector<8x128xf32>
    %428 = arith.addf %427, %11 : vector<8x128xf32>
    %429 = vector.extract_strided_slice %428 {offsets = [0, 0], sizes = [8, 32], strides = [1, 1]} : vector<8x128xf32> to vector<8x32xf32>
    %430 = vector.extract_strided_slice %428 {offsets = [0, 32], sizes = [8, 32], strides = [1, 1]} : vector<8x128xf32> to vector<8x32xf32>
    %431 = vector.extract_strided_slice %428 {offsets = [0, 64], sizes = [8, 32], strides = [1, 1]} : vector<8x128xf32> to vector<8x32xf32>
    %432 = vector.extract_strided_slice %428 {offsets = [0, 96], sizes = [8, 32], strides = [1, 1]} : vector<8x128xf32> to vector<8x32xf32>
    %433 = arith.mulf %430, %396 : vector<8x32xf32>
    %434 = arith.mulf %429, %431 : vector<8x32xf32>
    %435 = arith.addf %433, %434 : vector<8x32xf32>
    %436 = math.tanh %435 : vector<8x32xf32>
    %437 = arith.mulf %432, %436 : vector<8x32xf32>
    %cst_80 = arith.constant dense<0.000000e+00> : vector<8x128xf32>
    %438 = tpu.matmul %437, %290, %cst_80 {dimension_numbers = #tpu.dot_dimension_numbers<[1], [0], [0], [1], [0, 0, 1, 1], [], []>} : vector<8x32xf32>, vector<32x128xf32>, vector<8x128xf32> -> vector<8x128xf32>
    %cst_81 = arith.constant dense<0.000000e+00> : vector<8x128xf32>
    %439 = tpu.matmul %415, %291, %cst_81 {dimension_numbers = #tpu.dot_dimension_numbers<[1], [0], [0], [1], [0, 0, 1, 1], [], []>} : vector<8x32xf32>, vector<32x128xf32>, vector<8x128xf32> -> vector<8x128xf32>
    %440 = arith.addf %438, %439 : vector<8x128xf32>
    %441 = arith.addf %440, %294 : vector<8x128xf32>
    %442 = arith.mulf %441, %8 : vector<8x128xf32>
    %443 = math.tanh %442 : vector<8x128xf32>
    %444 = arith.mulf %443, %8 : vector<8x128xf32>
    %445 = arith.addf %444, %11 : vector<8x128xf32>
    %446 = vector.extract_strided_slice %445 {offsets = [0, 0], sizes = [8, 32], strides = [1, 1]} : vector<8x128xf32> to vector<8x32xf32>
    %447 = vector.extract_strided_slice %445 {offsets = [0, 32], sizes = [8, 32], strides = [1, 1]} : vector<8x128xf32> to vector<8x32xf32>
    %448 = vector.extract_strided_slice %445 {offsets = [0, 64], sizes = [8, 32], strides = [1, 1]} : vector<8x128xf32> to vector<8x32xf32>
    %449 = vector.extract_strided_slice %445 {offsets = [0, 96], sizes = [8, 32], strides = [1, 1]} : vector<8x128xf32> to vector<8x32xf32>
    %450 = arith.mulf %447, %413 : vector<8x32xf32>
    %451 = arith.mulf %446, %448 : vector<8x32xf32>
    %452 = arith.addf %450, %451 : vector<8x32xf32>
    %453 = math.tanh %452 : vector<8x32xf32>
    %454 = arith.mulf %449, %453 : vector<8x32xf32>
    %cst_82 = arith.constant dense<0.000000e+00> : vector<8x256xf32>
    %455 = tpu.matmul %454, %295, %cst_82 {dimension_numbers = #tpu.dot_dimension_numbers<[1], [0], [0], [1], [0, 0, 1, 1], [], []>} : vector<8x32xf32>, vector<32x256xf32>, vector<8x256xf32> -> vector<8x256xf32>
    %456 = arith.addf %455, %298 : vector<8x256xf32>
    %457 = vector.extract_strided_slice %456 {offsets = [0, 0], sizes = [8, 128], strides = [1, 1]} : vector<8x256xf32> to vector<8x128xf32>
    %c3 = arith.constant 3 : index
    %c0_83 = arith.constant 0 : index
    %c0_84 = arith.constant 0 : index
    %458 = vector.load %arg15[%c3, %c0_83, %c0_84] : memref<10x8x128xf32, #tpu.memory_space<vmem>>, vector<1x8x128xf32>
    %459 = vector.shape_cast %458 : vector<1x8x128xf32> to vector<8x128xf32>
    %460 = vector.shape_cast %457 : vector<8x128xf32> to vector<1x8x128xf32>
    tpu.vector_store %arg15[%c3, %c0_83, %c0_84], %460 {strides = array<i32>} : memref<10x8x128xf32, #tpu.memory_space<vmem>>, vector<1x8x128xf32>,
    %461 = vector.extract_strided_slice %456 {offsets = [0, 128], sizes = [8, 128], strides = [1, 1]} : vector<8x256xf32> to vector<8x128xf32>
    %cst_85 = arith.constant dense<0.000000e+00> : vector<8x128xf32>
    %462 = tpu.matmul %437, %289, %cst_85 {dimension_numbers = #tpu.dot_dimension_numbers<[1], [0], [0], [1], [0, 0, 1, 1], [], []>} : vector<8x32xf32>, vector<32x128xf32>, vector<8x128xf32> -> vector<8x128xf32>
    %463 = arith.addf %461, %462 : vector<8x128xf32>
    %464 = arith.mulf %463, %8 : vector<8x128xf32>
    %465 = math.tanh %464 : vector<8x128xf32>
    %466 = arith.mulf %465, %8 : vector<8x128xf32>
    %467 = arith.addf %466, %11 : vector<8x128xf32>
    %468 = vector.extract_strided_slice %467 {offsets = [0, 0], sizes = [8, 32], strides = [1, 1]} : vector<8x128xf32> to vector<8x32xf32>
    %469 = vector.extract_strided_slice %467 {offsets = [0, 32], sizes = [8, 32], strides = [1, 1]} : vector<8x128xf32> to vector<8x32xf32>
    %470 = vector.extract_strided_slice %467 {offsets = [0, 64], sizes = [8, 32], strides = [1, 1]} : vector<8x128xf32> to vector<8x32xf32>
    %471 = vector.extract_strided_slice %467 {offsets = [0, 96], sizes = [8, 32], strides = [1, 1]} : vector<8x128xf32> to vector<8x32xf32>
    %472 = arith.mulf %469, %435 : vector<8x32xf32>
    %473 = arith.mulf %468, %470 : vector<8x32xf32>
    %474 = arith.addf %472, %473 : vector<8x32xf32>
    %475 = math.tanh %474 : vector<8x32xf32>
    %476 = arith.mulf %471, %475 : vector<8x32xf32>
    %cst_86 = arith.constant dense<0.000000e+00> : vector<8x128xf32>
    %477 = tpu.matmul %476, %290, %cst_86 {dimension_numbers = #tpu.dot_dimension_numbers<[1], [0], [0], [1], [0, 0, 1, 1], [], []>} : vector<8x32xf32>, vector<32x128xf32>, vector<8x128xf32> -> vector<8x128xf32>
    %cst_87 = arith.constant dense<0.000000e+00> : vector<8x128xf32>
    %478 = tpu.matmul %454, %291, %cst_87 {dimension_numbers = #tpu.dot_dimension_numbers<[1], [0], [0], [1], [0, 0, 1, 1], [], []>} : vector<8x32xf32>, vector<32x128xf32>, vector<8x128xf32> -> vector<8x128xf32>
    %479 = arith.addf %477, %478 : vector<8x128xf32>
    %480 = arith.addf %479, %294 : vector<8x128xf32>
    %481 = arith.mulf %480, %8 : vector<8x128xf32>
    %482 = math.tanh %481 : vector<8x128xf32>
    %483 = arith.mulf %482, %8 : vector<8x128xf32>
    %484 = arith.addf %483, %11 : vector<8x128xf32>
    %485 = vector.extract_strided_slice %484 {offsets = [0, 0], sizes = [8, 32], strides = [1, 1]} : vector<8x128xf32> to vector<8x32xf32>
    %486 = vector.extract_strided_slice %484 {offsets = [0, 32], sizes = [8, 32], strides = [1, 1]} : vector<8x128xf32> to vector<8x32xf32>
    %487 = vector.extract_strided_slice %484 {offsets = [0, 64], sizes = [8, 32], strides = [1, 1]} : vector<8x128xf32> to vector<8x32xf32>
    %488 = vector.extract_strided_slice %484 {offsets = [0, 96], sizes = [8, 32], strides = [1, 1]} : vector<8x128xf32> to vector<8x32xf32>
    %489 = arith.mulf %486, %452 : vector<8x32xf32>
    %490 = arith.mulf %485, %487 : vector<8x32xf32>
    %491 = arith.addf %489, %490 : vector<8x32xf32>
    %492 = math.tanh %491 : vector<8x32xf32>
    %493 = arith.mulf %488, %492 : vector<8x32xf32>
    %cst_88 = arith.constant dense<0.000000e+00> : vector<8x256xf32>
    %494 = tpu.matmul %493, %295, %cst_88 {dimension_numbers = #tpu.dot_dimension_numbers<[1], [0], [0], [1], [0, 0, 1, 1], [], []>} : vector<8x32xf32>, vector<32x256xf32>, vector<8x256xf32> -> vector<8x256xf32>
    %495 = arith.addf %494, %298 : vector<8x256xf32>
    %496 = vector.extract_strided_slice %495 {offsets = [0, 0], sizes = [8, 128], strides = [1, 1]} : vector<8x256xf32> to vector<8x128xf32>
    %c4 = arith.constant 4 : index
    %c0_89 = arith.constant 0 : index
    %c0_90 = arith.constant 0 : index
    %497 = vector.load %arg15[%c4, %c0_89, %c0_90] : memref<10x8x128xf32, #tpu.memory_space<vmem>>, vector<1x8x128xf32>
    %498 = vector.shape_cast %497 : vector<1x8x128xf32> to vector<8x128xf32>
    %499 = vector.shape_cast %496 : vector<8x128xf32> to vector<1x8x128xf32>
    tpu.vector_store %arg15[%c4, %c0_89, %c0_90], %499 {strides = array<i32>} : memref<10x8x128xf32, #tpu.memory_space<vmem>>, vector<1x8x128xf32>,
    %500 = vector.extract_strided_slice %495 {offsets = [0, 128], sizes = [8, 128], strides = [1, 1]} : vector<8x256xf32> to vector<8x128xf32>
    %cst_91 = arith.constant dense<0.000000e+00> : vector<8x128xf32>
    %501 = tpu.matmul %476, %289, %cst_91 {dimension_numbers = #tpu.dot_dimension_numbers<[1], [0], [0], [1], [0, 0, 1, 1], [], []>} : vector<8x32xf32>, vector<32x128xf32>, vector<8x128xf32> -> vector<8x128xf32>
    %502 = arith.addf %500, %501 : vector<8x128xf32>
    %503 = arith.mulf %502, %8 : vector<8x128xf32>
    %504 = math.tanh %503 : vector<8x128xf32>
    %505 = arith.mulf %504, %8 : vector<8x128xf32>
    %506 = arith.addf %505, %11 : vector<8x128xf32>
    %507 = vector.extract_strided_slice %506 {offsets = [0, 0], sizes = [8, 32], strides = [1, 1]} : vector<8x128xf32> to vector<8x32xf32>
    %508 = vector.extract_strided_slice %506 {offsets = [0, 32], sizes = [8, 32], strides = [1, 1]} : vector<8x128xf32> to vector<8x32xf32>
    %509 = vector.extract_strided_slice %506 {offsets = [0, 64], sizes = [8, 32], strides = [1, 1]} : vector<8x128xf32> to vector<8x32xf32>
    %510 = vector.extract_strided_slice %506 {offsets = [0, 96], sizes = [8, 32], strides = [1, 1]} : vector<8x128xf32> to vector<8x32xf32>
    %511 = arith.mulf %508, %474 : vector<8x32xf32>
    %512 = arith.mulf %507, %509 : vector<8x32xf32>
    %513 = arith.addf %511, %512 : vector<8x32xf32>
    %514 = math.tanh %513 : vector<8x32xf32>
    %515 = arith.mulf %510, %514 : vector<8x32xf32>
    %cst_92 = arith.constant dense<0.000000e+00> : vector<8x128xf32>
    %516 = tpu.matmul %515, %290, %cst_92 {dimension_numbers = #tpu.dot_dimension_numbers<[1], [0], [0], [1], [0, 0, 1, 1], [], []>} : vector<8x32xf32>, vector<32x128xf32>, vector<8x128xf32> -> vector<8x128xf32>
    %cst_93 = arith.constant dense<0.000000e+00> : vector<8x128xf32>
    %517 = tpu.matmul %493, %291, %cst_93 {dimension_numbers = #tpu.dot_dimension_numbers<[1], [0], [0], [1], [0, 0, 1, 1], [], []>} : vector<8x32xf32>, vector<32x128xf32>, vector<8x128xf32> -> vector<8x128xf32>
    %518 = arith.addf %516, %517 : vector<8x128xf32>
    %519 = arith.addf %518, %294 : vector<8x128xf32>
    %520 = arith.mulf %519, %8 : vector<8x128xf32>
    %521 = math.tanh %520 : vector<8x128xf32>
    %522 = arith.mulf %521, %8 : vector<8x128xf32>
    %523 = arith.addf %522, %11 : vector<8x128xf32>
    %524 = vector.extract_strided_slice %523 {offsets = [0, 0], sizes = [8, 32], strides = [1, 1]} : vector<8x128xf32> to vector<8x32xf32>
    %525 = vector.extract_strided_slice %523 {offsets = [0, 32], sizes = [8, 32], strides = [1, 1]} : vector<8x128xf32> to vector<8x32xf32>
    %526 = vector.extract_strided_slice %523 {offsets = [0, 64], sizes = [8, 32], strides = [1, 1]} : vector<8x128xf32> to vector<8x32xf32>
    %527 = vector.extract_strided_slice %523 {offsets = [0, 96], sizes = [8, 32], strides = [1, 1]} : vector<8x128xf32> to vector<8x32xf32>
    %528 = arith.mulf %525, %491 : vector<8x32xf32>
    %529 = arith.mulf %524, %526 : vector<8x32xf32>
    %530 = arith.addf %528, %529 : vector<8x32xf32>
    %531 = math.tanh %530 : vector<8x32xf32>
    %532 = arith.mulf %527, %531 : vector<8x32xf32>
    %cst_94 = arith.constant dense<0.000000e+00> : vector<8x256xf32>
    %533 = tpu.matmul %532, %295, %cst_94 {dimension_numbers = #tpu.dot_dimension_numbers<[1], [0], [0], [1], [0, 0, 1, 1], [], []>} : vector<8x32xf32>, vector<32x256xf32>, vector<8x256xf32> -> vector<8x256xf32>
    %534 = arith.addf %533, %298 : vector<8x256xf32>
    %535 = vector.extract_strided_slice %534 {offsets = [0, 0], sizes = [8, 128], strides = [1, 1]} : vector<8x256xf32> to vector<8x128xf32>
    %c5 = arith.constant 5 : index
    %c0_95 = arith.constant 0 : index
    %c0_96 = arith.constant 0 : index
    %536 = vector.load %arg15[%c5, %c0_95, %c0_96] : memref<10x8x128xf32, #tpu.memory_space<vmem>>, vector<1x8x128xf32>
    %537 = vector.shape_cast %536 : vector<1x8x128xf32> to vector<8x128xf32>
    %538 = vector.shape_cast %535 : vector<8x128xf32> to vector<1x8x128xf32>
    tpu.vector_store %arg15[%c5, %c0_95, %c0_96], %538 {strides = array<i32>} : memref<10x8x128xf32, #tpu.memory_space<vmem>>, vector<1x8x128xf32>,
    %539 = vector.extract_strided_slice %534 {offsets = [0, 128], sizes = [8, 128], strides = [1, 1]} : vector<8x256xf32> to vector<8x128xf32>
    %cst_97 = arith.constant dense<0.000000e+00> : vector<8x128xf32>
    %540 = tpu.matmul %515, %289, %cst_97 {dimension_numbers = #tpu.dot_dimension_numbers<[1], [0], [0], [1], [0, 0, 1, 1], [], []>} : vector<8x32xf32>, vector<32x128xf32>, vector<8x128xf32> -> vector<8x128xf32>
    %541 = arith.addf %539, %540 : vector<8x128xf32>
    %542 = arith.mulf %541, %8 : vector<8x128xf32>
    %543 = math.tanh %542 : vector<8x128xf32>
    %544 = arith.mulf %543, %8 : vector<8x128xf32>
    %545 = arith.addf %544, %11 : vector<8x128xf32>
    %546 = vector.extract_strided_slice %545 {offsets = [0, 0], sizes = [8, 32], strides = [1, 1]} : vector<8x128xf32> to vector<8x32xf32>
    %547 = vector.extract_strided_slice %545 {offsets = [0, 32], sizes = [8, 32], strides = [1, 1]} : vector<8x128xf32> to vector<8x32xf32>
    %548 = vector.extract_strided_slice %545 {offsets = [0, 64], sizes = [8, 32], strides = [1, 1]} : vector<8x128xf32> to vector<8x32xf32>
    %549 = vector.extract_strided_slice %545 {offsets = [0, 96], sizes = [8, 32], strides = [1, 1]} : vector<8x128xf32> to vector<8x32xf32>
    %550 = arith.mulf %547, %513 : vector<8x32xf32>
    %551 = arith.mulf %546, %548 : vector<8x32xf32>
    %552 = arith.addf %550, %551 : vector<8x32xf32>
    %553 = math.tanh %552 : vector<8x32xf32>
    %554 = arith.mulf %549, %553 : vector<8x32xf32>
    %cst_98 = arith.constant dense<0.000000e+00> : vector<8x128xf32>
    %555 = tpu.matmul %554, %290, %cst_98 {dimension_numbers = #tpu.dot_dimension_numbers<[1], [0], [0], [1], [0, 0, 1, 1], [], []>} : vector<8x32xf32>, vector<32x128xf32>, vector<8x128xf32> -> vector<8x128xf32>
    %cst_99 = arith.constant dense<0.000000e+00> : vector<8x128xf32>
    %556 = tpu.matmul %532, %291, %cst_99 {dimension_numbers = #tpu.dot_dimension_numbers<[1], [0], [0], [1], [0, 0, 1, 1], [], []>} : vector<8x32xf32>, vector<32x128xf32>, vector<8x128xf32> -> vector<8x128xf32>
    %557 = arith.addf %555, %556 : vector<8x128xf32>
    %558 = arith.addf %557, %294 : vector<8x128xf32>
    %559 = arith.mulf %558, %8 : vector<8x128xf32>
    %560 = math.tanh %559 : vector<8x128xf32>
    %561 = arith.mulf %560, %8 : vector<8x128xf32>
    %562 = arith.addf %561, %11 : vector<8x128xf32>
    %563 = vector.extract_strided_slice %562 {offsets = [0, 0], sizes = [8, 32], strides = [1, 1]} : vector<8x128xf32> to vector<8x32xf32>
    %564 = vector.extract_strided_slice %562 {offsets = [0, 32], sizes = [8, 32], strides = [1, 1]} : vector<8x128xf32> to vector<8x32xf32>
    %565 = vector.extract_strided_slice %562 {offsets = [0, 64], sizes = [8, 32], strides = [1, 1]} : vector<8x128xf32> to vector<8x32xf32>
    %566 = vector.extract_strided_slice %562 {offsets = [0, 96], sizes = [8, 32], strides = [1, 1]} : vector<8x128xf32> to vector<8x32xf32>
    %567 = arith.mulf %564, %530 : vector<8x32xf32>
    %568 = arith.mulf %563, %565 : vector<8x32xf32>
    %569 = arith.addf %567, %568 : vector<8x32xf32>
    %570 = math.tanh %569 : vector<8x32xf32>
    %571 = arith.mulf %566, %570 : vector<8x32xf32>
    %cst_100 = arith.constant dense<0.000000e+00> : vector<8x256xf32>
    %572 = tpu.matmul %571, %295, %cst_100 {dimension_numbers = #tpu.dot_dimension_numbers<[1], [0], [0], [1], [0, 0, 1, 1], [], []>} : vector<8x32xf32>, vector<32x256xf32>, vector<8x256xf32> -> vector<8x256xf32>
    %573 = arith.addf %572, %298 : vector<8x256xf32>
    %574 = vector.extract_strided_slice %573 {offsets = [0, 0], sizes = [8, 128], strides = [1, 1]} : vector<8x256xf32> to vector<8x128xf32>
    %c6 = arith.constant 6 : index
    %c0_101 = arith.constant 0 : index
    %c0_102 = arith.constant 0 : index
    %575 = vector.load %arg15[%c6, %c0_101, %c0_102] : memref<10x8x128xf32, #tpu.memory_space<vmem>>, vector<1x8x128xf32>
    %576 = vector.shape_cast %575 : vector<1x8x128xf32> to vector<8x128xf32>
    %577 = vector.shape_cast %574 : vector<8x128xf32> to vector<1x8x128xf32>
    tpu.vector_store %arg15[%c6, %c0_101, %c0_102], %577 {strides = array<i32>} : memref<10x8x128xf32, #tpu.memory_space<vmem>>, vector<1x8x128xf32>,
    %578 = vector.extract_strided_slice %573 {offsets = [0, 128], sizes = [8, 128], strides = [1, 1]} : vector<8x256xf32> to vector<8x128xf32>
    %cst_103 = arith.constant dense<0.000000e+00> : vector<8x128xf32>
    %579 = tpu.matmul %554, %289, %cst_103 {dimension_numbers = #tpu.dot_dimension_numbers<[1], [0], [0], [1], [0, 0, 1, 1], [], []>} : vector<8x32xf32>, vector<32x128xf32>, vector<8x128xf32> -> vector<8x128xf32>
    %580 = arith.addf %578, %579 : vector<8x128xf32>
    %581 = arith.mulf %580, %8 : vector<8x128xf32>
    %582 = math.tanh %581 : vector<8x128xf32>
    %583 = arith.mulf %582, %8 : vector<8x128xf32>
    %584 = arith.addf %583, %11 : vector<8x128xf32>
    %585 = vector.extract_strided_slice %584 {offsets = [0, 0], sizes = [8, 32], strides = [1, 1]} : vector<8x128xf32> to vector<8x32xf32>
    %586 = vector.extract_strided_slice %584 {offsets = [0, 32], sizes = [8, 32], strides = [1, 1]} : vector<8x128xf32> to vector<8x32xf32>
    %587 = vector.extract_strided_slice %584 {offsets = [0, 64], sizes = [8, 32], strides = [1, 1]} : vector<8x128xf32> to vector<8x32xf32>
    %588 = vector.extract_strided_slice %584 {offsets = [0, 96], sizes = [8, 32], strides = [1, 1]} : vector<8x128xf32> to vector<8x32xf32>
    %589 = arith.mulf %586, %552 : vector<8x32xf32>
    %590 = arith.mulf %585, %587 : vector<8x32xf32>
    %591 = arith.addf %589, %590 : vector<8x32xf32>
    %592 = math.tanh %591 : vector<8x32xf32>
    %593 = arith.mulf %588, %592 : vector<8x32xf32>
    %cst_104 = arith.constant dense<0.000000e+00> : vector<8x128xf32>
    %594 = tpu.matmul %593, %290, %cst_104 {dimension_numbers = #tpu.dot_dimension_numbers<[1], [0], [0], [1], [0, 0, 1, 1], [], []>} : vector<8x32xf32>, vector<32x128xf32>, vector<8x128xf32> -> vector<8x128xf32>
    %cst_105 = arith.constant dense<0.000000e+00> : vector<8x128xf32>
    %595 = tpu.matmul %571, %291, %cst_105 {dimension_numbers = #tpu.dot_dimension_numbers<[1], [0], [0], [1], [0, 0, 1, 1], [], []>} : vector<8x32xf32>, vector<32x128xf32>, vector<8x128xf32> -> vector<8x128xf32>
    %596 = arith.addf %594, %595 : vector<8x128xf32>
    %597 = arith.addf %596, %294 : vector<8x128xf32>
    %598 = arith.mulf %597, %8 : vector<8x128xf32>
    %599 = math.tanh %598 : vector<8x128xf32>
    %600 = arith.mulf %599, %8 : vector<8x128xf32>
    %601 = arith.addf %600, %11 : vector<8x128xf32>
    %602 = vector.extract_strided_slice %601 {offsets = [0, 0], sizes = [8, 32], strides = [1, 1]} : vector<8x128xf32> to vector<8x32xf32>
    %603 = vector.extract_strided_slice %601 {offsets = [0, 32], sizes = [8, 32], strides = [1, 1]} : vector<8x128xf32> to vector<8x32xf32>
    %604 = vector.extract_strided_slice %601 {offsets = [0, 64], sizes = [8, 32], strides = [1, 1]} : vector<8x128xf32> to vector<8x32xf32>
    %605 = vector.extract_strided_slice %601 {offsets = [0, 96], sizes = [8, 32], strides = [1, 1]} : vector<8x128xf32> to vector<8x32xf32>
    %606 = arith.mulf %603, %569 : vector<8x32xf32>
    %607 = arith.mulf %602, %604 : vector<8x32xf32>
    %608 = arith.addf %606, %607 : vector<8x32xf32>
    %609 = math.tanh %608 : vector<8x32xf32>
    %610 = arith.mulf %605, %609 : vector<8x32xf32>
    %cst_106 = arith.constant dense<0.000000e+00> : vector<8x256xf32>
    %611 = tpu.matmul %610, %295, %cst_106 {dimension_numbers = #tpu.dot_dimension_numbers<[1], [0], [0], [1], [0, 0, 1, 1], [], []>} : vector<8x32xf32>, vector<32x256xf32>, vector<8x256xf32> -> vector<8x256xf32>
    %612 = arith.addf %611, %298 : vector<8x256xf32>
    %613 = vector.extract_strided_slice %612 {offsets = [0, 0], sizes = [8, 128], strides = [1, 1]} : vector<8x256xf32> to vector<8x128xf32>
    %c7 = arith.constant 7 : index
    %c0_107 = arith.constant 0 : index
    %c0_108 = arith.constant 0 : index
    %614 = vector.load %arg15[%c7, %c0_107, %c0_108] : memref<10x8x128xf32, #tpu.memory_space<vmem>>, vector<1x8x128xf32>
    %615 = vector.shape_cast %614 : vector<1x8x128xf32> to vector<8x128xf32>
    %616 = vector.shape_cast %613 : vector<8x128xf32> to vector<1x8x128xf32>
    tpu.vector_store %arg15[%c7, %c0_107, %c0_108], %616 {strides = array<i32>} : memref<10x8x128xf32, #tpu.memory_space<vmem>>, vector<1x8x128xf32>,
    %617 = vector.extract_strided_slice %612 {offsets = [0, 128], sizes = [8, 128], strides = [1, 1]} : vector<8x256xf32> to vector<8x128xf32>
    %cst_109 = arith.constant dense<0.000000e+00> : vector<8x128xf32>
    %618 = tpu.matmul %593, %289, %cst_109 {dimension_numbers = #tpu.dot_dimension_numbers<[1], [0], [0], [1], [0, 0, 1, 1], [], []>} : vector<8x32xf32>, vector<32x128xf32>, vector<8x128xf32> -> vector<8x128xf32>
    %619 = arith.addf %617, %618 : vector<8x128xf32>
    %620 = arith.mulf %619, %8 : vector<8x128xf32>
    %621 = math.tanh %620 : vector<8x128xf32>
    %622 = arith.mulf %621, %8 : vector<8x128xf32>
    %623 = arith.addf %622, %11 : vector<8x128xf32>
    %624 = vector.extract_strided_slice %623 {offsets = [0, 0], sizes = [8, 32], strides = [1, 1]} : vector<8x128xf32> to vector<8x32xf32>
    %625 = vector.extract_strided_slice %623 {offsets = [0, 32], sizes = [8, 32], strides = [1, 1]} : vector<8x128xf32> to vector<8x32xf32>
    %626 = vector.extract_strided_slice %623 {offsets = [0, 64], sizes = [8, 32], strides = [1, 1]} : vector<8x128xf32> to vector<8x32xf32>
    %627 = vector.extract_strided_slice %623 {offsets = [0, 96], sizes = [8, 32], strides = [1, 1]} : vector<8x128xf32> to vector<8x32xf32>
    %628 = arith.mulf %625, %591 : vector<8x32xf32>
    %629 = arith.mulf %624, %626 : vector<8x32xf32>
    %630 = arith.addf %628, %629 : vector<8x32xf32>
    %631 = math.tanh %630 : vector<8x32xf32>
    %632 = arith.mulf %627, %631 : vector<8x32xf32>
    %cst_110 = arith.constant dense<0.000000e+00> : vector<8x128xf32>
    %633 = tpu.matmul %632, %290, %cst_110 {dimension_numbers = #tpu.dot_dimension_numbers<[1], [0], [0], [1], [0, 0, 1, 1], [], []>} : vector<8x32xf32>, vector<32x128xf32>, vector<8x128xf32> -> vector<8x128xf32>
    %cst_111 = arith.constant dense<0.000000e+00> : vector<8x128xf32>
    %634 = tpu.matmul %610, %291, %cst_111 {dimension_numbers = #tpu.dot_dimension_numbers<[1], [0], [0], [1], [0, 0, 1, 1], [], []>} : vector<8x32xf32>, vector<32x128xf32>, vector<8x128xf32> -> vector<8x128xf32>
    %635 = arith.addf %633, %634 : vector<8x128xf32>
    %636 = arith.addf %635, %294 : vector<8x128xf32>
    %637 = arith.mulf %636, %8 : vector<8x128xf32>
    %638 = math.tanh %637 : vector<8x128xf32>
    %639 = arith.mulf %638, %8 : vector<8x128xf32>
    %640 = arith.addf %639, %11 : vector<8x128xf32>
    %641 = vector.extract_strided_slice %640 {offsets = [0, 0], sizes = [8, 32], strides = [1, 1]} : vector<8x128xf32> to vector<8x32xf32>
    %642 = vector.extract_strided_slice %640 {offsets = [0, 32], sizes = [8, 32], strides = [1, 1]} : vector<8x128xf32> to vector<8x32xf32>
    %643 = vector.extract_strided_slice %640 {offsets = [0, 64], sizes = [8, 32], strides = [1, 1]} : vector<8x128xf32> to vector<8x32xf32>
    %644 = vector.extract_strided_slice %640 {offsets = [0, 96], sizes = [8, 32], strides = [1, 1]} : vector<8x128xf32> to vector<8x32xf32>
    %645 = arith.mulf %642, %608 : vector<8x32xf32>
    %646 = arith.mulf %641, %643 : vector<8x32xf32>
    %647 = arith.addf %645, %646 : vector<8x32xf32>
    %648 = math.tanh %647 : vector<8x32xf32>
    %649 = arith.mulf %644, %648 : vector<8x32xf32>
    %cst_112 = arith.constant dense<0.000000e+00> : vector<8x256xf32>
    %650 = tpu.matmul %649, %295, %cst_112 {dimension_numbers = #tpu.dot_dimension_numbers<[1], [0], [0], [1], [0, 0, 1, 1], [], []>} : vector<8x32xf32>, vector<32x256xf32>, vector<8x256xf32> -> vector<8x256xf32>
    %651 = arith.addf %650, %298 : vector<8x256xf32>
    %652 = vector.extract_strided_slice %651 {offsets = [0, 0], sizes = [8, 128], strides = [1, 1]} : vector<8x256xf32> to vector<8x128xf32>
    %c8 = arith.constant 8 : index
    %c0_113 = arith.constant 0 : index
    %c0_114 = arith.constant 0 : index
    %653 = vector.load %arg15[%c8, %c0_113, %c0_114] : memref<10x8x128xf32, #tpu.memory_space<vmem>>, vector<1x8x128xf32>
    %654 = vector.shape_cast %653 : vector<1x8x128xf32> to vector<8x128xf32>
    %655 = vector.shape_cast %652 : vector<8x128xf32> to vector<1x8x128xf32>
    tpu.vector_store %arg15[%c8, %c0_113, %c0_114], %655 {strides = array<i32>} : memref<10x8x128xf32, #tpu.memory_space<vmem>>, vector<1x8x128xf32>,
    %656 = vector.extract_strided_slice %651 {offsets = [0, 128], sizes = [8, 128], strides = [1, 1]} : vector<8x256xf32> to vector<8x128xf32>
    %cst_115 = arith.constant dense<0.000000e+00> : vector<8x128xf32>
    %657 = tpu.matmul %632, %289, %cst_115 {dimension_numbers = #tpu.dot_dimension_numbers<[1], [0], [0], [1], [0, 0, 1, 1], [], []>} : vector<8x32xf32>, vector<32x128xf32>, vector<8x128xf32> -> vector<8x128xf32>
    %658 = arith.addf %656, %657 : vector<8x128xf32>
    %659 = arith.mulf %658, %8 : vector<8x128xf32>
    %660 = math.tanh %659 : vector<8x128xf32>
    %661 = arith.mulf %660, %8 : vector<8x128xf32>
    %662 = arith.addf %661, %11 : vector<8x128xf32>
    %663 = vector.extract_strided_slice %662 {offsets = [0, 0], sizes = [8, 32], strides = [1, 1]} : vector<8x128xf32> to vector<8x32xf32>
    %664 = vector.extract_strided_slice %662 {offsets = [0, 32], sizes = [8, 32], strides = [1, 1]} : vector<8x128xf32> to vector<8x32xf32>
    %665 = vector.extract_strided_slice %662 {offsets = [0, 64], sizes = [8, 32], strides = [1, 1]} : vector<8x128xf32> to vector<8x32xf32>
    %666 = vector.extract_strided_slice %662 {offsets = [0, 96], sizes = [8, 32], strides = [1, 1]} : vector<8x128xf32> to vector<8x32xf32>
    %667 = arith.mulf %664, %630 : vector<8x32xf32>
    %668 = arith.mulf %663, %665 : vector<8x32xf32>
    %669 = arith.addf %667, %668 : vector<8x32xf32>
    %670 = math.tanh %669 : vector<8x32xf32>
    %671 = arith.mulf %666, %670 : vector<8x32xf32>
    %cst_116 = arith.constant dense<0.000000e+00> : vector<8x128xf32>
    %672 = tpu.matmul %671, %290, %cst_116 {dimension_numbers = #tpu.dot_dimension_numbers<[1], [0], [0], [1], [0, 0, 1, 1], [], []>} : vector<8x32xf32>, vector<32x128xf32>, vector<8x128xf32> -> vector<8x128xf32>
    %cst_117 = arith.constant dense<0.000000e+00> : vector<8x128xf32>
    %673 = tpu.matmul %649, %291, %cst_117 {dimension_numbers = #tpu.dot_dimension_numbers<[1], [0], [0], [1], [0, 0, 1, 1], [], []>} : vector<8x32xf32>, vector<32x128xf32>, vector<8x128xf32> -> vector<8x128xf32>
    %674 = arith.addf %672, %673 : vector<8x128xf32>
    %675 = arith.addf %674, %294 : vector<8x128xf32>
    %676 = arith.mulf %675, %8 : vector<8x128xf32>
    %677 = math.tanh %676 : vector<8x128xf32>
    %678 = arith.mulf %677, %8 : vector<8x128xf32>
    %679 = arith.addf %678, %11 : vector<8x128xf32>
    %680 = vector.extract_strided_slice %679 {offsets = [0, 0], sizes = [8, 32], strides = [1, 1]} : vector<8x128xf32> to vector<8x32xf32>
    %681 = vector.extract_strided_slice %679 {offsets = [0, 32], sizes = [8, 32], strides = [1, 1]} : vector<8x128xf32> to vector<8x32xf32>
    %682 = vector.extract_strided_slice %679 {offsets = [0, 64], sizes = [8, 32], strides = [1, 1]} : vector<8x128xf32> to vector<8x32xf32>
    %683 = vector.extract_strided_slice %679 {offsets = [0, 96], sizes = [8, 32], strides = [1, 1]} : vector<8x128xf32> to vector<8x32xf32>
    %684 = arith.mulf %681, %647 : vector<8x32xf32>
    %685 = arith.mulf %680, %682 : vector<8x32xf32>
    %686 = arith.addf %684, %685 : vector<8x32xf32>
    %687 = math.tanh %686 : vector<8x32xf32>
    %688 = arith.mulf %683, %687 : vector<8x32xf32>
    %cst_118 = arith.constant dense<0.000000e+00> : vector<8x256xf32>
    %689 = tpu.matmul %688, %295, %cst_118 {dimension_numbers = #tpu.dot_dimension_numbers<[1], [0], [0], [1], [0, 0, 1, 1], [], []>} : vector<8x32xf32>, vector<32x256xf32>, vector<8x256xf32> -> vector<8x256xf32>
    %690 = arith.addf %689, %298 : vector<8x256xf32>
    %691 = vector.extract_strided_slice %690 {offsets = [0, 0], sizes = [8, 128], strides = [1, 1]} : vector<8x256xf32> to vector<8x128xf32>
    %c9 = arith.constant 9 : index
    %c0_119 = arith.constant 0 : index
    %c0_120 = arith.constant 0 : index
    %692 = vector.load %arg15[%c9, %c0_119, %c0_120] : memref<10x8x128xf32, #tpu.memory_space<vmem>>, vector<1x8x128xf32>
    %693 = vector.shape_cast %692 : vector<1x8x128xf32> to vector<8x128xf32>
    %694 = vector.shape_cast %691 : vector<8x128xf32> to vector<1x8x128xf32>
    tpu.vector_store %arg15[%c9, %c0_119, %c0_120], %694 {strides = array<i32>} : memref<10x8x128xf32, #tpu.memory_space<vmem>>, vector<1x8x128xf32>,
    return
  }
}

</mosaic_0001>

<bundles_post_ra>
// kernel: tpu_custom_call.1
= control target key start
LH: loop header
LB: loop body
LE: loop exit
PB: predicated region body
PF: predicated region fallthrough
CT: control target
= control target key end

     0   :  { %20 = vsyncpa [#allocation3], 0  ;;  %s4409_s0 = inlined_call_operand.hbm [shape: f32[64,128], index: 0, kind: input, shape index: {}]   ;;  %s4410_s1 = inlined_call_operand.hbm [shape: f32[128,128], index: 1, kind: input, shape index: {}]   ;;  %s4411_s2 = inlined_call_operand.hbm [shape: f32[32,128], index: 2, kind: input, shape index: {}]   ;;  %s4412_s3 = inlined_call_operand.vmem [shape: f32[1,128], index: 3, kind: input, shape index: {}]   ;;  %s4413_s4 = inlined_call_operand.hbm [shape: f32[32,128], index: 4, kind: input, shape index: {}]   ;;  %s4414_s5 = inlined_call_operand.hbm [shape: f32[32,128], index: 5, kind: input, shape index: {}]   ;;  %s4415_s6 = inlined_call_operand.vmem [shape: f32[1,128], index: 6, kind: input, shape index: {}]   ;;  %s4416_s7 = inlined_call_operand.hbm [shape: f32[128,128], index: 7, kind: input, shape index: {}]   ;;  %s4417_s8 = inlined_call_operand.hbm [shape: f32[32,128], index: 8, kind: input, shape index: {}]   ;;  %s4418_s9 = inlined_call_operand.vmem [shape: f32[1,128], index: 9, kind: input, shape index: {}]   ;;  %s4419_s10 = inlined_call_operand.hbm [shape: f32[32,128], index: 10, kind: input, shape index: {}]   ;;  %s4420_s11 = inlined_call_operand.hbm [shape: f32[32,128], index: 11, kind: input, shape index: {}]   ;;  %s4421_s12 = inlined_call_operand.vmem [shape: f32[1,128], index: 12, kind: input, shape index: {}]   ;;  %s4422_s13 = inlined_call_operand.hbm [shape: f32[32,256], index: 13, kind: input, shape index: {}]   ;;  %s4423_s14 = inlined_call_operand.vmem [shape: f32[1,256], index: 14, kind: input, shape index: {}]   ;;  %s4424_s15 = inlined_call_operand.hbm [shape: f32[10,8,128], index: 15, kind: output, shape index: {}]  }
   0x1   :  { %21 = vsyncpa [#allocation6], 0 }
   0x2   :  { %22 = vsyncpa [#allocation9], 0 }
   0x3   :  { %23 = vsyncpa [#allocation12], 0 }
   0x4   :  { %24 = vsyncpa [#allocation15], 0 }
   0x5   :  { %25 = vsyncpa [#allocation18], 0 }
   0x6   :  { %26 = vsyncpa [#allocation4], 0  ;;  %s44_s20 = sshll.u32 %s4410_s1, 4  ;;  %s3381_s21 = smov [#allocation5]   ;;  %s45_s20 = int_to_ptr.hbm [resolvable:$true] %s44_s20 }
   0x7   :  { %s46_s22 = sshll.u32 %s3381_s21, 4  ;;  %s72_s25 = sshll.u32 %s4413_s4, 4  ;;  %s47_s22 = int_to_ptr.vmem [resolvable:$true] %s46_s22  ;;  %s73_s25 = int_to_ptr.hbm [resolvable:$true] %s72_s25 }
   0x8   :  { %s3382_s26 = smov 128   ;;  %s3383_s27 = smov 8  }
   0x9   :  { %52 = dma.hbm_to_vmem [thread:$0]  %s45_s20, 2048, %s47_s22, [#allocation6], %s3382_s26, %s3382_s26, %s3383_s27  }
   0xa   :  { %s3384_s28 = smov [#allocation8]   ;;  %s100_s1 = sshll.u32 %s4416_s7, 4  ;;  %s101_s1 = int_to_ptr.hbm [resolvable:$true] %s100_s1 }
   0xb   :  { %s74_s29 = sshll.u32 %s3384_s28, 4  ;;  %s128_s18 = sshll.u32 %s4419_s10, 4  ;;  %s75_s29 = int_to_ptr.vmem [resolvable:$true] %s74_s29  ;;  %s129_s18 = int_to_ptr.hbm [resolvable:$true] %s128_s18 }
   0xc   :  { %80 = dma.hbm_to_vmem [thread:$0]  %s73_s25, 512, %s75_s29, [#allocation9], %s3382_s26, %s3382_s26, %s3383_s27  }
   0xd   :  { %s3385_s19 = smov [#allocation11]   ;;  %s3386_s20 = smov [#allocation14]  }
   0xe   :  { %s102_s21 = sshll.u32 %s3385_s19, 4  ;;  %s130_s7 = sshll.u32 %s3386_s20, 4  ;;  %s103_s21 = int_to_ptr.vmem [resolvable:$true] %s102_s21  ;;  %s131_s7 = int_to_ptr.vmem [resolvable:$true] %s130_s7 }
   0xf   :  { %108 = dma.hbm_to_vmem [thread:$0]  %s101_s1, 2048, %s103_s21, [#allocation12], %s3382_s26, %s3382_s26, %s3383_s27  }
  0x10   :  { %s31_s24 = sshll.u32 %s4409_s0, 4  ;;  %s57_s28 = sshll.u32 %s4411_s2, 4  ;;  %s32_s24 = int_to_ptr.hbm [resolvable:$true] %s31_s24  ;;  %s58_s28 = int_to_ptr.hbm [resolvable:$true] %s57_s28 }
  0x11   :  { %136 = dma.hbm_to_vmem [thread:$0]  %s129_s18, 512, %s131_s7, [#allocation15], %s3382_s26, %s3382_s26, %s3383_s27  }
  0x12   :  { %s3387_s29 = smov [#allocation2]   ;;  %s3388_s16 = smov [#allocation7]  }
  0x13   :  { %s33_s30 = sshll.u32 %s3387_s29, 4  ;;  %s59_s0 = sshll.u32 %s3388_s16, 4  ;;  %s34_s30 = int_to_ptr.vmem [resolvable:$true] %s33_s30  ;;  %s60_s0 = int_to_ptr.vmem [resolvable:$true] %s59_s0 }
  0x14   :  { %39 = dma.hbm_to_vmem [thread:$0]  %s32_s24, 1024, %s34_s30, [#allocation3], %s3382_s26, %s3382_s26, %s3383_s27  }
  0x15   :  { %s85_s17 = sshll.u32 %s4414_s5, 4  ;;  %s113_s19 = sshll.u32 %s4417_s8, 4  ;;  %s86_s17 = int_to_ptr.hbm [resolvable:$true] %s85_s17  ;;  %s114_s19 = int_to_ptr.hbm [resolvable:$true] %s113_s19 }
  0x16   :  { %65 = dma.hbm_to_vmem [thread:$0]  %s58_s28, 512, %s60_s0, [#allocation6], %s3382_s26, %s3382_s26, %s3383_s27  }
  0x17   :  { %s3389_s21 = smov [#allocation10]   ;;  %s3390_s7 = smov [#allocation13]  }
  0x18   :  { %s87_s20 = sshll.u32 %s3389_s21, 4  ;;  %s115_s5 = sshll.u32 %s3390_s7, 4  ;;  %s88_s20 = int_to_ptr.vmem [resolvable:$true] %s87_s20  ;;  %s116_s5 = int_to_ptr.vmem [resolvable:$true] %s115_s5 }
  0x19   :  { %93 = dma.hbm_to_vmem [thread:$0]  %s86_s17, 512, %s88_s20, [#allocation9], %s3382_s26, %s3382_s26, %s3383_s27  }
  0x1a   :  { %s141_s24 = sshll.u32 %s4420_s11, 4  ;;  %s156_s25 = sshll.u32 %s4422_s13, 4  ;;  %s142_s24 = int_to_ptr.hbm [resolvable:$true] %s141_s24  ;;  %s157_s25 = int_to_ptr.hbm [resolvable:$true] %s156_s25 }
  0x1b   :  { %121 = dma.hbm_to_vmem [thread:$0]  %s114_s19, 512, %s116_s5, [#allocation12], %s3382_s26, %s3382_s26, %s3383_s27  }
  0x1c   :  { %s3391_s28 = smov [#allocation16]   ;;  %s3392_s30 = smov [#allocation17]  }
  0x1d   :  { %s143_s29 = sshll.u32 %s3391_s28, 4  ;;  %s158_s11 = sshll.u32 %s3392_s30, 4  ;;  %s144_s29 = int_to_ptr.vmem [resolvable:$true] %s143_s29  ;;  %s159_s11 = int_to_ptr.vmem [resolvable:$true] %s158_s11 }
  0x1e   :  { %149 = dma.hbm_to_vmem [thread:$0]  %s142_s24, 512, %s144_s29, [#allocation15], %s3382_s26, %s3382_s26, %s3383_s27  }
  0x1f   :  { %s3393_s16 = smov 256   ;;  %s3394_s0 = smov 16  }
  0x20   :  { %164 = dma.hbm_to_vmem [thread:$0]  %s157_s25, 1024, %s159_s11, [#allocation18], %s3393_s16, %s3393_s16, %s3394_s0  }
  0x21   :  { %3367 = dma.done.wait [#allocation3], 1024  }
  0x22   :  { %3368 = vsyncadd [#allocation3], 4294966272 }
  0x23   :  { %3369 = dma.done.wait [#allocation6], 2560  }
  0x24   :  { %3370 = vsyncadd [#allocation6], 4294964736 }
  0x25   :  { %3371 = dma.done.wait [#allocation9], 1024  }
  0x26   :  { %3372 = vsyncadd [#allocation9], 4294966272 }
  0x27   :  { %3373 = dma.done.wait [#allocation12], 2560  }
  0x28   :  { %3374 = vsyncadd [#allocation12], 4294964736 }
  0x29   :  { %3375 = dma.done.wait [#allocation15], 1024  }
  0x2a   :  { %3376 = vsyncadd [#allocation15], 4294966272 }
  0x2b   :  { %3377 = dma.done.wait [#allocation18], 1024  }
  0x2c   :  { %3378 = vsyncadd [#allocation18], 4294966272  ;;  %v237_v0 = vld [vmem:[#allocation5 + $0x78] sm:$0xff]  ;;  %v236_v1 = vld [vmem:[#allocation5 + $0x70] sm:$0xff]  ;;  %v3395_v12 = vmov 0.0   ;;  %v207_v22 = vlaneseq  ;;  %v3396_v28 = vmov 0.5  }
  0x2d   :  { %242 = vmatpush.msra.mxu0 %v237_v0  ;;  %v235_v2 = vld [vmem:[#allocation5 + $0x68] sm:$0xff]  ;;  %v234_v3 = vld [vmem:[#allocation5 + $0x60] sm:$0xff]  ;;  %v3537_v4 = vld [vmem:[#allocation7 + $0x18] sm:$0xff]  ;;  %s3398_s4 = smov 32   ;;  %vm299_vm3 = vcmask 261120   ;;  %s2830_s24 = sshll.u32 %s4424_s15, 4  ;;  %s2831_s24 = int_to_ptr.hbm [resolvable:$true] %s2830_s24 }
  0x2e   :  { %315 = vmatpush.msra.mxu1 %v3537_v4  ;;  %v3540_v5 = vld [vmem:[#allocation7 + $0x10] sm:$0xff]  ;;  %v233_v6 = vld [vmem:[#allocation5 + $0x58] sm:$0xff]  ;;  %v3542_v7 = vld [vmem:[#allocation7 + $0x8] sm:$0xff]  ;;  %v208_v23 = vand.u32 127, %v207_v22 }
  0x2f   :  { %243 = vmatpush.msra.mxu0 %v236_v1  ;;  %v232_v8 = vld [vmem:[#allocation5 + $0x50] sm:$0xff]  ;;  %v3545_v9 = vld [vmem:[#allocation7] sm:$0xff]  ;;  %v231_v10 = vld [vmem:[#allocation5 + $0x48] sm:$0xff] }
  0x30   :  { %316 = vmatpush.msra.mxu1 %v3540_v5  ;;  %v230_v11 = vld [vmem:[#allocation5 + $0x40] sm:$0xff]  ;;  %v229_v13 = vld [vmem:[#allocation5 + $0x38] sm:$0xff]  ;;  %v228_v14 = vld [vmem:[#allocation5 + $0x30] sm:$0xff]  ;;  %vm209_vm0 = vcmp.ge.s32.totalorder %v208_v23, 64  ;;  %vm210_vm1 = vcmp.lt.s32.totalorder %v208_v23, 96 }
  0x31   :  { %244 = vmatpush.msra.mxu0 %v235_v2  ;;  %v227_v15 = vld [vmem:[#allocation5 + $0x28] sm:$0xff]  ;;  %v226_v16 = vld [vmem:[#allocation5 + $0x20] sm:$0xff]  ;;  %v225_v17 = vld [vmem:[#allocation5 + $0x18] sm:$0xff] }
  0x32   :  { %317 = vmatpush.msra.mxu1 %v3542_v7  ;;  %v224_v18 = vld [vmem:[#allocation5 + $0x10] sm:$0xff]  ;;  %v223_v19 = vld [vmem:[#allocation5 + $0x8] sm:$0xff]  ;;  %v222_v20 = vld [vmem:[#allocation5] sm:$0xff] }
  0x33   :  { %245 = vmatpush.msra.mxu0 %v234_v3  ;;  %v214_v21 = vld [vmem:[#allocation2] sm:$0xff]  ;;  %vm211_vm2 = vmand %vm209_vm0, %vm210_vm1  ;;  %v3577_v42 = vld [vmem:[#allocation10 + $0x18] sm:$0xff] }
  0x34   :  { %318 = vmatpush.msra.mxu1 %v3545_v9  ;;  %v3561_v24 = vld [vmem:[%s4412_s3] ss:$0 sm:$0xff]  ;;  %v3564_v29 = vsel %vm211_vm2, 1.0, %v3396_v28  ;;  %v3567_v33 = vsel %vm211_vm2, 0.0, %v3396_v28  ;;  %s3397_s3 = smov 64   ;;  %v3579_v43 = vld [vmem:[#allocation8 + $0x18] sm:$0xff]  ;;  %357 = vmatpush.msra.mxu2 %v3577_v42 }
  0x35   :  { %246 = vmatpush.msra.mxu0 %v233_v6  ;;  %319 = vmatmul.f32.vlgmr.msra.gmra.mxu1 %v3395_v12  ;;  %v3581_v44 = vld [vmem:[#allocation10 + $0x10] sm:$0xff]  ;;  %v3587_v46 = vld [vmem:[#allocation10 + $0x8] sm:$0xff]  ;;  %v3593_v49 = vld [vmem:[#allocation10] sm:$0xff] }
  0x36   :  { %424 = vmatpush.msrb.mxu1 %v3537_v4  ;;  %382 = vmatpush.msra.mxu3 %v3579_v43  ;;  %v3585_v45 = vld [vmem:[#allocation8 + $0x10] sm:$0xff]  ;;  %v3589_v47 = vld [vmem:[#allocation8 + $0x8] sm:$0xff]  ;;  %v3595_v50 = vld [vmem:[#allocation8] sm:$0xff] }
  0x37   :  { %247 = vmatpush.msra.mxu0 %v232_v8  ;;  %v215_v48 = vld [vmem:[#allocation2 + $0x8] sm:$0xff]  ;;  %358 = vmatpush.msra.mxu2 %v3581_v44  ;;  %v3629_v57 = vld [vmem:[%s4415_s6] ss:$0 sm:$0xff]  ;;  %v216_v28 = vld [vmem:[#allocation2 + $0x10] sm:$0xff] }
  0x38   :  { %425 = vmatpush.msrb.mxu1 %v3540_v5  ;;  %383 = vmatpush.msra.mxu3 %v3585_v45 }
  0x39   :  { %248 = vmatpush.msra.mxu0 %v231_v10  ;;  %359 = vmatpush.msra.mxu2 %v3587_v46 }
  0x3a   :  { %426 = vmatpush.msrb.mxu1 %v3542_v7  ;;  %384 = vmatpush.msra.mxu3 %v3589_v47 }
  0x3b   :  { %249 = vmatpush.msra.mxu0 %v230_v11  ;;  %360 = vmatpush.msra.mxu2 %v3593_v49 }
  0x3c   :  { %427 = vmatpush.msrb.mxu1 %v3545_v9  ;;  %385 = vmatpush.msra.mxu3 %v3595_v50 }
  0x3d   :  { %250 = vmatpush.msra.mxu0 %v229_v13  ;;  %361 = vmatmul.f32.vlgmr.msra.gmra.mxu2 %v3395_v12 }
  0x3e   :  { %538 = vmatpush.msra.mxu1 %v3537_v4  ;;  %496 = vmatpush.msrb.mxu3 %v3579_v43 }
  0x3f   :  { %251 = vmatpush.msra.mxu0 %v228_v14  ;;  %471 = vmatpush.msrb.mxu2 %v3577_v42 }
  0x40   :  { %539 = vmatpush.msra.mxu1 %v3540_v5  ;;  %497 = vmatpush.msrb.mxu3 %v3585_v45 }
  0x41   :  { %252 = vmatpush.msra.mxu0 %v227_v15  ;;  %472 = vmatpush.msrb.mxu2 %v3581_v44 }
  0x42   :  { %540 = vmatpush.msra.mxu1 %v3542_v7  ;;  %498 = vmatpush.msrb.mxu3 %v3589_v47 }
  0x43   :  { %253 = vmatpush.msra.mxu0 %v226_v16  ;;  %473 = vmatpush.msrb.mxu2 %v3587_v46 }
  0x44   :  { %541 = vmatpush.msra.mxu1 %v3545_v9  ;;  %499 = vmatpush.msrb.mxu3 %v3595_v50 }
  0x45   :  { %254 = vmatpush.msra.mxu0 %v225_v17  ;;  %474 = vmatpush.msrb.mxu2 %v3593_v49 }
  0x47   :  { %255 = vmatpush.msra.mxu0 %v224_v18  ;;  %585 = vmatpush.msra.mxu2 %v3577_v42 }
  0x49   :  { %256 = vmatpush.msra.mxu0 %v223_v19  ;;  %586 = vmatpush.msra.mxu2 %v3581_v44 }
  0x4b   :  { %257 = vmatpush.msra.mxu0 %v222_v20  ;;  %587 = vmatpush.msra.mxu2 %v3587_v46 }
  0x4c   :  { %258 = vmatmul.f32.vlgmr.msra.gmra.mxu0 %v214_v21 }
  0x4d   :  { %588 = vmatpush.msra.mxu2 %v3593_v49 }
  0x54   :  { %261 = vmatmul.f32.gmra.mxu0 %v215_v48 }
  0x5c   :  { %264 = vmatmul.f32.gmra.mxu0 %v216_v28 }
  0xb2   :  { %v320_v26 = vpop.f32.mrf.mxu1 }
  0xc0   :  { %v362_v55 = vpop.f32.mrf.mxu2 }
  0xc9   :  { %v259_v25 = vpop.f32.mrf.mxu0 }
  0xca   :  { %v260_v27 = vadd.f32 %v3561_v24, %v259_v25 }
  0xcc   :  { %v323_v30 = vadd.f32 %v320_v26, %v260_v27 }
  0xce   :  { %v324_v31 = vmul.f32 %v323_v30, %v3564_v29 }
  0xd0   :  { %2942 = vtanh.f32 %v324_v31 }
  0xd1   :  { %v262_v54 = vpop.f32.mrf.mxu0 }
  0xd2   :  { %v263_v56 = vadd.f32 %v3561_v24, %v262_v54 }
  0xd6   :  { %v2943_v32 = vpop.eup %2942 }
  0xd7   :  { %v326_v34 = vmul.f32 %v2943_v32, %v3564_v29 }
  0xd9   :  { %v327_v35 = vadd.f32 %v326_v34, %v3567_v33  ;;  %v265_v32 = vpop.f32.mrf.mxu0 }
  0xda   :  { %v266_v34 = vadd.f32 %v3561_v24, %v265_v32 }
  0xdb   :  { %330 = vrot.lane.b32.xlu0 %v327_v35, %s3397_s3  ;;  %v328_v38 = vmul.f32 0.0, %v327_v35 }
 0x14d   :  { %v331_v36 = vpop.permute.xlu0 %330 }
 0x14e   :  { %v333_v37 = vmul.f32 %v331_v36, %v327_v35 }
 0x150   :  { %335 = vrot.lane.b32.xlu0 %v333_v37, %s3398_s4 }
 0x1c2   :  { %v336_v39 = vpop.permute.xlu0 %335 }
 0x1c3   :  { %v3573_v40 = vadd.f32 %v336_v39, %v328_v38 }
 0x1c5   :  { %2944 = vtanh.f32 %v3573_v40 }
 0x1cb   :  { %v2945_v41 = vpop.eup %2944 }
 0x1cc   :  { %341 = vrot.lane.b32.xlu1 %v2945_v41, %s3397_s3 }
 0x23e   :  { %v342_v51 = vpop.permute.xlu1 %341 }
 0x23f   :  { %v344_v52 = vmul.f32 %v342_v51, %v327_v35 }
 0x241   :  { %366 = vrot.lane.b32.xlu1 %v344_v52, %s3398_s4 }
 0x2b3   :  { %v367_v53 = vpop.permute.xlu1 %366 }
 0x2b4   :  { %2848 = vmatmul.msk.f32.vlgmr.msra.gmra.mxu3 %vm299_vm3, %v367_v53  ;;  %2849 = vmatmul.msk.f32.vlgmr.msrb.gmra.mxu1 %vm299_vm3, %v367_v53 }
 0x2b5   :  { %652 = vmatpush.msrb.mxu1 %v3537_v4  ;;  %610 = vmatpush.msra.mxu3 %v3579_v43 }
 0x2b7   :  { %653 = vmatpush.msrb.mxu1 %v3540_v5  ;;  %611 = vmatpush.msra.mxu3 %v3585_v45 }
 0x2b9   :  { %654 = vmatpush.msrb.mxu1 %v3542_v7  ;;  %612 = vmatpush.msra.mxu3 %v3589_v47 }
 0x2bb   :  { %655 = vmatpush.msrb.mxu1 %v3545_v9  ;;  %613 = vmatpush.msra.mxu3 %v3595_v50 }
 0x331   :  { %v429_v58 = vpop.f32.mrf.mxu1 }
 0x332   :  { %v432_v61 = vadd.f32 %v429_v58, %v263_v56 }
 0x334   :  { %v433_v0 = vmul.f32 %v432_v61, %v3564_v29 }
 0x337   :  { %v387_v59 = vpop.f32.mrf.mxu3 }
 0x338   :  { %v388_v60 = vadd.f32 %v387_v59, %v362_v55 }
 0x33a   :  { %v390_v62 = vadd.f32 %v3629_v57, %v388_v60 }
 0x33c   :  { %v391_v63 = vmul.f32 %v390_v62, %v3564_v29 }
 0x33e   :  { %2946 = vtanh.f32 %v391_v63 }
 0x33f   :  { %2948 = vtanh.f32 %v433_v0 }
 0x344   :  { %v2947_v1 = vpop.eup %2946 }
 0x345   :  { %v393_v2 = vmul.f32 %v2947_v1, %v3564_v29  ;;  %v2949_v6 = vpop.eup %2948 }
 0x346   :  { %v435_v8 = vmul.f32 %v2949_v6, %v3564_v29 }
 0x347   :  { %v394_v3 = vadd.f32 %v393_v2, %v3567_v33 }
 0x348   :  { %v436_v10 = vadd.f32 %v435_v8, %v3567_v33 }
 0x349   :  { %397 = vrot.lane.b32.xlu2 %v394_v3, %s3397_s3  ;;  %v395_v15 = vmul.f32 0.0, %v394_v3 }
 0x34a   :  { %v437_v18 = vmul.f32 %v436_v10, %v3573_v40 }
 0x351   :  { %439 = vrot.lane.b32.xlu2 %v436_v10, %s3397_s3 }
 0x3a3   :  { %v398_v11 = vpop.permute.xlu2 %397 }
 0x3a4   :  { %v400_v12 = vmul.f32 %v398_v11, %v394_v3 }
 0x3a6   :  { %402 = vrot.lane.b32.xlu0 %v400_v12, %s3398_s4 }
 0x3ab   :  { %v440_v13 = vpop.permute.xlu2 %439 }
 0x3ac   :  { %v442_v14 = vmul.f32 %v440_v13, %v436_v10 }
 0x3ae   :  { %444 = vrot.lane.b32.xlu1 %v442_v14, %s3398_s4 }
 0x418   :  { %v403_v16 = vpop.permute.xlu0 %402 }
 0x419   :  { %v405_v17 = vadd.f32 %v403_v16, %v395_v15 }
 0x41b   :  { %2950 = vtanh.f32 %v405_v17 }
 0x420   :  { %v445_v19 = vpop.permute.xlu1 %444 }
 0x421   :  { %v2951_v20 = vpop.eup %2950  ;;  %v447_v21 = vadd.f32 %v445_v19, %v437_v18 }
 0x422   :  { %408 = vrot.lane.b32.xlu2 %v2951_v20, %s3397_s3 }
 0x423   :  { %2952 = vtanh.f32 %v447_v21 }
 0x429   :  { %v2953_v22 = vpop.eup %2952 }
 0x42a   :  { %450 = vrot.lane.b32.xlu0 %v2953_v22, %s3397_s3 }
 0x47c   :  { %v409_v23 = vpop.permute.xlu2 %408 }
 0x47d   :  { %v411_v25 = vmul.f32 %v409_v23, %v394_v3 }
 0x47f   :  { %455 = vrot.lane.b32.xlu1 %v411_v25, %s3398_s4 }
 0x49c   :  { %v451_v26 = vpop.permute.xlu0 %450 }
 0x49d   :  { %v453_v27 = vmul.f32 %v451_v26, %v436_v10  ;;  %v217_v10 = vld [vmem:[#allocation2 + $0x18] sm:$0xff] }
 0x49e   :  { %267 = vmatmul.f32.gmra.mxu0 %v217_v10 }
 0x49f   :  { %480 = vrot.lane.b32.xlu2 %v453_v27, %s3398_s4 }
 0x4f1   :  { %v456_v30 = vpop.permute.xlu1 %455 }
 0x4f2   :  { %2850 = vmatmul.msk.f32.vlgmr.msrb.gmra.mxu2 %vm299_vm3, %v456_v30 }
 0x4f3   :  { %699 = vmatpush.msrb.mxu2 %v3577_v42 }
 0x4f5   :  { %700 = vmatpush.msrb.mxu2 %v3581_v44 }
 0x4f7   :  { %701 = vmatpush.msrb.mxu2 %v3587_v46 }
 0x4f9   :  { %v481_v31 = vpop.permute.xlu2 %480  ;;  %702 = vmatpush.msrb.mxu2 %v3593_v49 }
 0x4fa   :  { %2851 = vmatmul.msk.f32.vlgmr.msrb.gmra.mxu3 %vm299_vm3, %v481_v31  ;;  %2852 = vmatmul.msk.f32.vlgmr.msra.gmra.mxu1 %vm299_vm3, %v481_v31 }
 0x4fb   :  { %724 = vmatpush.msrb.mxu3 %v3579_v43  ;;  %766 = vmatpush.msra.mxu1 %v3537_v4 }
 0x4fd   :  { %725 = vmatpush.msrb.mxu3 %v3585_v45  ;;  %767 = vmatpush.msra.mxu1 %v3540_v5 }
 0x4ff   :  { %726 = vmatpush.msrb.mxu3 %v3589_v47  ;;  %768 = vmatpush.msra.mxu1 %v3542_v7 }
 0x501   :  { %727 = vmatpush.msrb.mxu3 %v3595_v50  ;;  %769 = vmatpush.msra.mxu1 %v3545_v9 }
 0x575   :  { %v476_v38 = vpop.f32.mrf.mxu2 }
 0x577   :  { %v543_v35 = vpop.f32.mrf.mxu1 }
 0x578   :  { %v546_v36 = vadd.f32 %v543_v35, %v266_v34 }
 0x57a   :  { %v547_v37 = vmul.f32 %v546_v36, %v3564_v29 }
 0x57c   :  { %2954 = vtanh.f32 %v547_v37 }
 0x57d   :  { %v501_v39 = vpop.f32.mrf.mxu3 }
 0x57e   :  { %v502_v40 = vadd.f32 %v501_v39, %v476_v38 }
 0x580   :  { %v504_v41 = vadd.f32 %v3629_v57, %v502_v40 }
 0x582   :  { %v2955_v48 = vpop.eup %2954  ;;  %v505_v51 = vmul.f32 %v504_v41, %v3564_v29 }
 0x583   :  { %v549_v52 = vmul.f32 %v2955_v48, %v3564_v29 }
 0x584   :  { %2956 = vtanh.f32 %v505_v51 }
 0x585   :  { %v550_v53 = vadd.f32 %v549_v52, %v3567_v33 }
 0x587   :  { %553 = vrot.lane.b32.xlu1 %v550_v53, %s3397_s3  ;;  %v551_v2 = vmul.f32 %v550_v53, %v447_v21 }
 0x58a   :  { %v2957_v54 = vpop.eup %2956 }
 0x58b   :  { %v507_v55 = vmul.f32 %v2957_v54, %v3564_v29 }
 0x58d   :  { %v508_v56 = vadd.f32 %v507_v55, %v3567_v33 }
 0x58f   :  { %511 = vrot.lane.b32.xlu0 %v508_v56, %s3397_s3  ;;  %v509_v62 = vmul.f32 %v508_v56, %v405_v17  ;;  %v268_v17 = vpop.f32.mrf.mxu0 }
 0x590   :  { %v269_v18 = vadd.f32 %v3561_v24, %v268_v17 }
 0x5f9   :  { %v554_v58 = vpop.permute.xlu1 %553 }
 0x5fa   :  { %v556_v59 = vmul.f32 %v554_v58, %v550_v53 }
 0x5fc   :  { %558 = vrot.lane.b32.xlu0 %v556_v59, %s3398_s4 }
 0x601   :  { %v512_v60 = vpop.permute.xlu0 %511 }
 0x602   :  { %v514_v61 = vmul.f32 %v512_v60, %v508_v56 }
 0x604   :  { %516 = vrot.lane.b32.xlu2 %v514_v61, %s3398_s4  ;;  %v218_v61 = vld [vmem:[#allocation2 + $0x20] sm:$0xff] }
 0x605   :  { %270 = vmatmul.f32.gmra.mxu0 %v218_v61 }
 0x65e   :  { %v517_v63 = vpop.permute.xlu2 %516 }
 0x65f   :  { %v3674_v0 = vadd.f32 %v517_v63, %v509_v62 }
 0x661   :  { %2958 = vtanh.f32 %v3674_v0 }
 0x667   :  { %v2959_v1 = vpop.eup %2958 }
 0x668   :  { %522 = vrot.lane.b32.xlu1 %v2959_v1, %s3397_s3 }
 0x66e   :  { %v559_v3 = vpop.permute.xlu0 %558 }
 0x66f   :  { %v561_v6 = vadd.f32 %v559_v3, %v551_v2 }
 0x671   :  { %2960 = vtanh.f32 %v561_v6 }
 0x677   :  { %v2961_v8 = vpop.eup %2960 }
 0x678   :  { %564 = vrot.lane.b32.xlu2 %v2961_v8, %s3397_s3 }
 0x6d2   :  { %v565_v11 = vpop.permute.xlu2 %564 }
 0x6d3   :  { %v567_v12 = vmul.f32 %v565_v11, %v550_v53 }
 0x6d5   :  { %594 = vrot.lane.b32.xlu1 %v567_v12, %s3398_s4 }
 0x6da   :  { %v523_v13 = vpop.permute.xlu1 %522 }
 0x6db   :  { %v525_v14 = vmul.f32 %v523_v13, %v508_v56 }
 0x6dd   :  { %569 = vrot.lane.b32.xlu0 %v525_v14, %s3398_s4 }
 0x747   :  { %v595_v15 = vpop.permute.xlu1 %594 }
 0x748   :  { %2854 = vmatmul.msk.f32.vlgmr.msra.gmra.mxu3 %vm299_vm3, %v595_v15  ;;  %2855 = vmatmul.msk.f32.vlgmr.msrb.gmra.mxu1 %vm299_vm3, %v595_v15 }
 0x749   :  { %838 = vmatpush.msra.mxu3 %v3579_v43  ;;  %880 = vmatpush.msrb.mxu1 %v3537_v4 }
 0x74b   :  { %839 = vmatpush.msra.mxu3 %v3585_v45  ;;  %881 = vmatpush.msrb.mxu1 %v3540_v5 }
 0x74d   :  { %840 = vmatpush.msra.mxu3 %v3589_v47  ;;  %882 = vmatpush.msrb.mxu1 %v3542_v7 }
 0x74f   :  { %v570_v16 = vpop.permute.xlu0 %569  ;;  %841 = vmatpush.msra.mxu3 %v3595_v50  ;;  %883 = vmatpush.msrb.mxu1 %v3545_v9 }
 0x750   :  { %2853 = vmatmul.msk.f32.vlgmr.msra.gmra.mxu2 %vm299_vm3, %v570_v16 }
 0x751   :  { %813 = vmatpush.msra.mxu2 %v3577_v42 }
 0x753   :  { %814 = vmatpush.msra.mxu2 %v3581_v44 }
 0x755   :  { %815 = vmatpush.msra.mxu2 %v3587_v46 }
 0x757   :  { %816 = vmatpush.msra.mxu2 %v3593_v49 }
 0x7c5   :  { %v657_v19 = vpop.f32.mrf.mxu1 }
 0x7c6   :  { %v660_v20 = vadd.f32 %v657_v19, %v269_v18 }
 0x7c8   :  { %v661_v21 = vmul.f32 %v660_v20, %v3564_v29 }
 0x7ca   :  { %2962 = vtanh.f32 %v661_v21 }
 0x7cb   :  { %v615_v25 = vpop.f32.mrf.mxu3 }
 0x7d0   :  { %v2963_v22 = vpop.eup %2962 }
 0x7d1   :  { %v663_v23 = vmul.f32 %v2963_v22, %v3564_v29 }
 0x7d3   :  { %v590_v26 = vpop.f32.mrf.mxu2  ;;  %v664_v27 = vadd.f32 %v663_v23, %v3567_v33 }
 0x7d4   :  { %v616_v28 = vadd.f32 %v615_v25, %v590_v26 }
 0x7d5   :  { %667 = vrot.lane.b32.xlu0 %v664_v27, %s3397_s3  ;;  %v665_v40 = vmul.f32 %v664_v27, %v561_v6 }
 0x7d6   :  { %v618_v30 = vadd.f32 %v3629_v57, %v616_v28 }
 0x7d8   :  { %v619_v31 = vmul.f32 %v618_v30, %v3564_v29 }
 0x7da   :  { %2964 = vtanh.f32 %v619_v31 }
 0x7e0   :  { %v2965_v32 = vpop.eup %2964 }
 0x7e1   :  { %v621_v34 = vmul.f32 %v2965_v32, %v3564_v29 }
 0x7e3   :  { %v622_v35 = vadd.f32 %v621_v34, %v3567_v33 }
 0x7e5   :  { %625 = vrot.lane.b32.xlu2 %v622_v35, %s3397_s3  ;;  %v623_v52 = vmul.f32 %v622_v35, %v3674_v0  ;;  %v271_v0 = vpop.f32.mrf.mxu0 }
 0x7e6   :  { %v272_v1 = vadd.f32 %v3561_v24, %v271_v0 }
 0x83f   :  { %v626_v36 = vpop.permute.xlu2 %625 }
 0x840   :  { %v628_v37 = vmul.f32 %v626_v36, %v622_v35 }
 0x842   :  { %630 = vrot.lane.b32.xlu1 %v628_v37, %s3398_s4 }
 0x847   :  { %v668_v38 = vpop.permute.xlu0 %667 }
 0x848   :  { %v670_v39 = vmul.f32 %v668_v38, %v664_v27 }
 0x84a   :  { %672 = vrot.lane.b32.xlu2 %v670_v39, %s3398_s4 }
 0x8a4   :  { %v673_v41 = vpop.permute.xlu2 %672 }
 0x8a5   :  { %v675_v48 = vadd.f32 %v673_v41, %v665_v40 }
 0x8a7   :  { %2966 = vtanh.f32 %v675_v48 }
 0x8ad   :  { %v2967_v51 = vpop.eup %2966 }
 0x8ae   :  { %678 = vrot.lane.b32.xlu1 %v2967_v51, %s3397_s3 }
 0x8b4   :  { %v631_v53 = vpop.permute.xlu1 %630 }
 0x8b5   :  { %v633_v54 = vadd.f32 %v631_v53, %v623_v52 }
 0x8b7   :  { %2968 = vtanh.f32 %v633_v54 }
 0x8bd   :  { %v2969_v55 = vpop.eup %2968 }
 0x8be   :  { %636 = vrot.lane.b32.xlu0 %v2969_v55, %s3397_s3 }
 0x920   :  { %v679_v56 = vpop.permute.xlu1 %678 }
 0x921   :  { %v681_v58 = vmul.f32 %v679_v56, %v664_v27 }
 0x923   :  { %708 = vrot.lane.b32.xlu0 %v681_v58, %s3398_s4 }
 0x930   :  { %v637_v59 = vpop.permute.xlu0 %636 }
 0x931   :  { %v639_v60 = vmul.f32 %v637_v59, %v622_v35  ;;  %v219_v35 = vld [vmem:[#allocation2 + $0x28] sm:$0xff] }
 0x932   :  { %273 = vmatmul.f32.gmra.mxu0 %v219_v35 }
 0x933   :  { %683 = vrot.lane.b32.xlu2 %v639_v60, %s3398_s4 }
 0x98d   :  { %v684_v62 = vpop.permute.xlu2 %683 }
 0x98e   :  { %2856 = vmatmul.msk.f32.vlgmr.msrb.gmra.mxu2 %vm299_vm3, %v684_v62 }
 0x98f   :  { %927 = vmatpush.msrb.mxu2 %v3577_v42 }
 0x991   :  { %928 = vmatpush.msrb.mxu2 %v3581_v44 }
 0x993   :  { %929 = vmatpush.msrb.mxu2 %v3587_v46 }
 0x995   :  { %v709_v63 = vpop.permute.xlu0 %708  ;;  %930 = vmatpush.msrb.mxu2 %v3593_v49 }
 0x996   :  { %2857 = vmatmul.msk.f32.vlgmr.msrb.gmra.mxu3 %vm299_vm3, %v709_v63  ;;  %2858 = vmatmul.msk.f32.vlgmr.msra.gmra.mxu1 %vm299_vm3, %v709_v63 }
 0x997   :  { %952 = vmatpush.msrb.mxu3 %v3579_v43  ;;  %994 = vmatpush.msra.mxu1 %v3537_v4 }
 0x999   :  { %953 = vmatpush.msrb.mxu3 %v3585_v45  ;;  %995 = vmatpush.msra.mxu1 %v3540_v5 }
 0x99b   :  { %954 = vmatpush.msrb.mxu3 %v3589_v47  ;;  %996 = vmatpush.msra.mxu1 %v3542_v7 }
 0x99d   :  { %955 = vmatpush.msrb.mxu3 %v3595_v50  ;;  %997 = vmatpush.msra.mxu1 %v3545_v9 }
 0xa11   :  { %v704_v8 = vpop.f32.mrf.mxu2 }
 0xa13   :  { %v771_v2 = vpop.f32.mrf.mxu1 }
 0xa14   :  { %v774_v3 = vadd.f32 %v771_v2, %v272_v1 }
 0xa16   :  { %v775_v6 = vmul.f32 %v774_v3, %v3564_v29 }
 0xa18   :  { %2970 = vtanh.f32 %v775_v6 }
 0xa19   :  { %v729_v10 = vpop.f32.mrf.mxu3 }
 0xa1a   :  { %v730_v11 = vadd.f32 %v729_v10, %v704_v8 }
 0xa1c   :  { %v732_v12 = vadd.f32 %v3629_v57, %v730_v11 }
 0xa1e   :  { %v2971_v13 = vpop.eup %2970  ;;  %v733_v14 = vmul.f32 %v732_v12, %v3564_v29 }
 0xa1f   :  { %v777_v15 = vmul.f32 %v2971_v13, %v3564_v29 }
 0xa20   :  { %2972 = vtanh.f32 %v733_v14 }
 0xa21   :  { %v778_v16 = vadd.f32 %v777_v15, %v3567_v33 }
 0xa23   :  { %781 = vrot.lane.b32.xlu2 %v778_v16, %s3397_s3  ;;  %v779_v25 = vmul.f32 %v778_v16, %v675_v48 }
 0xa26   :  { %v2973_v17 = vpop.eup %2972 }
 0xa27   :  { %v735_v18 = vmul.f32 %v2973_v17, %v3564_v29  ;;  %v220_v17 = vld [vmem:[#allocation2 + $0x30] sm:$0xff] }
 0xa28   :  { %276 = vmatmul.f32.gmra.mxu0 %v220_v17 }
 0xa29   :  { %v736_v19 = vadd.f32 %v735_v18, %v3567_v33 }
 0xa2b   :  { %739 = vrot.lane.b32.xlu1 %v736_v19, %s3397_s3  ;;  %v737_v30 = vmul.f32 %v736_v19, %v633_v54 }
 0xa7d   :  { %v782_v20 = vpop.permute.xlu2 %781 }
 0xa7e   :  { %v784_v21 = vmul.f32 %v782_v20, %v778_v16 }
 0xa80   :  { %786 = vrot.lane.b32.xlu1 %v784_v21, %s3398_s4 }
 0xa9d   :  { %v740_v22 = vpop.permute.xlu1 %739 }
 0xa9e   :  { %v742_v23 = vmul.f32 %v740_v22, %v736_v19 }
 0xaa0   :  { %744 = vrot.lane.b32.xlu0 %v742_v23, %s3398_s4 }
 0xaf2   :  { %v787_v26 = vpop.permute.xlu1 %786 }
 0xaf3   :  { %v789_v27 = vadd.f32 %v787_v26, %v779_v25 }
 0xaf5   :  { %2974 = vtanh.f32 %v789_v27 }
 0xafb   :  { %v2975_v28 = vpop.eup %2974 }
 0xafc   :  { %792 = vrot.lane.b32.xlu0 %v2975_v28, %s3397_s3 }
 0xb12   :  { %v745_v31 = vpop.permute.xlu0 %744 }
 0xb13   :  { %v747_v32 = vadd.f32 %v745_v31, %v737_v30 }
 0xb15   :  { %2976 = vtanh.f32 %v747_v32 }
 0xb1b   :  { %v2977_v34 = vpop.eup %2976 }
 0xb1c   :  { %750 = vrot.lane.b32.xlu2 %v2977_v34, %s3397_s3 }
 0xb6e   :  { %v793_v36 = vpop.permute.xlu0 %792 }
 0xb6f   :  { %v795_v37 = vmul.f32 %v793_v36, %v778_v16 }
 0xb71   :  { %822 = vrot.lane.b32.xlu2 %v795_v37, %s3398_s4 }
 0xb76   :  { %v751_v38 = vpop.permute.xlu2 %750 }
 0xb77   :  { %v753_v39 = vmul.f32 %v751_v38, %v736_v19 }
 0xb79   :  { %797 = vrot.lane.b32.xlu1 %v753_v39, %s3398_s4 }
 0xbcb   :  { %v823_v40 = vpop.permute.xlu2 %822 }
 0xbcc   :  { %2860 = vmatmul.msk.f32.vlgmr.msra.gmra.mxu3 %vm299_vm3, %v823_v40  ;;  %2861 = vmatmul.msk.f32.vlgmr.msrb.gmra.mxu1 %vm299_vm3, %v823_v40 }
 0xbcd   :  { %1066 = vmatpush.msra.mxu3 %v3579_v43  ;;  %1108 = vmatpush.msrb.mxu1 %v3537_v4  ;;  %v274_v4 = vpop.f32.mrf.mxu0 }
 0xbcf   :  { %1067 = vmatpush.msra.mxu3 %v3585_v45  ;;  %1109 = vmatpush.msrb.mxu1 %v3540_v5  ;;  %v275_v5 = vadd.f32 %v3561_v24, %v274_v4 }
 0xbd1   :  { %1068 = vmatpush.msra.mxu3 %v3589_v47  ;;  %1110 = vmatpush.msrb.mxu1 %v3542_v7 }
 0xbd3   :  { %1069 = vmatpush.msra.mxu3 %v3595_v50  ;;  %1111 = vmatpush.msrb.mxu1 %v3545_v9 }
 0xbd5   :  { %v277_v22 = vpop.f32.mrf.mxu0 }
 0xbeb   :  { %v798_v41 = vpop.permute.xlu1 %797 }
 0xbec   :  { %2859 = vmatmul.msk.f32.vlgmr.msra.gmra.mxu2 %vm299_vm3, %v798_v41 }
 0xbed   :  { %1041 = vmatpush.msra.mxu2 %v3577_v42 }
 0xbef   :  { %1042 = vmatpush.msra.mxu2 %v3581_v44 }
 0xbf1   :  { %1043 = vmatpush.msra.mxu2 %v3587_v46 }
 0xbf3   :  { %1044 = vmatpush.msra.mxu2 %v3593_v49 }
 0xc49   :  { %v885_v48 = vpop.f32.mrf.mxu1 }
 0xc4a   :  { %v888_v7 = vadd.f32 %v885_v48, %v275_v5 }
 0xc4c   :  { %v889_v51 = vmul.f32 %v888_v7, %v3564_v29 }
 0xc4e   :  { %2978 = vtanh.f32 %v889_v51 }
 0xc4f   :  { %v843_v54 = vpop.f32.mrf.mxu3 }
 0xc54   :  { %v2979_v9 = vpop.eup %2978 }
 0xc55   :  { %v891_v52 = vmul.f32 %v2979_v9, %v3564_v29  ;;  %v3801_v9 = vld [vmem:[#allocation2 + $0x38] sm:$0xff] }
 0xc56   :  { %279 = vmatmul.f32.gmra.mxu0 %v3801_v9 }
 0xc57   :  { %v892_v53 = vadd.f32 %v891_v52, %v3567_v33 }
 0xc59   :  { %895 = vrot.lane.b32.xlu1 %v892_v53, %s3397_s3  ;;  %v893_v3 = vmul.f32 %v892_v53, %v789_v27 }
 0xc6f   :  { %v818_v55 = vpop.f32.mrf.mxu2 }
 0xc70   :  { %v844_v56 = vadd.f32 %v843_v54, %v818_v55 }
 0xc72   :  { %v846_v58 = vadd.f32 %v3629_v57, %v844_v56 }
 0xc74   :  { %v847_v59 = vmul.f32 %v846_v58, %v3564_v29 }
 0xc76   :  { %2980 = vtanh.f32 %v847_v59 }
 0xc7c   :  { %v2981_v60 = vpop.eup %2980 }
 0xc7d   :  { %v849_v61 = vmul.f32 %v2981_v60, %v3564_v29 }
 0xc7f   :  { %v850_v62 = vadd.f32 %v849_v61, %v3567_v33 }
 0xc81   :  { %853 = vrot.lane.b32.xlu0 %v850_v62, %s3397_s3  ;;  %v851_v11 = vmul.f32 %v850_v62, %v747_v32 }
 0xccb   :  { %v896_v63 = vpop.permute.xlu1 %895 }
 0xccc   :  { %v898_v0 = vmul.f32 %v896_v63, %v892_v53 }
 0xcce   :  { %900 = vrot.lane.b32.xlu0 %v898_v0, %s3398_s4 }
 0xcd3   :  { %v280_v56 = vpop.f32.mrf.mxu0 }
 0xcd4   :  { %v281_v58 = vadd.f32 %v3561_v24, %v280_v56 }
 0xcf3   :  { %v854_v1 = vpop.permute.xlu0 %853 }
 0xcf4   :  { %v856_v2 = vmul.f32 %v854_v1, %v850_v62 }
 0xcf6   :  { %858 = vrot.lane.b32.xlu2 %v856_v2, %s3398_s4 }
 0xd40   :  { %v901_v6 = vpop.permute.xlu0 %900 }
 0xd41   :  { %v903_v8 = vadd.f32 %v901_v6, %v893_v3 }
 0xd43   :  { %2982 = vtanh.f32 %v903_v8 }
 0xd49   :  { %v2983_v10 = vpop.eup %2982 }
 0xd4a   :  { %906 = vrot.lane.b32.xlu2 %v2983_v10, %s3397_s3 }
 0xd50   :  { %v859_v12 = vpop.permute.xlu2 %858 }
 0xd51   :  { %v861_v13 = vadd.f32 %v859_v12, %v851_v11 }
 0xd53   :  { %2984 = vtanh.f32 %v861_v13 }
 0xd59   :  { %v2985_v14 = vpop.eup %2984 }
 0xd5a   :  { %864 = vrot.lane.b32.xlu1 %v2985_v14, %s3397_s3 }
 0xda4   :  { %v907_v15 = vpop.permute.xlu2 %906 }
 0xda5   :  { %v909_v16 = vmul.f32 %v907_v15, %v892_v53 }
 0xda7   :  { %936 = vrot.lane.b32.xlu1 %v909_v16, %s3398_s4 }
 0xdcc   :  { %v865_v18 = vpop.permute.xlu1 %864 }
 0xdcd   :  { %v867_v19 = vmul.f32 %v865_v18, %v850_v62 }
 0xdcf   :  { %911 = vrot.lane.b32.xlu0 %v867_v19, %s3398_s4 }
 0xe19   :  { %v937_v20 = vpop.permute.xlu1 %936 }
 0xe1a   :  { %2863 = vmatmul.msk.f32.vlgmr.msrb.gmra.mxu3 %vm299_vm3, %v937_v20  ;;  %2864 = vmatmul.msk.f32.vlgmr.msra.gmra.mxu1 %vm299_vm3, %v937_v20 }
 0xe1b   :  { %1180 = vmatpush.msrb.mxu3 %v3579_v43  ;;  %v278_v43 = vadd.f32 %v3561_v24, %v277_v22 }
 0xe1d   :  { %1181 = vmatpush.msrb.mxu3 %v3585_v45 }
 0xe1f   :  { %1182 = vmatpush.msrb.mxu3 %v3589_v47 }
 0xe21   :  { %1183 = vmatpush.msrb.mxu3 %v3595_v50 }
 0xe41   :  { %v912_v21 = vpop.permute.xlu0 %911 }
 0xe42   :  { %2862 = vmatmul.msk.f32.vlgmr.msrb.gmra.mxu2 %vm299_vm3, %v912_v21 }
 0xe43   :  { %1155 = vmatpush.msrb.mxu2 %v3577_v42 }
 0xe45   :  { %1156 = vmatpush.msrb.mxu2 %v3581_v44 }
 0xe47   :  { %1157 = vmatpush.msrb.mxu2 %v3587_v46 }
 0xe49   :  { %1158 = vmatpush.msrb.mxu2 %v3593_v49 }
 0xe97   :  { %v999_v23 = vpop.f32.mrf.mxu1 }
 0xe98   :  { %v1002_v45 = vadd.f32 %v999_v23, %v278_v43 }
 0xe9a   :  { %v1003_v47 = vmul.f32 %v1002_v45, %v3564_v29 }
 0xe9c   :  { %2986 = vtanh.f32 %v1003_v47  ;;  %v1255_v47 = vld [vmem:[#allocation11 + $0x78] sm:$0xff] }
 0xe9d   :  { %v957_v42 = vpop.f32.mrf.mxu3  ;;  %1260 = vmatpush.msrb.mxu0 %v1255_v47  ;;  %v3897_v47 = vld [vmem:[#allocation16 + $0x10] sm:$0xff] }
 0xea2   :  { %v2987_v50 = vpop.eup %2986 }
 0xea3   :  { %v1005_v25 = vmul.f32 %v2987_v50, %v3564_v29  ;;  %v1254_v50 = vld [vmem:[#allocation11 + $0x70] sm:$0xff] }
 0xea4   :  { %1261 = vmatpush.msrb.mxu0 %v1254_v50  ;;  %v3901_v50 = vld [vmem:[#allocation16 + $0x8] sm:$0xff] }
 0xea5   :  { %v1006_v26 = vadd.f32 %v1005_v25, %v3567_v33  ;;  %v1253_v25 = vld [vmem:[#allocation11 + $0x68] sm:$0xff] }
 0xea6   :  { %1262 = vmatpush.msrb.mxu0 %v1253_v25  ;;  %v3905_v25 = vld [vmem:[#allocation16] sm:$0xff] }
 0xea7   :  { %1009 = vrot.lane.b32.xlu0 %v1006_v26, %s3397_s3  ;;  %v1007_v37 = vmul.f32 %v1006_v26, %v903_v8 }
 0xec5   :  { %v932_v44 = vpop.f32.mrf.mxu2 }
 0xec6   :  { %v958_v46 = vadd.f32 %v957_v42, %v932_v44  ;;  %v3834_v42 = vld [vmem:[#allocation13 + $0x18] sm:$0xff]  ;;  %v3837_v44 = vld [vmem:[#allocation13 + $0x10] sm:$0xff] }
 0xec7   :  { %1292 = vmatpush.msra.mxu1 %v3834_v42 }
 0xec8   :  { %v960_v49 = vadd.f32 %v3629_v57, %v958_v46  ;;  %v1251_v46 = vld [vmem:[#allocation11 + $0x58] sm:$0xff] }
 0xec9   :  { %1293 = vmatpush.msra.mxu1 %v3837_v44 }
 0xeca   :  { %v961_v27 = vmul.f32 %v960_v49, %v3564_v29  ;;  %v3839_v49 = vld [vmem:[#allocation13 + $0x8] sm:$0xff] }
 0xecb   :  { %1294 = vmatpush.msra.mxu1 %v3839_v49 }
 0xecc   :  { %2988 = vtanh.f32 %v961_v27  ;;  %v1250_v27 = vld [vmem:[#allocation11 + $0x50] sm:$0xff] }
 0xed2   :  { %v2989_v28 = vpop.eup %2988 }
 0xed3   :  { %v963_v30 = vmul.f32 %v2989_v28, %v3564_v29  ;;  %v3842_v28 = vld [vmem:[#allocation13] sm:$0xff] }
 0xed4   :  { %1295 = vmatpush.msra.mxu1 %v3842_v28 }
 0xed5   :  { %v964_v31 = vadd.f32 %v963_v30, %v3567_v33  ;;  %v1249_v30 = vld [vmem:[#allocation11 + $0x48] sm:$0xff] }
 0xed7   :  { %967 = vrot.lane.b32.xlu2 %v964_v31, %s3397_s3  ;;  %v965_v41 = vmul.f32 %v964_v31, %v861_v13 }
 0xf19   :  { %v1010_v32 = vpop.permute.xlu0 %1009 }
 0xf1a   :  { %v1012_v34 = vmul.f32 %v1010_v32, %v1006_v26  ;;  %v1247_v32 = vld [vmem:[#allocation11 + $0x38] sm:$0xff] }
 0xf1c   :  { %1014 = vrot.lane.b32.xlu2 %v1012_v34, %s3398_s4  ;;  %v1246_v34 = vld [vmem:[#allocation11 + $0x30] sm:$0xff] }
 0xf31   :  { %v968_v35 = vpop.permute.xlu2 %967 }
 0xf32   :  { %v970_v36 = vmul.f32 %v968_v35, %v964_v31  ;;  %v1245_v35 = vld [vmem:[#allocation11 + $0x28] sm:$0xff] }
 0xf34   :  { %972 = vrot.lane.b32.xlu1 %v970_v36, %s3398_s4  ;;  %v1244_v36 = vld [vmem:[#allocation11 + $0x20] sm:$0xff] }
 0xf76   :  { %v1015_v38 = vpop.permute.xlu2 %1014 }
 0xf77   :  { %v1017_v39 = vadd.f32 %v1015_v38, %v1007_v37  ;;  %v1243_v37 = vld [vmem:[#allocation11 + $0x18] sm:$0xff]  ;;  %v1242_v38 = vld [vmem:[#allocation11 + $0x10] sm:$0xff] }
 0xf79   :  { %2990 = vtanh.f32 %v1017_v39 }
 0xf7f   :  { %v2991_v40 = vpop.eup %2990 }
 0xf80   :  { %1020 = vrot.lane.b32.xlu1 %v2991_v40, %s3397_s3  ;;  %v1240_v40 = vld [vmem:[#allocation11] sm:$0xff] }
 0xfa6   :  { %v973_v4 = vpop.permute.xlu1 %972 }
 0xfa7   :  { %v975_v5 = vadd.f32 %v973_v4, %v965_v41 }
 0xfa9   :  { %2992 = vtanh.f32 %v975_v5 }
 0xfaf   :  { %v2993_v48 = vpop.eup %2992 }
 0xfb0   :  { %978 = vrot.lane.b32.xlu0 %v2993_v48, %s3397_s3 }
 0xff2   :  { %v1021_v7 = vpop.permute.xlu1 %1020 }
 0xff3   :  { %v1023_v51 = vmul.f32 %v1021_v7, %v1006_v26  ;;  %v1252_v26 = vld [vmem:[#allocation11 + $0x60] sm:$0xff] }
 0xff4   :  { %1263 = vmatpush.msrb.mxu0 %v1252_v26  ;;  %v2940_v7 = vld [vmem:[%s4418_s9] ss:$0 sm:$0xff] }
 0xff5   :  { %1050 = vrot.lane.b32.xlu0 %v1023_v51, %s3398_s4 }
 0xff6   :  { %1264 = vmatpush.msrb.mxu0 %v1251_v46 }
 0xff8   :  { %1265 = vmatpush.msrb.mxu0 %v1250_v27  ;;  %v3917_v27 = vld [vmem:[%s4421_s12] ss:$0 sm:$0xff] }
 0xffa   :  { %1266 = vmatpush.msrb.mxu0 %v1249_v30 }
0x1022   :  { %v979_v52 = vpop.permute.xlu0 %978 }
0x1023   :  { %v981_v53 = vmul.f32 %v979_v52, %v964_v31  ;;  %v1248_v31 = vld [vmem:[#allocation11 + $0x40] sm:$0xff] }
0x1024   :  { %1267 = vmatpush.msrb.mxu0 %v1248_v31 }
0x1025   :  { %1025 = vrot.lane.b32.xlu2 %v981_v53, %s3398_s4 }
0x1026   :  { %1268 = vmatpush.msrb.mxu0 %v1247_v32 }
0x1028   :  { %1269 = vmatpush.msrb.mxu0 %v1246_v34 }
0x102a   :  { %1270 = vmatpush.msrb.mxu0 %v1245_v35 }
0x102c   :  { %1271 = vmatpush.msrb.mxu0 %v1244_v36 }
0x102e   :  { %1272 = vmatpush.msrb.mxu0 %v1243_v37 }
0x1030   :  { %1273 = vmatpush.msrb.mxu0 %v1242_v38 }
0x1067   :  { %v1051_v54 = vpop.permute.xlu0 %1050 }
0x1068   :  { %2866 = vmatmul.msk.f32.vlgmr.msra.gmra.mxu3 %vm299_vm3, %v1051_v54  ;;  %2867 = vmatmul.msk.f32.vlgmr.msrb.gmra.mxu1 %vm299_vm3, %v1051_v54 }
0x107f   :  { %v1026_v55 = vpop.permute.xlu2 %1025 }
0x1080   :  { %2865 = vmatmul.msk.f32.vlgmr.msra.gmra.mxu2 %vm299_vm3, %v1026_v55 }
0x10e5   :  { %v1113_v59 = vpop.f32.mrf.mxu1 }
0x10e6   :  { %v1116_v60 = vadd.f32 %v1113_v59, %v281_v58 }
0x10e8   :  { %v1117_v61 = vmul.f32 %v1116_v60, %v3564_v29 }
0x10ea   :  { %2994 = vtanh.f32 %v1117_v61 }
0x10eb   :  { %v1071_v1 = vpop.f32.mrf.mxu3 }
0x10f0   :  { %v2995_v62 = vpop.eup %2994 }
0x10f1   :  { %v1119_v63 = vmul.f32 %v2995_v62, %v3564_v29 }
0x10f3   :  { %v1120_v0 = vadd.f32 %v1119_v63, %v3567_v33 }
0x10f5   :  { %1123 = vrot.lane.b32.xlu2 %v1120_v0, %s3397_s3  ;;  %v1121_v16 = vmul.f32 %v1120_v0, %v1017_v39  ;;  %v1241_v39 = vld [vmem:[#allocation11 + $0x8] sm:$0xff] }
0x10f6   :  { %1274 = vmatpush.msrb.mxu0 %v1241_v39 }
0x10f8   :  { %1275 = vmatpush.msrb.mxu0 %v1240_v40 }
0x10f9   :  { %1276 = vmatmul.f32.vlgmr.msrb.gmra.mxu0 %v3801_v9 }
0x1103   :  { %v1046_v2 = vpop.f32.mrf.mxu2 }
0x1104   :  { %v1072_v3 = vadd.f32 %v1071_v1, %v1046_v2 }
0x1106   :  { %v1074_v6 = vadd.f32 %v3629_v57, %v1072_v3 }
0x1108   :  { %v1075_v8 = vmul.f32 %v1074_v6, %v3564_v29 }
0x110a   :  { %2996 = vtanh.f32 %v1075_v8 }
0x1110   :  { %v2997_v24 = vpop.eup %2996 }
0x1111   :  { %v1077_v10 = vmul.f32 %v2997_v24, %v3564_v29 }
0x1113   :  { %v3817_v11 = vadd.f32 %v1077_v10, %v3567_v33 }
0x1115   :  { %1081 = vrot.lane.b32.xlu1 %v3817_v11, %s3397_s3  ;;  %v1079_v20 = vmul.f32 %v3817_v11, %v975_v5 }
0x114f   :  { %v1124_v12 = vpop.permute.xlu2 %1123 }
0x1150   :  { %v1126_v13 = vmul.f32 %v1124_v12, %v1120_v0 }
0x1152   :  { %1128 = vrot.lane.b32.xlu1 %v1126_v13, %s3398_s4 }
0x1176   :  { %v1277_v51 = vpop.f32.mrf.mxu0 }
0x1177   :  { %v1278_v52 = vadd.f32 %v2940_v7, %v1277_v51  ;;  %v3929_v7 = vld [vmem:[#allocation17 + $0x38] sm:$0xff]  ;;  %v3931_v51 = vld [vmem:[#allocation17 + $0x30] sm:$0xff] }
0x1178   :  { %1411 = vmatpush.msrb.mxu1 %v3931_v51 }
0x1187   :  { %v1082_v14 = vpop.permute.xlu1 %1081 }
0x1188   :  { %v1084_v15 = vmul.f32 %v1082_v14, %v3817_v11 }
0x118a   :  { %1086 = vrot.lane.b32.xlu0 %v1084_v15, %s3398_s4 }
0x11c4   :  { %v1129_v17 = vpop.permute.xlu1 %1128 }
0x11c5   :  { %v3824_v18 = vadd.f32 %v1129_v17, %v1121_v16 }
0x11c7   :  { %2998 = vtanh.f32 %v3824_v18 }
0x11cd   :  { %v2999_v19 = vpop.eup %2998 }
0x11ce   :  { %1134 = vrot.lane.b32.xlu0 %v2999_v19, %s3397_s3 }
0x11fc   :  { %v1087_v21 = vpop.permute.xlu0 %1086 }
0x11fd   :  { %v3829_v22 = vadd.f32 %v1087_v21, %v1079_v20  ;;  %v3876_v20 = vld [vmem:[#allocation14 + $0x10] sm:$0xff]  ;;  %v3880_v21 = vld [vmem:[#allocation14 + $0x8] sm:$0xff] }
0x11ff   :  { %3000 = vtanh.f32 %v3829_v22 }
0x1205   :  { %v3001_v43 = vpop.eup %3000 }
0x1206   :  { %1092 = vrot.lane.b32.xlu2 %v3001_v43, %s3397_s3 }
0x1240   :  { %v1135_v23 = vpop.permute.xlu0 %1134 }
0x1241   :  { %v1137_v45 = vmul.f32 %v1135_v23, %v1120_v0 }
0x1243   :  { %1164 = vrot.lane.b32.xlu2 %v1137_v45, %s3398_s4  ;;  %v3895_v45 = vld [vmem:[#allocation16 + $0x18] sm:$0xff] }
0x1244   :  { %1339 = vmatpush.msra.mxu2 %v3895_v45 }
0x1246   :  { %1340 = vmatpush.msra.mxu2 %v3897_v47 }
0x1248   :  { %1341 = vmatpush.msra.mxu2 %v3901_v50 }
0x124a   :  { %1342 = vmatpush.msra.mxu2 %v3905_v25 }
0x1260   :  { %v1093_v41 = vpop.permute.xlu2 %1092 }
0x1261   :  { %v1095_v4 = vmul.f32 %v1093_v41, %v3817_v11 }
0x1263   :  { %1139 = vrot.lane.b32.xlu1 %v1095_v4, %s3398_s4 }
0x129d   :  { %v1165_v5 = vpop.permute.xlu2 %1164 }
0x129e   :  { %2869 = vmatmul.msk.f32.vlgmr.msrb.gmra.mxu3 %vm299_vm3, %v1165_v5  ;;  %2870 = vmatmul.msk.f32.vlgmr.msra.gmra.mxu1 %vm299_vm3, %v1165_v5 }
0x12d5   :  { %v1140_v48 = vpop.permute.xlu1 %1139 }
0x12d6   :  { %2868 = vmatmul.msk.f32.vlgmr.msrb.gmra.mxu2 %vm299_vm3, %v1140_v48 }
0x12d7   :  { %1431 = vmatpush.msrb.mxu2 %v3929_v7 }
0x131b   :  { %v1297_v53 = vpop.f32.mrf.mxu1 }
0x131c   :  { %v1300_v54 = vadd.f32 %v1297_v53, %v1278_v52  ;;  %v3933_v52 = vld [vmem:[#allocation17 + $0x28] sm:$0xff]  ;;  %v3937_v53 = vld [vmem:[#allocation17 + $0x20] sm:$0xff] }
0x131d   :  { %1432 = vmatpush.msrb.mxu2 %v3933_v52  ;;  %1412 = vmatpush.msrb.mxu1 %v3937_v53 }
0x131e   :  { %v1301_v55 = vmul.f32 %v1300_v54, %v3564_v29  ;;  %v3939_v54 = vld [vmem:[#allocation17 + $0x18] sm:$0xff] }
0x131f   :  { %1433 = vmatpush.msrb.mxu2 %v3939_v54 }
0x1320   :  { %3002 = vtanh.f32 %v1301_v55  ;;  %v3941_v55 = vld [vmem:[#allocation17 + $0x10] sm:$0xff] }
0x1321   :  { %v1185_v59 = vpop.f32.mrf.mxu3  ;;  %1413 = vmatpush.msrb.mxu1 %v3941_v55 }
0x1326   :  { %v3003_v9 = vpop.eup %3002 }
0x1327   :  { %v1303_v56 = vmul.f32 %v3003_v9, %v3564_v29  ;;  %v3946_v9 = vld [vmem:[#allocation17 + $0x8] sm:$0xff] }
0x1328   :  { %1434 = vmatpush.msrb.mxu2 %v3946_v9 }
0x1329   :  { %v1304_v58 = vadd.f32 %v1303_v56, %v3567_v33  ;;  %v3948_v56 = vld [vmem:[#allocation17] sm:$0xff] }
0x132a   :  { %1414 = vmatpush.msrb.mxu1 %v3948_v56 }
0x132b   :  { %1307 = vrot.lane.b32.xlu1 %v1304_v58, %s3397_s3 }
0x132c   :  { %1494 = vmatpush.msra.mxu1 %v3895_v45 }
0x132e   :  { %1495 = vmatpush.msra.mxu1 %v3897_v47 }
0x1330   :  { %1496 = vmatpush.msra.mxu1 %v3901_v50 }
0x1332   :  { %1497 = vmatpush.msra.mxu1 %v3905_v25 }
0x1359   :  { %v1160_v60 = vpop.f32.mrf.mxu2 }
0x135a   :  { %v1186_v61 = vadd.f32 %v1185_v59, %v1160_v60 }
0x135c   :  { %v1188_v62 = vadd.f32 %v3629_v57, %v1186_v61  ;;  %v1305_v57 = vmul.f32 %v1304_v58, %v3824_v18  ;;  %v3874_v18 = vld [vmem:[#allocation14 + $0x18] sm:$0xff]  ;;  %v1234_v61 = vld [vmem:[%s4423_s14] sm:$0x3] }
0x135d   :  { %1364 = vmatpush.msra.mxu3 %v3874_v18  ;;  %1675 = vmatpush.msra.mxu0 %v3874_v18 }
0x135e   :  { %v1189_v63 = vmul.f32 %v1188_v62, %v3564_v29  ;;  %v3988_v62 = vperm.slane %v1234_v61, 0 }
0x135f   :  { %1365 = vmatpush.msra.mxu3 %v3876_v20  ;;  %1676 = vmatpush.msra.mxu0 %v3876_v20 }
0x1360   :  { %3004 = vtanh.f32 %v1189_v63 }
0x1361   :  { %1366 = vmatpush.msra.mxu3 %v3880_v21  ;;  %1677 = vmatpush.msra.mxu0 %v3880_v21 }
0x1366   :  { %v3005_v0 = vpop.eup %3004 }
0x1367   :  { %v1191_v1 = vmul.f32 %v3005_v0, %v3564_v29 }
0x1369   :  { %v1192_v2 = vadd.f32 %v1191_v1, %v3567_v33  ;;  %v3991_v1 = vperm.slane %v1234_v61, 1 }
0x136b   :  { %1195 = vrot.lane.b32.xlu0 %v1192_v2, %s3397_s3  ;;  %v1193_v13 = vmul.f32 %v1192_v2, %v3829_v22  ;;  %v3884_v22 = vld [vmem:[#allocation14] sm:$0xff] }
0x136c   :  { %1367 = vmatpush.msra.mxu3 %v3884_v22  ;;  %1678 = vmatpush.msra.mxu0 %v3884_v22 }
0x136e   :  { %1452 = vmatpush.msrb.mxu3 %v3834_v42  ;;  %1806 = vmatpush.msrb.mxu0 %v3895_v45 }
0x1370   :  { %1453 = vmatpush.msrb.mxu3 %v3837_v44  ;;  %1807 = vmatpush.msrb.mxu0 %v3897_v47 }
0x1372   :  { %1454 = vmatpush.msrb.mxu3 %v3839_v49  ;;  %1808 = vmatpush.msrb.mxu0 %v3901_v50 }
0x1374   :  { %1455 = vmatpush.msrb.mxu3 %v3842_v28  ;;  %1809 = vmatpush.msrb.mxu0 %v3905_v25 }
0x139d   :  { %v1308_v3 = vpop.permute.xlu1 %1307 }
0x139e   :  { %v1310_v6 = vmul.f32 %v1308_v3, %v1304_v58 }
0x13a0   :  { %1312 = vrot.lane.b32.xlu0 %v1310_v6, %s3398_s4 }
0x13dd   :  { %v1196_v8 = vpop.permute.xlu0 %1195 }
0x13de   :  { %v1198_v24 = vmul.f32 %v1196_v8, %v1192_v2 }
0x13e0   :  { %1200 = vrot.lane.b32.xlu2 %v1198_v24, %s3398_s4 }
0x1412   :  { %v1313_v10 = vpop.permute.xlu0 %1312 }
0x1413   :  { %v3867_v11 = vadd.f32 %v1313_v10, %v1305_v57 }
0x1415   :  { %3006 = vtanh.f32 %v3867_v11 }
0x141b   :  { %v3007_v12 = vpop.eup %3006 }
0x141c   :  { %1318 = vrot.lane.b32.xlu2 %v3007_v12, %s3397_s3 }
0x143a   :  { %v1201_v14 = vpop.permute.xlu2 %1200 }
0x143b   :  { %v1203_v15 = vadd.f32 %v1201_v14, %v1193_v13 }
0x143d   :  { %3008 = vtanh.f32 %v1203_v15 }
0x1443   :  { %v3009_v16 = vpop.eup %3008 }
0x1444   :  { %1206 = vrot.lane.b32.xlu1 %v3009_v16, %s3397_s3 }
0x1476   :  { %v1319_v17 = vpop.permute.xlu2 %1318 }
0x1477   :  { %v1321_v19 = vmul.f32 %v1319_v17, %v1304_v58 }
0x1479   :  { %1348 = vrot.lane.b32.xlu1 %v1321_v19, %s3398_s4 }
0x14b6   :  { %v1207_v43 = vpop.permute.xlu1 %1206 }
0x14b7   :  { %v1209_v23 = vmul.f32 %v1207_v43, %v1192_v2 }
0x14b9   :  { %1323 = vrot.lane.b32.xlu0 %v1209_v23, %s3398_s4 }
0x14eb   :  { %v1349_v26 = vpop.permute.xlu1 %1348 }
0x14ec   :  { %2872 = vmatmul.msk.f32.vlgmr.msra.gmra.mxu3 %vm299_vm3, %v1349_v26 }
0x14ed   :  { %1566 = vmatpush.msra.mxu3 %v3931_v51 }
0x14ef   :  { %1567 = vmatpush.msra.mxu3 %v3937_v53 }
0x14f1   :  { %1568 = vmatpush.msra.mxu3 %v3941_v55 }
0x14f3   :  { %1569 = vmatpush.msra.mxu3 %v3948_v56 }
0x14f4   :  { %2875 = vmatmul.msk.f32.vlgmr.msrb.gmra.mxu3 %vm299_vm3, %v1349_v26 }
0x14f5   :  { %1650 = vmatpush.msrb.mxu3 %v3895_v45 }
0x14f7   :  { %1651 = vmatpush.msrb.mxu3 %v3897_v47 }
0x14f9   :  { %1652 = vmatpush.msrb.mxu3 %v3901_v50 }
0x14fb   :  { %1653 = vmatpush.msrb.mxu3 %v3905_v25 }
0x152b   :  { %v1324_v46 = vpop.permute.xlu0 %1323 }
0x152c   :  { %2871 = vmatmul.msk.f32.vlgmr.msra.gmra.mxu2 %vm299_vm3, %v1324_v46 }
0x152d   :  { %1519 = vmatpush.msra.mxu2 %v3874_v18 }
0x152f   :  { %1520 = vmatpush.msra.mxu2 %v3876_v20 }
0x1531   :  { %1521 = vmatpush.msra.mxu2 %v3880_v21 }
0x1533   :  { %1522 = vmatpush.msra.mxu2 %v3884_v22 }
0x156f   :  { %v1369_v30 = vpop.f32.mrf.mxu3 }
0x1577   :  { %v1457_v6 = vpop.f32.mrf.mxu3 }
0x15af   :  { %v1344_v31 = vpop.f32.mrf.mxu2 }
0x15b0   :  { %v1370_v32 = vadd.f32 %v1369_v30, %v1344_v31 }
0x15b2   :  { %v1372_v34 = vadd.f32 %v3917_v27, %v1370_v32 }
0x15b4   :  { %v1373_v35 = vmul.f32 %v1372_v34, %v3564_v29 }
0x15b6   :  { %3010 = vtanh.f32 %v1373_v35 }
0x15bc   :  { %v3011_v36 = vpop.eup %3010 }
0x15bd   :  { %v1375_v37 = vmul.f32 %v3011_v36, %v3564_v29 }
0x15bf   :  { %v1376_v38 = vadd.f32 %v1375_v37, %v3567_v33 }
0x15c1   :  { %1379 = vrot.lane.b32.xlu2 %v1376_v38, %s3397_s3  ;;  %v1377_v41 = vmul.f32 %v1376_v38, %v1203_v15 }
0x161b   :  { %v1380_v39 = vpop.permute.xlu2 %1379 }
0x161c   :  { %v1382_v40 = vmul.f32 %v1380_v39, %v1376_v38 }
0x161e   :  { %1384 = vrot.lane.b32.xlu0 %v1382_v40, %s3398_s4 }
0x1690   :  { %v1385_v4 = vpop.permute.xlu0 %1384 }
0x1691   :  { %v3925_v5 = vadd.f32 %v1385_v4, %v1377_v41 }
0x1693   :  { %3012 = vtanh.f32 %v3925_v5 }
0x1699   :  { %v3013_v48 = vpop.eup %3012 }
0x169a   :  { %1390 = vrot.lane.b32.xlu1 %v3013_v48, %s3397_s3 }
0x170c   :  { %v1391_v58 = vpop.permute.xlu1 %1390 }
0x170d   :  { %v1393_v59 = vmul.f32 %v1391_v58, %v1376_v38 }
0x170f   :  { %1395 = vrot.lane.b32.xlu2 %v1393_v59, %s3398_s4 }
0x1769   :  { %v1396_v60 = vpop.permute.xlu2 %1395 }
0x176a   :  { %2873 = vmatmul.msk.f32.vlgmr.msrb.gmra.mxu1 %vm299_vm3, %v1396_v60  ;;  %2874 = vmatmul.msk.f32.vlgmr.msrb.gmra.mxu2 %vm299_vm3, %v1396_v60 }
0x176b   :  { %1608 = vmatpush.msrb.mxu2 %v3834_v42  ;;  %1586 = vmatpush.msrb.mxu1 %v3929_v7 }
0x176d   :  { %1609 = vmatpush.msrb.mxu2 %v3837_v44  ;;  %1587 = vmatpush.msrb.mxu1 %v3933_v52 }
0x176f   :  { %1610 = vmatpush.msrb.mxu2 %v3839_v49  ;;  %1588 = vmatpush.msrb.mxu1 %v3939_v54 }
0x1771   :  { %1611 = vmatpush.msrb.mxu2 %v3842_v28  ;;  %1589 = vmatpush.msrb.mxu1 %v3946_v9 }
0x1772   :  { %2876 = vmatmul.msk.f32.vlgmr.msra.gmra.mxu1 %vm299_vm3, %v1396_v60 }
0x1773   :  { %1722 = vmatpush.msra.mxu1 %v3931_v51 }
0x1775   :  { %1723 = vmatpush.msra.mxu1 %v3937_v53 }
0x1777   :  { %1724 = vmatpush.msra.mxu1 %v3941_v55 }
0x1779   :  { %1725 = vmatpush.msra.mxu1 %v3948_v56 }
0x17e7   :  { %v1416_v63 = vpop.f32.mrf.mxu1 }
0x17e8   :  { %v1417_v0 = vadd.f32 %v1416_v63, %v3988_v62 }
0x17ea   :  { %1439 = vst [vmem:[#allocation19] sm:$0xff] %v1417_v0 }
0x17ed   :  { %v1436_v2 = vpop.f32.mrf.mxu2 }
0x17ee   :  { %v1437_v3 = vadd.f32 %v1436_v2, %v3991_v1 }
0x17f0   :  { %v1460_v8 = vadd.f32 %v1457_v6, %v1437_v3 }
0x17f2   :  { %v1461_v24 = vmul.f32 %v1460_v8, %v3564_v29 }
0x17f4   :  { %3014 = vtanh.f32 %v1461_v24 }
0x17fa   :  { %v3015_v57 = vpop.eup %3014 }
0x17fb   :  { %v1463_v10 = vmul.f32 %v3015_v57, %v3564_v29 }
0x17fd   :  { %v1464_v12 = vadd.f32 %v1463_v10, %v3567_v33 }
0x17ff   :  { %1467 = vrot.lane.b32.xlu0 %v1464_v12, %s3397_s3  ;;  %v1465_v15 = vmul.f32 %v1464_v12, %v3867_v11  ;;  %v1499_v11 = vpop.f32.mrf.mxu1 }
0x1871   :  { %v1468_v13 = vpop.permute.xlu0 %1467 }
0x1872   :  { %v1470_v14 = vmul.f32 %v1468_v13, %v1464_v12 }
0x1874   :  { %1472 = vrot.lane.b32.xlu1 %v1470_v14, %s3398_s4 }
0x18e6   :  { %v1473_v16 = vpop.permute.xlu1 %1472 }
0x18e7   :  { %v4000_v17 = vadd.f32 %v1473_v16, %v1465_v15 }
0x18e9   :  { %3016 = vtanh.f32 %v4000_v17 }
0x18ef   :  { %v3017_v19 = vpop.eup %3016 }
0x18f0   :  { %1478 = vrot.lane.b32.xlu2 %v3017_v19, %s3397_s3 }
0x194a   :  { %v1479_v43 = vpop.permute.xlu2 %1478 }
0x194b   :  { %v1481_v23 = vmul.f32 %v1479_v43, %v1464_v12 }
0x194d   :  { %1503 = vrot.lane.b32.xlu0 %v1481_v23, %s3398_s4 }
0x19bf   :  { %v1504_v26 = vpop.permute.xlu0 %1503 }
0x19c0   :  { %2877 = vmatmul.msk.f32.vlgmr.msra.gmra.mxu2 %vm299_vm3, %v1504_v26 }
0x19c1   :  { %1742 = vmatpush.msra.mxu2 %v3929_v7 }
0x19c3   :  { %1743 = vmatpush.msra.mxu2 %v3933_v52 }
0x19c5   :  { %1744 = vmatpush.msra.mxu2 %v3939_v54 }
0x19c7   :  { %1745 = vmatpush.msra.mxu2 %v3946_v9 }
0x19c8   :  { %2880 = vmatmul.msk.f32.vlgmr.msrb.gmra.mxu2 %vm299_vm3, %v1504_v26 }
0x19c9   :  { %1878 = vmatpush.msrb.mxu2 %v3931_v51 }
0x19cb   :  { %1879 = vmatpush.msrb.mxu2 %v3937_v53 }
0x19cd   :  { %1880 = vmatpush.msrb.mxu2 %v3941_v55 }
0x19cf   :  { %1881 = vmatpush.msrb.mxu2 %v3948_v56 }
0x1a43   :  { %v1524_v46 = vpop.f32.mrf.mxu2 }
0x1a44   :  { %v1525_v30 = vadd.f32 %v1524_v46, %v1499_v11 }
0x1a46   :  { %v1527_v31 = vadd.f32 %v3917_v27, %v1525_v30 }
0x1a48   :  { %v1528_v32 = vmul.f32 %v1527_v31, %v3564_v29 }
0x1a4a   :  { %3018 = vtanh.f32 %v1528_v32 }
0x1a4b   :  { %v1613_v61 = vpop.f32.mrf.mxu2 }
0x1a50   :  { %v3019_v34 = vpop.eup %3018 }
0x1a51   :  { %v1530_v35 = vmul.f32 %v3019_v34, %v3564_v29 }
0x1a53   :  { %v1531_v36 = vadd.f32 %v1530_v35, %v3567_v33 }
0x1a55   :  { %1534 = vrot.lane.b32.xlu1 %v1531_v36, %s3397_s3  ;;  %v1532_v39 = vmul.f32 %v1531_v36, %v3925_v5 }
0x1ac7   :  { %v1535_v37 = vpop.permute.xlu1 %1534 }
0x1ac8   :  { %v1537_v38 = vmul.f32 %v1535_v37, %v1531_v36 }
0x1aca   :  { %1539 = vrot.lane.b32.xlu2 %v1537_v38, %s3398_s4 }
0x1b24   :  { %v1540_v40 = vpop.permute.xlu2 %1539 }
0x1b25   :  { %v4022_v41 = vadd.f32 %v1540_v40, %v1532_v39 }
0x1b27   :  { %3020 = vtanh.f32 %v4022_v41 }
0x1b2d   :  { %v3021_v4 = vpop.eup %3020 }
0x1b2e   :  { %1545 = vrot.lane.b32.xlu0 %v3021_v4, %s3397_s3 }
0x1ba0   :  { %v1546_v48 = vpop.permute.xlu0 %1545 }
0x1ba1   :  { %v1548_v58 = vmul.f32 %v1546_v48, %v1531_v36 }
0x1ba3   :  { %1550 = vrot.lane.b32.xlu1 %v1548_v58, %s3398_s4 }
0x1c15   :  { %v1551_v59 = vpop.permute.xlu1 %1550 }
0x1c16   :  { %2878 = vmatmul.msk.f32.vlgmr.msra.gmra.mxu3 %vm299_vm3, %v1551_v59  ;;  %2879 = vmatmul.msk.f32.vlgmr.msrb.gmra.mxu1 %vm299_vm3, %v1551_v59 }
0x1c17   :  { %1764 = vmatpush.msra.mxu3 %v3834_v42  ;;  %1831 = vmatpush.msrb.mxu1 %v3874_v18 }
0x1c19   :  { %1765 = vmatpush.msra.mxu3 %v3837_v44  ;;  %1832 = vmatpush.msrb.mxu1 %v3876_v20 }
0x1c1b   :  { %1766 = vmatpush.msra.mxu3 %v3839_v49  ;;  %1833 = vmatpush.msrb.mxu1 %v3880_v21 }
0x1c1d   :  { %1767 = vmatpush.msra.mxu3 %v3842_v28  ;;  %1834 = vmatpush.msrb.mxu1 %v3884_v22 }
0x1c1e   :  { %2881 = vmatmul.msk.f32.vlgmr.msrb.gmra.mxu3 %vm299_vm3, %v1551_v59 }
0x1c1f   :  { %1898 = vmatpush.msrb.mxu3 %v3929_v7 }
0x1c21   :  { %1899 = vmatpush.msrb.mxu3 %v3933_v52 }
0x1c23   :  { %1900 = vmatpush.msrb.mxu3 %v3939_v54 }
0x1c25   :  { %1901 = vmatpush.msrb.mxu3 %v3946_v9 }
0x1c93   :  { %v1591_v5 = vpop.f32.mrf.mxu1 }
0x1c94   :  { %v1592_v60 = vadd.f32 %v1591_v5, %v3991_v1 }
0x1c96   :  { %v1616_v63 = vadd.f32 %v1613_v61, %v1592_v60 }
0x1c98   :  { %v1617_v0 = vmul.f32 %v1616_v63, %v3564_v29 }
0x1c99   :  { %v1571_v2 = vpop.f32.mrf.mxu3 }
0x1c9a   :  { %3022 = vtanh.f32 %v1617_v0  ;;  %v1572_v3 = vadd.f32 %v1571_v2, %v3988_v62 }
0x1c9c   :  { %1595 = vst [vmem:[#allocation19 + $0x8] sm:$0xff] %v1572_v3 }
0x1ca0   :  { %v3023_v6 = vpop.eup %3022 }
0x1ca1   :  { %v1619_v8 = vmul.f32 %v3023_v6, %v3564_v29 }
0x1ca3   :  { %v1620_v24 = vadd.f32 %v1619_v8, %v3567_v33 }
0x1ca5   :  { %1623 = vrot.lane.b32.xlu2 %v1620_v24, %s3397_s3  ;;  %v1621_v12 = vmul.f32 %v1620_v24, %v4000_v17  ;;  %v1655_v17 = vpop.f32.mrf.mxu3 }
0x1cff   :  { %v1624_v57 = vpop.permute.xlu2 %1623 }
0x1d00   :  { %v1626_v10 = vmul.f32 %v1624_v57, %v1620_v24 }
0x1d02   :  { %1628 = vrot.lane.b32.xlu0 %v1626_v10, %s3398_s4 }
0x1d74   :  { %v1629_v13 = vpop.permute.xlu0 %1628 }
0x1d75   :  { %v4050_v14 = vadd.f32 %v1629_v13, %v1621_v12 }
0x1d77   :  { %3024 = vtanh.f32 %v4050_v14 }
0x1d7d   :  { %v3025_v15 = vpop.eup %3024 }
0x1d7e   :  { %1634 = vrot.lane.b32.xlu1 %v3025_v15, %s3397_s3 }
0x1df0   :  { %v1635_v16 = vpop.permute.xlu1 %1634 }
0x1df1   :  { %v1637_v19 = vmul.f32 %v1635_v16, %v1620_v24 }
0x1df3   :  { %1659 = vrot.lane.b32.xlu2 %v1637_v19, %s3398_s4 }
0x1e4d   :  { %v1660_v43 = vpop.permute.xlu2 %1659 }
0x1e4e   :  { %2882 = vmatmul.msk.f32.vlgmr.msra.gmra.mxu0 %vm299_vm3, %v1660_v43  ;;  %2885 = vmatmul.msk.f32.vlgmr.msra.gmra.mxu3 %vm299_vm3, %v1660_v43 }
0x1e4f   :  { %1920 = vmatpush.msra.mxu0 %v3834_v42  ;;  %2034 = vmatpush.msra.mxu3 %v3931_v51 }
0x1e51   :  { %1921 = vmatpush.msra.mxu0 %v3837_v44  ;;  %2035 = vmatpush.msra.mxu3 %v3937_v53 }
0x1e53   :  { %1922 = vmatpush.msra.mxu0 %v3839_v49  ;;  %2036 = vmatpush.msra.mxu3 %v3941_v55 }
0x1e55   :  { %1923 = vmatpush.msra.mxu0 %v3842_v28  ;;  %2037 = vmatpush.msra.mxu3 %v3948_v56 }
0x1ecb   :  { %v1680_v23 = vpop.f32.mrf.mxu0 }
0x1ecc   :  { %v1681_v26 = vadd.f32 %v1680_v23, %v1655_v17 }
0x1ece   :  { %v1683_v11 = vadd.f32 %v3917_v27, %v1681_v26 }
0x1ed0   :  { %v1684_v46 = vmul.f32 %v1683_v11, %v3564_v29 }
0x1ed1   :  { %v1769_v60 = vpop.f32.mrf.mxu3 }
0x1ed2   :  { %3026 = vtanh.f32 %v1684_v46 }
0x1ed8   :  { %v3027_v30 = vpop.eup %3026 }
0x1ed9   :  { %v1686_v31 = vmul.f32 %v3027_v30, %v3564_v29 }
0x1edb   :  { %v1687_v32 = vadd.f32 %v1686_v31, %v3567_v33 }
0x1edd   :  { %1690 = vrot.lane.b32.xlu0 %v1687_v32, %s3397_s3  ;;  %v1688_v36 = vmul.f32 %v1687_v32, %v4022_v41 }
0x1f4f   :  { %v1691_v34 = vpop.permute.xlu0 %1690 }
0x1f50   :  { %v1693_v35 = vmul.f32 %v1691_v34, %v1687_v32 }
0x1f52   :  { %1695 = vrot.lane.b32.xlu1 %v1693_v35, %s3398_s4 }
0x1fc4   :  { %v1696_v37 = vpop.permute.xlu1 %1695 }
0x1fc5   :  { %v4072_v38 = vadd.f32 %v1696_v37, %v1688_v36 }
0x1fc7   :  { %3028 = vtanh.f32 %v4072_v38 }
0x1fcd   :  { %v3029_v39 = vpop.eup %3028 }
0x1fce   :  { %1701 = vrot.lane.b32.xlu2 %v3029_v39, %s3397_s3 }
0x2028   :  { %v1702_v40 = vpop.permute.xlu2 %1701 }
0x2029   :  { %v1704_v4 = vmul.f32 %v1702_v40, %v1687_v32 }
0x202b   :  { %1706 = vrot.lane.b32.xlu0 %v1704_v4, %s3398_s4 }
0x209d   :  { %v1707_v48 = vpop.permute.xlu0 %1706 }
0x209e   :  { %2883 = vmatmul.msk.f32.vlgmr.msra.gmra.mxu1 %vm299_vm3, %v1707_v48  ;;  %2884 = vmatmul.msk.f32.vlgmr.msra.gmra.mxu2 %vm299_vm3, %v1707_v48 }
0x209f   :  { %2886 = vmatmul.msk.f32.vlgmr.msrb.gmra.mxu0 %vm299_vm3, %v1707_v48  ;;  %1962 = vmatpush.msra.mxu1 %v3895_v45 }
0x20a0   :  { %1987 = vmatpush.msra.mxu2 %v3874_v18  ;;  %2054 = vmatpush.msrb.mxu0 %v3929_v7 }
0x20a1   :  { %1963 = vmatpush.msra.mxu1 %v3897_v47 }
0x20a2   :  { %1988 = vmatpush.msra.mxu2 %v3876_v20  ;;  %2055 = vmatpush.msrb.mxu0 %v3933_v52 }
0x20a3   :  { %1964 = vmatpush.msra.mxu1 %v3901_v50 }
0x20a4   :  { %1989 = vmatpush.msra.mxu2 %v3880_v21  ;;  %2056 = vmatpush.msrb.mxu0 %v3939_v54 }
0x20a5   :  { %1965 = vmatpush.msra.mxu1 %v3905_v25 }
0x20a6   :  { %1990 = vmatpush.msra.mxu2 %v3884_v22  ;;  %2057 = vmatpush.msrb.mxu0 %v3946_v9 }
0x211b   :  { %v1727_v41 = vpop.f32.mrf.mxu1 }
0x211c   :  { %v1728_v58 = vadd.f32 %v1727_v41, %v3988_v62 }
0x211e   :  { %1751 = vst [vmem:[#allocation19 + $0x10] sm:$0xff] %v1728_v58 }
0x2121   :  { %v1747_v59 = vpop.f32.mrf.mxu2 }
0x2122   :  { %v1748_v5 = vadd.f32 %v1747_v59, %v3991_v1 }
0x2124   :  { %v1772_v61 = vadd.f32 %v1769_v60, %v1748_v5 }
0x2126   :  { %v1773_v63 = vmul.f32 %v1772_v61, %v3564_v29 }
0x2128   :  { %3030 = vtanh.f32 %v1773_v63 }
0x212e   :  { %v3031_v0 = vpop.eup %3030 }
0x212f   :  { %v1775_v2 = vmul.f32 %v3031_v0, %v3564_v29 }
0x2131   :  { %v1776_v3 = vadd.f32 %v1775_v2, %v3567_v33 }
0x2133   :  { %1779 = vrot.lane.b32.xlu1 %v1776_v3, %s3397_s3  ;;  %v1777_v24 = vmul.f32 %v1776_v3, %v4050_v14  ;;  %v1811_v14 = vpop.f32.mrf.mxu0 }
0x21a5   :  { %v1780_v6 = vpop.permute.xlu1 %1779 }
0x21a6   :  { %v1782_v8 = vmul.f32 %v1780_v6, %v1776_v3 }
0x21a8   :  { %1784 = vrot.lane.b32.xlu2 %v1782_v8, %s3398_s4 }
0x2202   :  { %v1785_v57 = vpop.permute.xlu2 %1784 }
0x2203   :  { %v4100_v10 = vadd.f32 %v1785_v57, %v1777_v24 }
0x2205   :  { %3032 = vtanh.f32 %v4100_v10 }
0x220b   :  { %v3033_v12 = vpop.eup %3032 }
0x220c   :  { %1790 = vrot.lane.b32.xlu0 %v3033_v12, %s3397_s3 }
0x227e   :  { %v1791_v13 = vpop.permute.xlu0 %1790 }
0x227f   :  { %v1793_v15 = vmul.f32 %v1791_v13, %v1776_v3 }
0x2281   :  { %1815 = vrot.lane.b32.xlu1 %v1793_v15, %s3398_s4 }
0x22f3   :  { %v1816_v16 = vpop.permute.xlu1 %1815 }
0x22f4   :  { %2887 = vmatmul.msk.f32.vlgmr.msrb.gmra.mxu1 %vm299_vm3, %v1816_v16  ;;  %2890 = vmatmul.msk.f32.vlgmr.msra.gmra.mxu0 %vm299_vm3, %v1816_v16 }
0x22f5   :  { %2076 = vmatpush.msrb.mxu1 %v3834_v42  ;;  %2190 = vmatpush.msra.mxu0 %v3931_v51 }
0x22f7   :  { %2077 = vmatpush.msrb.mxu1 %v3837_v44  ;;  %2191 = vmatpush.msra.mxu0 %v3937_v53 }
0x22f9   :  { %2078 = vmatpush.msrb.mxu1 %v3839_v49  ;;  %2192 = vmatpush.msra.mxu0 %v3941_v55 }
0x22fb   :  { %2079 = vmatpush.msrb.mxu1 %v3842_v28  ;;  %2193 = vmatpush.msra.mxu0 %v3948_v56 }
0x2371   :  { %v1836_v19 = vpop.f32.mrf.mxu1  ;;  %v1925_v58 = vpop.f32.mrf.mxu0 }
0x2372   :  { %v1837_v43 = vadd.f32 %v1836_v19, %v1811_v14 }
0x2374   :  { %v1839_v17 = vadd.f32 %v3917_v27, %v1837_v43 }
0x2376   :  { %v1840_v23 = vmul.f32 %v1839_v17, %v3564_v29 }
0x2378   :  { %3034 = vtanh.f32 %v1840_v23 }
0x237e   :  { %v3035_v26 = vpop.eup %3034 }
0x237f   :  { %v1842_v11 = vmul.f32 %v3035_v26, %v3564_v29 }
0x2381   :  { %v1843_v46 = vadd.f32 %v1842_v11, %v3567_v33 }
0x2383   :  { %1846 = vrot.lane.b32.xlu2 %v1843_v46, %s3397_s3  ;;  %v1844_v32 = vmul.f32 %v1843_v46, %v4072_v38 }
0x23dd   :  { %v1847_v30 = vpop.permute.xlu2 %1846 }
0x23de   :  { %v1849_v31 = vmul.f32 %v1847_v30, %v1843_v46 }
0x23e0   :  { %1851 = vrot.lane.b32.xlu0 %v1849_v31, %s3398_s4 }
0x2452   :  { %v1852_v34 = vpop.permute.xlu0 %1851 }
0x2453   :  { %v4122_v35 = vadd.f32 %v1852_v34, %v1844_v32 }
0x2455   :  { %3036 = vtanh.f32 %v4122_v35 }
0x245b   :  { %v3037_v36 = vpop.eup %3036 }
0x245c   :  { %1857 = vrot.lane.b32.xlu1 %v3037_v36, %s3397_s3 }
0x24ce   :  { %v1858_v37 = vpop.permute.xlu1 %1857 }
0x24cf   :  { %v1860_v39 = vmul.f32 %v1858_v37, %v1843_v46 }
0x24d1   :  { %1862 = vrot.lane.b32.xlu2 %v1860_v39, %s3398_s4 }
0x252b   :  { %v1863_v40 = vpop.permute.xlu2 %1862 }
0x252c   :  { %2888 = vmatmul.msk.f32.vlgmr.msrb.gmra.mxu2 %vm299_vm3, %v1863_v40  ;;  %2889 = vmatmul.msk.f32.vlgmr.msrb.gmra.mxu3 %vm299_vm3, %v1863_v40 }
0x252d   :  { %2891 = vmatmul.msk.f32.vlgmr.msra.gmra.mxu1 %vm299_vm3, %v1863_v40  ;;  %2118 = vmatpush.msrb.mxu2 %v3895_v45 }
0x252e   :  { %2143 = vmatpush.msrb.mxu3 %v3874_v18  ;;  %2210 = vmatpush.msra.mxu1 %v3929_v7 }
0x252f   :  { %2119 = vmatpush.msrb.mxu2 %v3897_v47 }
0x2530   :  { %2144 = vmatpush.msrb.mxu3 %v3876_v20  ;;  %2211 = vmatpush.msra.mxu1 %v3933_v52 }
0x2531   :  { %2120 = vmatpush.msrb.mxu2 %v3901_v50 }
0x2532   :  { %2145 = vmatpush.msrb.mxu3 %v3880_v21  ;;  %2212 = vmatpush.msra.mxu1 %v3939_v54 }
0x2533   :  { %2121 = vmatpush.msrb.mxu2 %v3905_v25 }
0x2534   :  { %2146 = vmatpush.msrb.mxu3 %v3884_v22  ;;  %2213 = vmatpush.msra.mxu1 %v3946_v9 }
0x25af   :  { %v1883_v38 = vpop.f32.mrf.mxu2  ;;  %v1903_v4 = vpop.f32.mrf.mxu3 }
0x25b0   :  { %v1884_v48 = vadd.f32 %v1883_v38, %v3988_v62  ;;  %v1904_v41 = vadd.f32 %v1903_v4, %v3991_v1 }
0x25b2   :  { %1907 = vst [vmem:[#allocation19 + $0x18] sm:$0xff] %v1884_v48  ;;  %v1928_v59 = vadd.f32 %v1925_v58, %v1904_v41 }
0x25b4   :  { %v1929_v5 = vmul.f32 %v1928_v59, %v3564_v29 }
0x25b6   :  { %3038 = vtanh.f32 %v1929_v5 }
0x25bc   :  { %v3039_v60 = vpop.eup %3038 }
0x25bd   :  { %v1931_v61 = vmul.f32 %v3039_v60, %v3564_v29 }
0x25bf   :  { %v1932_v63 = vadd.f32 %v1931_v61, %v3567_v33 }
0x25c1   :  { %1935 = vrot.lane.b32.xlu0 %v1932_v63, %s3397_s3  ;;  %v1933_v3 = vmul.f32 %v1932_v63, %v4100_v10  ;;  %v1967_v10 = vpop.f32.mrf.mxu1 }
0x2633   :  { %v1936_v0 = vpop.permute.xlu0 %1935 }
0x2634   :  { %v1938_v2 = vmul.f32 %v1936_v0, %v1932_v63 }
0x2636   :  { %1940 = vrot.lane.b32.xlu1 %v1938_v2, %s3398_s4 }
0x26a8   :  { %v1941_v6 = vpop.permute.xlu1 %1940 }
0x26a9   :  { %v4150_v8 = vadd.f32 %v1941_v6, %v1933_v3  ;;  %v4207_v3 = vld [vmem:[#allocation13 + $0x18] sm:$0xff]  ;;  %v4211_v6 = vld [vmem:[#allocation13 + $0x10] sm:$0xff] }
0x26ab   :  { %3040 = vtanh.f32 %v4150_v8 }
0x26b1   :  { %v3041_v24 = vpop.eup %3040 }
0x26b2   :  { %1946 = vrot.lane.b32.xlu2 %v3041_v24, %s3397_s3  ;;  %v4219_v24 = vld [vmem:[#allocation13] sm:$0xff] }
0x270c   :  { %v1947_v57 = vpop.permute.xlu2 %1946 }
0x270d   :  { %v1949_v12 = vmul.f32 %v1947_v57, %v1932_v63 }
0x270f   :  { %1971 = vrot.lane.b32.xlu0 %v1949_v12, %s3398_s4 }
0x2781   :  { %v1972_v13 = vpop.permute.xlu0 %1971 }
0x2782   :  { %2892 = vmatmul.msk.f32.vlgmr.msra.gmra.mxu2 %vm299_vm3, %v1972_v13  ;;  %2895 = vmatmul.msk.f32.vlgmr.msrb.gmra.mxu1 %vm299_vm3, %v1972_v13 }
0x2783   :  { %2232 = vmatpush.msra.mxu2 %v3834_v42  ;;  %2346 = vmatpush.msrb.mxu1 %v3931_v51 }
0x2785   :  { %2233 = vmatpush.msra.mxu2 %v3837_v44  ;;  %2347 = vmatpush.msrb.mxu1 %v3937_v53 }
0x2787   :  { %2234 = vmatpush.msra.mxu2 %v3839_v49  ;;  %2348 = vmatpush.msrb.mxu1 %v3941_v55 }
0x2789   :  { %2235 = vmatpush.msra.mxu2 %v3842_v28  ;;  %2349 = vmatpush.msrb.mxu1 %v3948_v56 }
0x2805   :  { %v1992_v15 = vpop.f32.mrf.mxu2 }
0x2806   :  { %v1993_v16 = vadd.f32 %v1992_v15, %v1967_v10 }
0x2808   :  { %v1995_v14 = vadd.f32 %v3917_v27, %v1993_v16 }
0x280a   :  { %v1996_v42 = vmul.f32 %v1995_v14, %v3564_v29 }
0x280c   :  { %3042 = vtanh.f32 %v1996_v42 }
0x2812   :  { %v3043_v19 = vpop.eup %3042 }
0x2813   :  { %v1998_v44 = vmul.f32 %v3043_v19, %v3564_v29 }
0x2815   :  { %v1999_v43 = vadd.f32 %v1998_v44, %v3567_v33 }
0x2817   :  { %2002 = vrot.lane.b32.xlu1 %v1999_v43, %s3397_s3  ;;  %v2000_v28 = vmul.f32 %v1999_v43, %v4122_v35  ;;  %v2081_v35 = vpop.f32.mrf.mxu1 }
0x2889   :  { %v2003_v49 = vpop.permute.xlu1 %2002 }
0x288a   :  { %v2005_v17 = vmul.f32 %v2003_v49, %v1999_v43 }
0x288c   :  { %2007 = vrot.lane.b32.xlu2 %v2005_v17, %s3398_s4 }
0x28e6   :  { %v2008_v23 = vpop.permute.xlu2 %2007 }
0x28e7   :  { %v4172_v26 = vadd.f32 %v2008_v23, %v2000_v28 }
0x28e9   :  { %3044 = vtanh.f32 %v4172_v26 }
0x28ef   :  { %v3045_v11 = vpop.eup %3044 }
0x28f0   :  { %2013 = vrot.lane.b32.xlu0 %v3045_v11, %s3397_s3 }
0x2962   :  { %v2014_v46 = vpop.permute.xlu0 %2013 }
0x2963   :  { %v2016_v30 = vmul.f32 %v2014_v46, %v1999_v43 }
0x2965   :  { %2018 = vrot.lane.b32.xlu1 %v2016_v30, %s3398_s4 }
0x29d7   :  { %v2019_v31 = vpop.permute.xlu1 %2018 }
0x29d8   :  { %2893 = vmatmul.msk.f32.vlgmr.msra.gmra.mxu3 %vm299_vm3, %v2019_v31  ;;  %2894 = vmatmul.msk.f32.vlgmr.msrb.gmra.mxu0 %vm299_vm3, %v2019_v31 }
0x29d9   :  { %2896 = vmatmul.msk.f32.vlgmr.msrb.gmra.mxu2 %vm299_vm3, %v2019_v31  ;;  %2274 = vmatpush.msra.mxu3 %v3895_v45 }
0x29da   :  { %2299 = vmatpush.msrb.mxu0 %v3874_v18  ;;  %2366 = vmatpush.msrb.mxu2 %v3929_v7 }
0x29db   :  { %2275 = vmatpush.msra.mxu3 %v3897_v47 }
0x29dc   :  { %2300 = vmatpush.msrb.mxu0 %v3876_v20  ;;  %2367 = vmatpush.msrb.mxu2 %v3933_v52 }
0x29dd   :  { %2276 = vmatpush.msra.mxu3 %v3901_v50 }
0x29de   :  { %2301 = vmatpush.msrb.mxu0 %v3880_v21  ;;  %2368 = vmatpush.msrb.mxu2 %v3939_v54 }
0x29df   :  { %2277 = vmatpush.msra.mxu3 %v3905_v25 }
0x29e0   :  { %2302 = vmatpush.msrb.mxu0 %v3884_v22  ;;  %2369 = vmatpush.msrb.mxu2 %v3946_v9 }
0x2a55   :  { %v2059_v32 = vpop.f32.mrf.mxu0 }
0x2a56   :  { %v2060_v34 = vadd.f32 %v2059_v32, %v3991_v1 }
0x2a58   :  { %v2084_v36 = vadd.f32 %v2081_v35, %v2060_v34 }
0x2a5a   :  { %v2085_v37 = vmul.f32 %v2084_v36, %v3564_v29 }
0x2a5b   :  { %v2039_v39 = vpop.f32.mrf.mxu3 }
0x2a5c   :  { %3046 = vtanh.f32 %v2085_v37  ;;  %v2040_v40 = vadd.f32 %v2039_v39, %v3988_v62  ;;  %v2123_v57 = vpop.f32.mrf.mxu2 }
0x2a5e   :  { %2063 = vst [vmem:[#allocation19 + $0x20] sm:$0xff] %v2040_v40 }
0x2a62   :  { %v3047_v38 = vpop.eup %3046 }
0x2a63   :  { %v2087_v4 = vmul.f32 %v3047_v38, %v3564_v29 }
0x2a65   :  { %v2088_v48 = vadd.f32 %v2087_v4, %v3567_v33 }
0x2a67   :  { %2091 = vrot.lane.b32.xlu2 %v2088_v48, %s3397_s3  ;;  %v2089_v59 = vmul.f32 %v2088_v48, %v4150_v8  ;;  %v4215_v8 = vld [vmem:[#allocation13 + $0x8] sm:$0xff] }
0x2ac1   :  { %v2092_v41 = vpop.permute.xlu2 %2091 }
0x2ac2   :  { %v2094_v58 = vmul.f32 %v2092_v41, %v2088_v48 }
0x2ac4   :  { %2096 = vrot.lane.b32.xlu0 %v2094_v58, %s3398_s4 }
0x2b36   :  { %v2097_v5 = vpop.permute.xlu0 %2096 }
0x2b37   :  { %v4200_v60 = vadd.f32 %v2097_v5, %v2089_v59 }
0x2b39   :  { %3048 = vtanh.f32 %v4200_v60 }
0x2b3f   :  { %v3049_v61 = vpop.eup %3048 }
0x2b40   :  { %2102 = vrot.lane.b32.xlu1 %v3049_v61, %s3397_s3 }
0x2bb2   :  { %v2103_v63 = vpop.permute.xlu1 %2102 }
0x2bb3   :  { %v2105_v0 = vmul.f32 %v2103_v63, %v2088_v48 }
0x2bb5   :  { %2127 = vrot.lane.b32.xlu2 %v2105_v0, %s3398_s4 }
0x2c0f   :  { %v2128_v2 = vpop.permute.xlu2 %2127 }
0x2c10   :  { %2897 = vmatmul.msk.f32.vlgmr.msrb.gmra.mxu3 %vm299_vm3, %v2128_v2  ;;  %2900 = vmatmul.msk.f32.vlgmr.msra.gmra.mxu2 %vm299_vm3, %v2128_v2 }
0x2c11   :  { %2388 = vmatpush.msrb.mxu3 %v4207_v3  ;;  %2502 = vmatpush.msra.mxu2 %v3931_v51 }
0x2c13   :  { %2389 = vmatpush.msrb.mxu3 %v4211_v6  ;;  %2503 = vmatpush.msra.mxu2 %v3937_v53 }
0x2c15   :  { %2390 = vmatpush.msrb.mxu3 %v4215_v8  ;;  %2504 = vmatpush.msra.mxu2 %v3941_v55 }
0x2c17   :  { %2391 = vmatpush.msrb.mxu3 %v4219_v24  ;;  %2505 = vmatpush.msra.mxu2 %v3948_v56 }
0x2c93   :  { %v2148_v12 = vpop.f32.mrf.mxu3 }
0x2c94   :  { %v2149_v13 = vadd.f32 %v2148_v12, %v2123_v57  ;;  %v4288_v12 = vld [vmem:[#allocation16 + $0x18] sm:$0xff] }
0x2c96   :  { %v2151_v10 = vadd.f32 %v3917_v27, %v2149_v13  ;;  %v4291_v13 = vld [vmem:[#allocation14 + $0x18] sm:$0xff] }
0x2c98   :  { %v2152_v15 = vmul.f32 %v2151_v10, %v3564_v29  ;;  %v4295_v10 = vld [vmem:[#allocation16 + $0x10] sm:$0xff] }
0x2c9a   :  { %3050 = vtanh.f32 %v2152_v15  ;;  %v4298_v15 = vld [vmem:[#allocation14 + $0x10] sm:$0xff] }
0x2ca0   :  { %v3051_v16 = vpop.eup %3050 }
0x2ca1   :  { %v2154_v14 = vmul.f32 %v3051_v16, %v3564_v29  ;;  %v4302_v16 = vld [vmem:[#allocation16 + $0x8] sm:$0xff] }
0x2ca3   :  { %v2155_v42 = vadd.f32 %v2154_v14, %v3567_v33  ;;  %v4305_v14 = vld [vmem:[#allocation14 + $0x8] sm:$0xff] }
0x2ca5   :  { %2158 = vrot.lane.b32.xlu0 %v2155_v42, %s3397_s3  ;;  %v2156_v43 = vmul.f32 %v2155_v42, %v4172_v26  ;;  %v2237_v26 = vpop.f32.mrf.mxu2 }
0x2d17   :  { %v2159_v19 = vpop.permute.xlu0 %2158 }
0x2d18   :  { %v2161_v44 = vmul.f32 %v2159_v19, %v2155_v42 }
0x2d1a   :  { %2163 = vrot.lane.b32.xlu1 %v2161_v44, %s3398_s4 }
0x2d8c   :  { %v2164_v49 = vpop.permute.xlu1 %2163 }
0x2d8d   :  { %v4230_v17 = vadd.f32 %v2164_v49, %v2156_v43 }
0x2d8f   :  { %3052 = vtanh.f32 %v4230_v17 }
0x2d95   :  { %v3053_v28 = vpop.eup %3052 }
0x2d96   :  { %2169 = vrot.lane.b32.xlu2 %v3053_v28, %s3397_s3 }
0x2df0   :  { %v2170_v23 = vpop.permute.xlu2 %2169 }
0x2df1   :  { %v2172_v11 = vmul.f32 %v2170_v23, %v2155_v42  ;;  %v4312_v42 = vld [vmem:[#allocation14] sm:$0xff] }
0x2df3   :  { %2174 = vrot.lane.b32.xlu0 %v2172_v11, %s3398_s4 }
0x2e65   :  { %v2175_v46 = vpop.permute.xlu0 %2174 }
0x2e66   :  { %2898 = vmatmul.msk.f32.vlgmr.msra.gmra.mxu0 %vm299_vm3, %v2175_v46  ;;  %2899 = vmatmul.msk.f32.vlgmr.msra.gmra.mxu1 %vm299_vm3, %v2175_v46 }
0x2e67   :  { %2901 = vmatmul.msk.f32.vlgmr.msra.gmra.mxu3 %vm299_vm3, %v2175_v46  ;;  %2430 = vmatpush.msra.mxu0 %v3895_v45 }
0x2e68   :  { %2455 = vmatpush.msra.mxu1 %v3874_v18  ;;  %2522 = vmatpush.msra.mxu3 %v3929_v7 }
0x2e69   :  { %2431 = vmatpush.msra.mxu0 %v3897_v47 }
0x2e6a   :  { %2456 = vmatpush.msra.mxu1 %v3876_v20  ;;  %2523 = vmatpush.msra.mxu3 %v3933_v52 }
0x2e6b   :  { %2432 = vmatpush.msra.mxu0 %v3901_v50 }
0x2e6c   :  { %2457 = vmatpush.msra.mxu1 %v3880_v21  ;;  %2524 = vmatpush.msra.mxu3 %v3939_v54 }
0x2e6d   :  { %2433 = vmatpush.msra.mxu0 %v3905_v25 }
0x2e6e   :  { %2458 = vmatpush.msra.mxu1 %v3884_v22  ;;  %2525 = vmatpush.msra.mxu3 %v3946_v9 }
0x2ee3   :  { %v2195_v18 = vpop.f32.mrf.mxu0  ;;  %v2215_v45 = vpop.f32.mrf.mxu1 }
0x2ee4   :  { %v2196_v47 = vadd.f32 %v2195_v18, %v3988_v62  ;;  %v2216_v20 = vadd.f32 %v2215_v45, %v3991_v1 }
0x2ee6   :  { %2219 = vst [vmem:[#allocation19 + $0x28] sm:$0xff] %v2196_v47  ;;  %v2240_v30 = vadd.f32 %v2237_v26, %v2216_v20 }
0x2ee8   :  { %v2241_v50 = vmul.f32 %v2240_v30, %v3564_v29 }
0x2eea   :  { %3054 = vtanh.f32 %v2241_v50  ;;  %v2279_v4 = vpop.f32.mrf.mxu3 }
0x2ef0   :  { %v3055_v21 = vpop.eup %3054 }
0x2ef1   :  { %v2243_v31 = vmul.f32 %v3055_v21, %v3564_v29  ;;  %v3098_v21 = vld [vmem:[#allocation17 + $0x30] sm:$0xff] }
0x2ef3   :  { %v2244_v25 = vadd.f32 %v2243_v31, %v3567_v33  ;;  %v3099_v31 = vld [vmem:[#allocation17 + $0x20] sm:$0xff] }
0x2ef5   :  { %2247 = vrot.lane.b32.xlu1 %v2244_v25, %s3397_s3  ;;  %v2245_v34 = vmul.f32 %v2244_v25, %v4200_v60 }
0x2f67   :  { %v2248_v22 = vpop.permute.xlu1 %2247 }
0x2f68   :  { %v2250_v32 = vmul.f32 %v2248_v22, %v2244_v25  ;;  %v3101_v22 = vld [vmem:[#allocation17] sm:$0xff] }
0x2f6a   :  { %2252 = vrot.lane.b32.xlu2 %v2250_v32, %s3398_s4 }
0x2fc4   :  { %v2253_v35 = vpop.permute.xlu2 %2252 }
0x2fc5   :  { %v4258_v36 = vadd.f32 %v2253_v35, %v2245_v34 }
0x2fc7   :  { %3056 = vtanh.f32 %v4258_v36 }
0x2fcd   :  { %v3057_v37 = vpop.eup %3056 }
0x2fce   :  { %2258 = vrot.lane.b32.xlu0 %v3057_v37, %s3397_s3 }
0x3040   :  { %v2259_v39 = vpop.permute.xlu0 %2258 }
0x3041   :  { %v2261_v40 = vmul.f32 %v2259_v39, %v2244_v25  ;;  %v3100_v25 = vld [vmem:[#allocation17 + $0x10] sm:$0xff] }
0x3043   :  { %2283 = vrot.lane.b32.xlu1 %v2261_v40, %s3398_s4 }
0x30b5   :  { %v2284_v38 = vpop.permute.xlu1 %2283 }
0x30b6   :  { %2902 = vmatmul.msk.f32.vlgmr.msrb.gmra.mxu0 %vm299_vm3, %v2284_v38  ;;  %2905 = vmatmul.msk.f32.vlgmr.msrb.gmra.mxu3 %vm299_vm3, %v2284_v38 }
0x30b7   :  { %2544 = vmatpush.msrb.mxu0 %v4207_v3  ;;  %2658 = vmatpush.msrb.mxu3 %v3931_v51 }
0x30b9   :  { %2545 = vmatpush.msrb.mxu0 %v4211_v6  ;;  %2659 = vmatpush.msrb.mxu3 %v3937_v53 }
0x30bb   :  { %2546 = vmatpush.msrb.mxu0 %v4215_v8  ;;  %2660 = vmatpush.msrb.mxu3 %v3941_v55 }
0x30bd   :  { %2547 = vmatpush.msrb.mxu0 %v4219_v24  ;;  %2661 = vmatpush.msrb.mxu3 %v3948_v56 }
0x3133   :  { %v2304_v48 = vpop.f32.mrf.mxu0 }
0x3134   :  { %v2305_v41 = vadd.f32 %v2304_v48, %v2279_v4 }
0x3136   :  { %v2307_v58 = vadd.f32 %v3917_v27, %v2305_v41 }
0x3138   :  { %v2308_v59 = vmul.f32 %v2307_v58, %v3564_v29 }
0x3139   :  { %v2393_v49 = vpop.f32.mrf.mxu3 }
0x313a   :  { %3058 = vtanh.f32 %v2308_v59 }
0x3140   :  { %v3059_v51 = vpop.eup %3058 }
0x3141   :  { %v2310_v5 = vmul.f32 %v3059_v51, %v3564_v29 }
0x3143   :  { %v2311_v53 = vadd.f32 %v2310_v5, %v3567_v33 }
0x3145   :  { %2314 = vrot.lane.b32.xlu2 %v2311_v53, %s3397_s3  ;;  %v2312_v56 = vmul.f32 %v2311_v53, %v4230_v17 }
0x319f   :  { %v2315_v55 = vpop.permute.xlu2 %2314 }
0x31a0   :  { %v2317_v60 = vmul.f32 %v2315_v55, %v2311_v53 }
0x31a2   :  { %2319 = vrot.lane.b32.xlu0 %v2317_v60, %s3398_s4 }
0x3214   :  { %v2320_v61 = vpop.permute.xlu0 %2319 }
0x3215   :  { %v4280_v63 = vadd.f32 %v2320_v61, %v2312_v56 }
0x3217   :  { %3060 = vtanh.f32 %v4280_v63 }
0x321d   :  { %v3061_v27 = vpop.eup %3060 }
0x321e   :  { %2325 = vrot.lane.b32.xlu1 %v3061_v27, %s3397_s3 }
0x3290   :  { %v2326_v0 = vpop.permute.xlu1 %2325 }
0x3291   :  { %v2328_v2 = vmul.f32 %v2326_v0, %v2311_v53 }
0x3293   :  { %2330 = vrot.lane.b32.xlu2 %v2328_v2, %s3398_s4 }
0x32ed   :  { %v2331_v57 = vpop.permute.xlu2 %2330 }
0x32ee   :  { %2903 = vmatmul.msk.f32.vlgmr.msrb.gmra.mxu1 %vm299_vm3, %v2331_v57  ;;  %2904 = vmatmul.msk.f32.vlgmr.msrb.gmra.mxu2 %vm299_vm3, %v2331_v57 }
0x32ef   :  { %2906 = vmatmul.msk.f32.vlgmr.msra.gmra.mxu0 %vm299_vm3, %v2331_v57  ;;  %2586 = vmatpush.msrb.mxu1 %v4288_v12 }
0x32f0   :  { %2611 = vmatpush.msrb.mxu2 %v4291_v13  ;;  %2678 = vmatpush.msra.mxu0 %v3929_v7  ;;  %v4309_v7 = vld [vmem:[#allocation16] sm:$0xff] }
0x32f1   :  { %2587 = vmatpush.msrb.mxu1 %v4295_v10 }
0x32f2   :  { %2612 = vmatpush.msrb.mxu2 %v4298_v15  ;;  %2679 = vmatpush.msra.mxu0 %v3933_v52 }
0x32f3   :  { %2588 = vmatpush.msrb.mxu1 %v4302_v16 }
0x32f4   :  { %2613 = vmatpush.msrb.mxu2 %v4305_v14  ;;  %2680 = vmatpush.msra.mxu0 %v3939_v54 }
0x32f5   :  { %2589 = vmatpush.msrb.mxu1 %v4309_v7 }
0x32f6   :  { %2614 = vmatpush.msrb.mxu2 %v4312_v42  ;;  %2681 = vmatpush.msra.mxu0 %v3946_v9 }
0x336b   :  { %v2351_v52 = vpop.f32.mrf.mxu1 }
0x336c   :  { %v2352_v19 = vadd.f32 %v2351_v52, %v3988_v62  ;;  %v2435_v32 = vpop.f32.mrf.mxu0 }
0x336e   :  { %2375 = vst [vmem:[#allocation19 + $0x30] sm:$0xff] %v2352_v19 }
0x3371   :  { %v2371_v44 = vpop.f32.mrf.mxu2 }
0x3372   :  { %v2372_v43 = vadd.f32 %v2371_v44, %v3991_v1 }
0x3374   :  { %v2396_v17 = vadd.f32 %v2393_v49, %v2372_v43 }
0x3376   :  { %v2397_v54 = vmul.f32 %v2396_v17, %v3564_v29 }
0x3378   :  { %3062 = vtanh.f32 %v2397_v54 }
0x337e   :  { %v3063_v28 = vpop.eup %3062 }
0x337f   :  { %v2399_v23 = vmul.f32 %v3063_v28, %v3564_v29 }
0x3381   :  { %v2400_v11 = vadd.f32 %v2399_v23, %v3567_v33 }
0x3383   :  { %2403 = vrot.lane.b32.xlu0 %v2400_v11, %s3397_s3  ;;  %v2401_v18 = vmul.f32 %v2400_v11, %v4258_v36 }
0x33f5   :  { %v2404_v9 = vpop.permute.xlu0 %2403 }
0x33f6   :  { %v2406_v46 = vmul.f32 %v2404_v9, %v2400_v11 }
0x33f8   :  { %2408 = vrot.lane.b32.xlu1 %v2406_v46, %s3398_s4 }
0x346a   :  { %v2409_v45 = vpop.permute.xlu1 %2408 }
0x346b   :  { %v4324_v47 = vadd.f32 %v2409_v45, %v2401_v18 }
0x346d   :  { %3064 = vtanh.f32 %v4324_v47 }
0x3473   :  { %v3065_v20 = vpop.eup %3064 }
0x3474   :  { %2414 = vrot.lane.b32.xlu2 %v3065_v20, %s3397_s3 }
0x34ce   :  { %v2415_v26 = vpop.permute.xlu2 %2414 }
0x34cf   :  { %v2417_v30 = vmul.f32 %v2415_v26, %v2400_v11 }
0x34d1   :  { %2439 = vrot.lane.b32.xlu0 %v2417_v30, %s3398_s4 }
0x3543   :  { %v2440_v50 = vpop.permute.xlu0 %2439 }
0x3544   :  { %2907 = vmatmul.msk.f32.vlgmr.msra.gmra.mxu1 %vm299_vm3, %v2440_v50  ;;  %2910 = vmatmul.msk.f32.vlgmr.msrb.gmra.mxu0 %vm299_vm3, %v2440_v50 }
0x3545   :  { %2700 = vmatpush.msra.mxu1 %v4207_v3  ;;  %2814 = vmatpush.msrb.mxu0 %v3098_v21  ;;  %v4338_v3 = vld [vmem:[%s4421_s12] ss:$0 sm:$0xff]  ;;  %s3399_s12 = smov [#allocation19]  }
0x3546   :  { %s2828_s5 = sshll.u32 %s3399_s12, 4  ;;  %s2829_s5 = int_to_ptr.vmem [resolvable:$true] %s2828_s5 }
0x3547   :  { %2701 = vmatpush.msra.mxu1 %v4211_v6  ;;  %2815 = vmatpush.msrb.mxu0 %v3099_v31 }
0x3549   :  { %2702 = vmatpush.msra.mxu1 %v4215_v8  ;;  %2816 = vmatpush.msrb.mxu0 %v3100_v25 }
0x354b   :  { %2703 = vmatpush.msra.mxu1 %v4219_v24  ;;  %2817 = vmatpush.msrb.mxu0 %v3101_v22 }
0x35c1   :  { %v2460_v34 = vpop.f32.mrf.mxu1  ;;  %v2549_v56 = vpop.f32.mrf.mxu0 }
0x35c2   :  { %v2461_v35 = vadd.f32 %v2460_v34, %v2435_v32 }
0x35c4   :  { %v2463_v6 = vadd.f32 %v4338_v3, %v2461_v35 }
0x35c6   :  { %v2464_v36 = vmul.f32 %v2463_v6, %v3564_v29 }
0x35c8   :  { %3066 = vtanh.f32 %v2464_v36 }
0x35ce   :  { %v3067_v8 = vpop.eup %3066 }
0x35cf   :  { %v2466_v37 = vmul.f32 %v3067_v8, %v3564_v29 }
0x35d1   :  { %v2467_v24 = vadd.f32 %v2466_v37, %v3567_v33 }
0x35d3   :  { %2470 = vrot.lane.b32.xlu1 %v2467_v24, %s3397_s3  ;;  %v2468_v38 = vmul.f32 %v2467_v24, %v4280_v63 }
0x3645   :  { %v2471_v39 = vpop.permute.xlu1 %2470 }
0x3646   :  { %v2473_v40 = vmul.f32 %v2471_v39, %v2467_v24 }
0x3648   :  { %2475 = vrot.lane.b32.xlu2 %v2473_v40, %s3398_s4 }
0x36a2   :  { %v2476_v4 = vpop.permute.xlu2 %2475 }
0x36a3   :  { %v2478_v48 = vadd.f32 %v2476_v4, %v2468_v38 }
0x36a5   :  { %3068 = vtanh.f32 %v2478_v48 }
0x36ab   :  { %v3069_v41 = vpop.eup %3068 }
0x36ac   :  { %2481 = vrot.lane.b32.xlu0 %v3069_v41, %s3397_s3 }
0x371e   :  { %v2482_v58 = vpop.permute.xlu0 %2481 }
0x371f   :  { %v2484_v59 = vmul.f32 %v2482_v58, %v2467_v24 }
0x3721   :  { %2486 = vrot.lane.b32.xlu1 %v2484_v59, %s3398_s4 }
0x3793   :  { %v2487_v51 = vpop.permute.xlu1 %2486 }
0x3794   :  { %2908 = vmatmul.msk.f32.vlgmr.msra.gmra.mxu2 %vm299_vm3, %v2487_v51  ;;  %2909 = vmatmul.msk.f32.vlgmr.msra.gmra.mxu3 %vm299_vm3, %v2487_v51 }
0x3795   :  { %2911 = vmatmul.msk.f32.vlgmr.msrb.gmra.mxu1 %vm299_vm3, %v2487_v51  ;;  %2742 = vmatpush.msra.mxu2 %v4288_v12 }
0x3796   :  { %2767 = vmatpush.msra.mxu3 %v4291_v13 }
0x3797   :  { %2743 = vmatpush.msra.mxu2 %v4295_v10 }
0x3798   :  { %2768 = vmatpush.msra.mxu3 %v4298_v15 }
0x3799   :  { %2744 = vmatpush.msra.mxu2 %v4302_v16 }
0x379a   :  { %2769 = vmatpush.msra.mxu3 %v4305_v14 }
0x379b   :  { %2745 = vmatpush.msra.mxu2 %v4309_v7 }
0x379c   :  { %2770 = vmatpush.msra.mxu3 %v4312_v42 }
0x3812   :  { %v2591_v52 = vpop.f32.mrf.mxu1 }
0x3817   :  { %v2507_v5 = vpop.f32.mrf.mxu2  ;;  %v2527_v53 = vpop.f32.mrf.mxu3 }
0x3818   :  { %v2508_v55 = vadd.f32 %v2507_v5, %v3988_v62  ;;  %v2528_v60 = vadd.f32 %v2527_v53, %v3991_v1 }
0x381a   :  { %2531 = vst [vmem:[#allocation19 + $0x38] sm:$0xff] %v2508_v55  ;;  %v2552_v61 = vadd.f32 %v2549_v56, %v2528_v60 }
0x381c   :  { %v2553_v63 = vmul.f32 %v2552_v61, %v3564_v29 }
0x381e   :  { %3070 = vtanh.f32 %v2553_v63 }
0x3824   :  { %v3071_v27 = vpop.eup %3070 }
0x3825   :  { %v2555_v0 = vmul.f32 %v3071_v27, %v3564_v29 }
0x3827   :  { %v2556_v2 = vadd.f32 %v2555_v0, %v3567_v33 }
0x3829   :  { %2559 = vrot.lane.b32.xlu2 %v2556_v2, %s3397_s3  ;;  %v2557_v13 = vmul.f32 %v2556_v2, %v4324_v47 }
0x3883   :  { %v2560_v57 = vpop.permute.xlu2 %2559 }
0x3884   :  { %v2562_v12 = vmul.f32 %v2560_v57, %v2556_v2 }
0x3886   :  { %2564 = vrot.lane.b32.xlu0 %v2562_v12, %s3398_s4 }
0x38f8   :  { %v2565_v10 = vpop.permute.xlu0 %2564 }
0x38f9   :  { %v2567_v15 = vadd.f32 %v2565_v10, %v2557_v13 }
0x38fb   :  { %3072 = vtanh.f32 %v2567_v15 }
0x3901   :  { %v3073_v16 = vpop.eup %3072 }
0x3902   :  { %2570 = vrot.lane.b32.xlu1 %v3073_v16, %s3397_s3 }
0x3974   :  { %v2571_v14 = vpop.permute.xlu1 %2570 }
0x3975   :  { %v2573_v7 = vmul.f32 %v2571_v14, %v2556_v2 }
0x3977   :  { %2595 = vrot.lane.b32.xlu2 %v2573_v7, %s3398_s4 }
0x39d1   :  { %v2596_v42 = vpop.permute.xlu2 %2595 }
0x39d2   :  { %2912 = vmatmul.msk.f32.vlgmr.msrb.gmra.mxu2 %vm299_vm3, %v2596_v42  ;;  %2915 = vmatmul.msk.f32.vlgmr.msra.gmra.mxu1 %vm299_vm3, %v2596_v42 }
0x3a4f   :  { %v2705_v21 = vpop.f32.mrf.mxu1 }
0x3a55   :  { %v2616_v19 = vpop.f32.mrf.mxu2 }
0x3a56   :  { %v2617_v44 = vadd.f32 %v2616_v19, %v2591_v52 }
0x3a58   :  { %v2619_v43 = vadd.f32 %v4338_v3, %v2617_v44 }
0x3a5a   :  { %v2620_v49 = vmul.f32 %v2619_v43, %v3564_v29 }
0x3a5c   :  { %3074 = vtanh.f32 %v2620_v49 }
0x3a62   :  { %v3075_v17 = vpop.eup %3074 }
0x3a63   :  { %v2622_v54 = vmul.f32 %v3075_v17, %v3564_v29 }
0x3a65   :  { %v2623_v28 = vadd.f32 %v2622_v54, %v3567_v33 }
0x3a67   :  { %2626 = vrot.lane.b32.xlu0 %v2623_v28, %s3397_s3  ;;  %v2624_v9 = vmul.f32 %v2623_v28, %v2478_v48 }
0x3ad9   :  { %v2627_v23 = vpop.permute.xlu0 %2626 }
0x3ada   :  { %v2629_v11 = vmul.f32 %v2627_v23, %v2623_v28 }
0x3adc   :  { %2631 = vrot.lane.b32.xlu1 %v2629_v11, %s3398_s4 }
0x3b4e   :  { %v2632_v46 = vpop.permute.xlu1 %2631 }
0x3b4f   :  { %v2634_v18 = vadd.f32 %v2632_v46, %v2624_v9 }
0x3b51   :  { %3076 = vtanh.f32 %v2634_v18 }
0x3b57   :  { %v3077_v45 = vpop.eup %3076 }
0x3b58   :  { %2637 = vrot.lane.b32.xlu2 %v3077_v45, %s3397_s3 }
0x3bb2   :  { %v2638_v47 = vpop.permute.xlu2 %2637 }
0x3bb3   :  { %v2640_v20 = vmul.f32 %v2638_v47, %v2623_v28 }
0x3bb5   :  { %2642 = vrot.lane.b32.xlu0 %v2640_v20, %s3398_s4 }
0x3c27   :  { %v2643_v26 = vpop.permute.xlu0 %2642 }
0x3c28   :  { %2913 = vmatmul.msk.f32.vlgmr.msrb.gmra.mxu3 %vm299_vm3, %v2643_v26  ;;  %2914 = vmatmul.msk.f32.vlgmr.msra.gmra.mxu0 %vm299_vm3, %v2643_v26 }
0x3c29   :  { %2916 = vmatmul.msk.f32.vlgmr.msra.gmra.mxu2 %vm299_vm3, %v2643_v26 }
0x3ca5   :  { %v2683_v30 = vpop.f32.mrf.mxu0 }
0x3ca6   :  { %v2684_v50 = vadd.f32 %v2683_v30, %v3991_v1 }
0x3ca8   :  { %v2708_v31 = vadd.f32 %v2705_v21, %v2684_v50 }
0x3caa   :  { %v2709_v25 = vmul.f32 %v2708_v31, %v3564_v29 }
0x3cab   :  { %v2663_v22 = vpop.f32.mrf.mxu3 }
0x3cac   :  { %3078 = vtanh.f32 %v2709_v25  ;;  %v2664_v32 = vadd.f32 %v2663_v22, %v3988_v62  ;;  %v2747_v48 = vpop.f32.mrf.mxu2 }
0x3cae   :  { %2687 = vst [vmem:[#allocation19 + $0x40] sm:$0xff] %v2664_v32 }
0x3cb2   :  { %v3079_v34 = vpop.eup %3078 }
0x3cb3   :  { %v2711_v35 = vmul.f32 %v3079_v34, %v3564_v29 }
0x3cb5   :  { %v2712_v6 = vadd.f32 %v2711_v35, %v3567_v33 }
0x3cb7   :  { %2715 = vrot.lane.b32.xlu1 %v2712_v6, %s3397_s3  ;;  %v2713_v1 = vmul.f32 %v2712_v6, %v2567_v15 }
0x3d29   :  { %v2716_v36 = vpop.permute.xlu1 %2715 }
0x3d2a   :  { %v2718_v8 = vmul.f32 %v2716_v36, %v2712_v6 }
0x3d2c   :  { %2720 = vrot.lane.b32.xlu2 %v2718_v8, %s3398_s4 }
0x3d86   :  { %v2721_v37 = vpop.permute.xlu2 %2720 }
0x3d87   :  { %v2723_v24 = vadd.f32 %v2721_v37, %v2713_v1 }
0x3d89   :  { %3080 = vtanh.f32 %v2723_v24 }
0x3d8f   :  { %v3081_v39 = vpop.eup %3080 }
0x3d90   :  { %2726 = vrot.lane.b32.xlu0 %v3081_v39, %s3397_s3 }
0x3e02   :  { %v2727_v40 = vpop.permute.xlu0 %2726 }
0x3e03   :  { %v2729_v38 = vmul.f32 %v2727_v40, %v2712_v6 }
0x3e05   :  { %2751 = vrot.lane.b32.xlu1 %v2729_v38, %s3398_s4 }
0x3e77   :  { %v2752_v4 = vpop.permute.xlu1 %2751 }
0x3e78   :  { %2917 = vmatmul.msk.f32.vlgmr.msra.gmra.mxu3 %vm299_vm3, %v2752_v4 }
0x3efb   :  { %v2772_v41 = vpop.f32.mrf.mxu3 }
0x3efc   :  { %v2773_v58 = vadd.f32 %v2772_v41, %v2747_v48 }
0x3efe   :  { %v2775_v59 = vadd.f32 %v4338_v3, %v2773_v58 }
0x3f00   :  { %v2776_v51 = vmul.f32 %v2775_v59, %v3564_v29 }
0x3f02   :  { %3082 = vtanh.f32 %v2776_v51 }
0x3f08   :  { %v3083_v5 = vpop.eup %3082 }
0x3f09   :  { %v2778_v53 = vmul.f32 %v3083_v5, %v3564_v29 }
0x3f0b   :  { %v2779_v55 = vadd.f32 %v2778_v53, %v3567_v33 }
0x3f0d   :  { %2782 = vrot.lane.b32.xlu2 %v2779_v55, %s3397_s3  ;;  %v2780_v61 = vmul.f32 %v2779_v55, %v2634_v18 }
0x3f67   :  { %v2783_v60 = vpop.permute.xlu2 %2782 }
0x3f68   :  { %v2785_v56 = vmul.f32 %v2783_v60, %v2779_v55 }
0x3f6a   :  { %2787 = vrot.lane.b32.xlu0 %v2785_v56, %s3398_s4 }
0x3fdc   :  { %v2788_v63 = vpop.permute.xlu0 %2787 }
0x3fdd   :  { %v2790_v27 = vadd.f32 %v2788_v63, %v2780_v61 }
0x3fdf   :  { %3084 = vtanh.f32 %v2790_v27 }
0x3fe5   :  { %v3085_v0 = vpop.eup %3084 }
0x3fe6   :  { %2793 = vrot.lane.b32.xlu1 %v3085_v0, %s3397_s3 }
0x4058   :  { %v2794_v3 = vpop.permute.xlu1 %2793 }
0x4059   :  { %v2796_v2 = vmul.f32 %v2794_v3, %v2779_v55 }
0x405b   :  { %2798 = vrot.lane.b32.xlu2 %v2796_v2, %s3398_s4 }
0x40b5   :  { %v2799_v29 = vpop.permute.xlu2 %2798 }
0x40b6   :  { %2918 = vmatmul.msk.f32.vlgmr.msrb.gmra.mxu0 %vm299_vm3, %v2799_v29 }
0x4133   :  { %v2819_v33 = vpop.f32.mrf.mxu0 }
0x4134   :  { %v2820_v57 = vadd.f32 %v2819_v33, %v3988_v62 }
0x4136   :  { %2823 = vst [vmem:[#allocation19 + $0x48] sm:$0xff] %v2820_v57 }
0x4137   :  { %2836 = dma.vmem_to_hbm [thread:$0]  %s2829_s5, 1280, %s2831_s24, [#allocation4], %s3382_s26, %s3382_s26, %s3383_s27  }
0x4138   :  { %3379 = dma.done.wait [#allocation4], 1280  }
0x4139   :  { %3380 = vsyncadd [#allocation4], 4294966016 }
0x413a   :  { %2841 = vsyncpa [#allocation3], 1 }
0x413b   :  { %2842 = vsyncpa [#allocation6], 1 }
0x413c   :  { %2843 = vsyncpa [#allocation9], 1 }
0x413d   :  { %2844 = vsyncpa [#allocation12], 1 }
0x413e   :  { %2845 = vsyncpa [#allocation15], 1 }
0x413f   :  { %2846 = vsyncpa [#allocation18], 1 }
0x4140   :  { %2847 = vsyncpa [#allocation4], 1 }

</bundles_post_ra>
